<compile_context>
chip_gen: v6e
topology: v6e:2x2x1
jax: 0.10.0
libtpu: 0.0.40
codegen_flags: <defaults>
</compile_context>

<pallas_src>
import math

import jax
import jax.numpy as jnp
from jax.experimental import pallas as pl
from jax.experimental.pallas import tpu as pltpu


# ----------------------------------------------------------------------------
# Pallas kernel: one batch tile of the full forward pass.
# ----------------------------------------------------------------------------
def _simgnn_tnm_kernel(e1_ref, e2_ref, wbig_ref, s_ref, b_ref, o_ref):
    e1 = e1_ref[...]                       # (TB, F) float32
    e2 = e2_ref[...]                       # (TB, F)
    d = e1 - e2                            # (TB, F)

    ft = s_ref.shape[0]                    # F * T

    # x = [e1 | e2 | |d| | e1+e2]  -> K = 4F = 128 contraction depth.
    x = jnp.concatenate([e1, e2, jnp.abs(d), e1 + e2], axis=1)         # (TB, 4F)

    # Single fused MXU matmul producing bilinear partial, lane-dense d-repeat
    # and the linear projections in one shot.
    res = jnp.dot(x, wbig_ref[...], preferred_element_type=jnp.float32)  # (TB, 2FT+T)

    tmp = res[:, :ft]                      # (TB, FT)  sum_g d[b,g] W[g,f,t]
    d_rep = res[:, ft:2 * ft]              # (TB, FT)  d[b,f] repeated along t
    proj = res[:, 2 * ft:]                 # (TB, T)   block + |diff| + add

    # Bilinear epilogue: one full-lane VPU multiply + K=FT MXU segment-sum.
    prod = tmp * d_rep                                                  # (TB, FT)
    scoring = jnp.dot(prod, s_ref[...], preferred_element_type=jnp.float32)  # (TB, T)

    out = scoring + proj + b_ref[...]      # bias (1, T) broadcasts over rows
    o_ref[...] = jnp.maximum(out, 0.0).astype(o_ref.dtype)             # ReLU


def _round_up(x, m):
    return (x + m - 1) // m * m


def _default_num_cores():
    """1 TensorCore on v5e/v6e, 2 on v7x (fallback: 1)."""
    try:
        kind = jax.devices()[0].device_kind.lower()
        return 2 if ("v7" in kind or "7x" in kind) else 1
    except Exception:  # pragma: no cover
        return 1


# ----------------------------------------------------------------------------
# One-time parameter re-layout (setup time, not per forward call).
# ----------------------------------------------------------------------------
def prepare_params(weight_matrix, weight_matrix_block, bias,
                   difference_matrix, addition_matrix,
                   weights_dtype=jnp.float32):
    """Returns (w_big, s_mat, bias_row) in kernel-friendly, lane-dense layouts.

    weights_dtype=jnp.bfloat16 halves weight DMA bytes / runs MXU at bf16
    peak; if used, relax the validation tolerance to ~1e-2.
    """
    F, _, T = weight_matrix.shape
    FT = F * T
    f32 = jnp.float32

    # w2d[g, f*T + t] = W[g, f, t]  (row-major reshape).
    w2d = weight_matrix.astype(f32).reshape(F, FT)
    # R[g, f*T + t] = 1 iff g == f  (lane-dense "repeat d along t" matrix).
    r_mat = jnp.kron(jnp.eye(F, dtype=f32), jnp.ones((1, T), f32))        # (F, FT)
    zeros_2f = jnp.zeros((2 * F, FT), f32)

    # Rows of W_big correspond to x = [e1, e2, |d|, e1+e2].
    col_tmp = jnp.concatenate([w2d, -w2d, zeros_2f], axis=0)              # (4F, FT)
    col_drep = jnp.concatenate([r_mat, -r_mat, zeros_2f], axis=0)         # (4F, FT)
    col_proj = jnp.concatenate(
        [weight_matrix_block.astype(f32).T,     # (2F, T) -> e1, e2 blocks
         difference_matrix.astype(f32).T,       # (F, T)  -> |e1 - e2|
         addition_matrix.astype(f32).T],        # (F, T)  -> e1 + e2
        axis=0)                                                            # (4F, T)

    w_big = jnp.concatenate([col_tmp, col_drep, col_proj],
                            axis=1).astype(weights_dtype)                  # (4F, 2FT+T)

    # S[f*T + t, t'] = 1 iff t == t'  (segment sum over f).
    s_mat = jnp.kron(jnp.ones((F, 1), f32),
                     jnp.eye(T, dtype=f32)).astype(weights_dtype)          # (FT, T)

    bias_row = bias.astype(f32).T                                          # (1, T)
    return w_big, s_mat, bias_row


# ----------------------------------------------------------------------------
# Forward pass. e1, e2: (B, F, 1) -> scores (B, T, 1).
# ----------------------------------------------------------------------------
def sum_diff_diff_tensor_network(e1, e2, w_big, s_mat, bias_row, *,
                                 max_tb=512, num_cores=None):
    B, F, _ = e1.shape
    T = bias_row.shape[1]
    FT = F * T
    assert w_big.shape == (4 * F, 2 * FT + T)
    assert s_mat.shape == (FT, T)

    if num_cores is None:
        num_cores = _default_num_cores()

    e1_2d = e1[..., 0].astype(jnp.float32)      # (B, F)
    e2_2d = e2[..., 0].astype(jnp.float32)

    # One grid step per TensorCore (v5e/v6e -> 1 step, v7x -> 2 steps); the
    # ~0.35 us/step pipeline overhead then amortizes over the whole batch.
    # Cap the tile to keep the (TB, 2FT+T) intermediate comfortably in VMEM.
    tb = min(_round_up(pl.cdiv(B, num_cores), 8), _round_up(max_tb, 8))
    tb = max(8, tb)
    grid = (pl.cdiv(B, tb),)

    out = pl.pallas_call(
        _simgnn_tnm_kernel,
        out_shape=jax.ShapeDtypeStruct((B, T), jnp.float32),
        grid=grid,
        in_specs=[
            pl.BlockSpec((tb, F), lambda i: (i, 0)),                 # e1 tile
            pl.BlockSpec((tb, F), lambda i: (i, 0)),                 # e2 tile
            pl.BlockSpec((4 * F, 2 * FT + T), lambda i: (0, 0)),     # fused W_big
            pl.BlockSpec((FT, T), lambda i: (0, 0)),                 # segment-sum S
            pl.BlockSpec((1, T), lambda i: (0, 0)),                  # bias row
        ],
        out_specs=pl.BlockSpec((tb, T), lambda i: (i, 0)),
        compiler_params=pltpu.CompilerParams(
            # Batch axis is embarrassingly parallel -> shards across the two
            # TensorCores on v7x; harmless on single-TC v5e/v6e.
            dimension_semantics=("parallel",)),
    )(e1_2d, e2_2d, w_big, s_mat, bias_row)

    return out[:, :, None]                                            # (B, T, 1)


# ----------------------------------------------------------------------------
# Deterministic parameter init (xavier_uniform_, same fan rules as torch).
# ----------------------------------------------------------------------------
def xavier_uniform(key, shape):
    if len(shape) == 2:
        fan_out, fan_in = shape[0], shape[1]
    else:
        receptive = math.prod(shape[2:])
        fan_in = shape[1] * receptive
        fan_out = shape[0] * receptive
    bound = math.sqrt(6.0 / (fan_in + fan_out))
    return jax.random.uniform(key, shape, jnp.float32, -bound, bound)


# ----------------------------------------------------------------------------
# Pure-JAX reference mirroring the torch forward exactly (for validation).
# ----------------------------------------------------------------------------
def reference_forward(e1, e2, W, Wb, bias, Dm, Am):
    B, F, _ = e1.shape
    T = Wb.shape[0]
    d = e1 - e2
    scoring = jnp.matmul(jnp.transpose(d, (0, 2, 1)), W.reshape(F, F * T))
    scoring = scoring.reshape(B, F, T)
    scoring = jnp.matmul(jnp.transpose(scoring, (0, 2, 1)), d)       # (B, T, 1)
    comb = jnp.concatenate([e1, e2], axis=1)                          # (B, 2F, 1)
    block = jnp.matmul(Wb, comb)                                      # (B, T, 1)
    diff = jnp.matmul(Dm, jnp.abs(d))
    add = jnp.matmul(Am, e1 + e2)
    return jax.nn.relu(scoring + block + bias + diff + add)


if __name__ == "__main__":
    B = 256        # batch of graph pairs
    F = 32         # args.filters_dim[-1]
    T = 16         # args.tensor_neurons

    key = jax.random.PRNGKey(0)
    k1, k2, k3, k4, k5, k6, k7 = jax.random.split(key, 7)

    # Parameters (shapes from setup_weights). Note: the original torch code
    # never initializes addition_matrix; here it is seeded deterministically.
    weight_matrix = xavier_uniform(k1, (F, F, T))
    weight_matrix_block = xavier_uniform(k2, (T, 2 * F))
    bias = xavier_uniform(k3, (T, 1))
    difference_matrix = xavier_uniform(k4, (T, F))
    addition_matrix = xavier_uniform(k5, (T, F))

    # Inputs: b x f x 1 embeddings, as documented in the torch forward().
    embedding_1 = jax.random.normal(k6, (B, F, 1), jnp.float32)
    embedding_2 = jax.random.normal(k7, (B, F, 1), jnp.float32)

    # One-time weight re-layout, then the kernel call.
    w_big, s_mat, bias_row = prepare_params(
        weight_matrix, weight_matrix_block, bias,
        difference_matrix, addition_matrix)

    scores = sum_diff_diff_tensor_network(
        embedding_1, embedding_2, w_big, s_mat, bias_row)
    scores = jax.block_until_ready(scores)

    ref = reference_forward(embedding_1, embedding_2,
                            weight_matrix, weight_matrix_block, bias,
                            difference_matrix, addition_matrix)
    ref = jax.block_until_ready(ref)

    assert scores.shape == (B, T, 1), scores.shape
    assert jnp.allclose(scores, ref, rtol=1e-4, atol=1e-4), (
        float(jnp.max(jnp.abs(scores - ref))))

    print("KERNEL_OK")
</pallas_src>

<mosaic_0001>
module attributes {stable_mosaic.version = 11 : i64} {
  func.func @_simgnn_tnm_kernel(%arg0: i32, %arg1: memref<256x32xf32, #tpu.memory_space<vmem>>, %arg2: memref<256x32xf32, #tpu.memory_space<vmem>>, %arg3: memref<128x1040xf32, #tpu.memory_space<vmem>>, %arg4: memref<512x16xf32, #tpu.memory_space<vmem>>, %arg5: memref<1x16xf32, #tpu.memory_space<vmem>>, %arg6: memref<256x16xf32, #tpu.memory_space<vmem>>) attributes {dimension_semantics = [#tpu.dimension_semantics<parallel>], iteration_bounds = array<i64: 1>, scalar_prefetch = 0 : i64, scratch_operands = 0 : i64, tpu.core_type = #tpu.core_type<tc>, window_params = [{transform_indices = @transform_0, window_bounds = array<i64: 256, 32>}, {transform_indices = @transform_1, window_bounds = array<i64: 256, 32>}, {pipeline_mode = #tpu.pipeline_mode<synchronous>, transform_indices = @transform_2, window_bounds = array<i64: 128, 1040>}, {pipeline_mode = #tpu.pipeline_mode<synchronous>, transform_indices = @transform_3, window_bounds = array<i64: 512, 16>}, {pipeline_mode = #tpu.pipeline_mode<synchronous>, transform_indices = @transform_4, window_bounds = array<i64: 1, 16>}, {transform_indices = @transform_5, window_bounds = array<i64: 256, 16>}]} {
    %c0 = arith.constant 0 : index
    %c0_0 = arith.constant 0 : index
    %0 = vector.load %arg1[%c0, %c0_0] : memref<256x32xf32, #tpu.memory_space<vmem>>, vector<256x32xf32>
    %c0_1 = arith.constant 0 : index
    %c0_2 = arith.constant 0 : index
    %1 = vector.load %arg2[%c0_1, %c0_2] : memref<256x32xf32, #tpu.memory_space<vmem>>, vector<256x32xf32>
    %2 = arith.subf %0, %1 : vector<256x32xf32>
    %3 = math.absf %2 : vector<256x32xf32>
    %4 = arith.addf %0, %1 : vector<256x32xf32>
    %5 = tpu.concatenate %0, %1, %3, %4 in 1 : vector<256x32xf32>, vector<256x32xf32>, vector<256x32xf32>, vector<256x32xf32> -> vector<256x128xf32>
    %c0_3 = arith.constant 0 : index
    %c0_4 = arith.constant 0 : index
    %6 = vector.load %arg3[%c0_3, %c0_4] : memref<128x1040xf32, #tpu.memory_space<vmem>>, vector<128x1040xf32>
    %cst = arith.constant dense<0.000000e+00> : vector<256x1040xf32>
    %7 = tpu.matmul %5, %6, %cst {dimension_numbers = #tpu.dot_dimension_numbers<[1], [0], [0], [1], [0, 0, 1, 1], [], []>} : vector<256x128xf32>, vector<128x1040xf32>, vector<256x1040xf32> -> vector<256x1040xf32>
    %8 = vector.extract_strided_slice %7 {offsets = [0, 0], sizes = [256, 512], strides = [1, 1]} : vector<256x1040xf32> to vector<256x512xf32>
    %9 = vector.extract_strided_slice %7 {offsets = [0, 512], sizes = [256, 512], strides = [1, 1]} : vector<256x1040xf32> to vector<256x512xf32>
    %10 = vector.extract_strided_slice %7 {offsets = [0, 1024], sizes = [256, 16], strides = [1, 1]} : vector<256x1040xf32> to vector<256x16xf32>
    %11 = arith.mulf %8, %9 : vector<256x512xf32>
    %c0_5 = arith.constant 0 : index
    %c0_6 = arith.constant 0 : index
    %12 = vector.load %arg4[%c0_5, %c0_6] : memref<512x16xf32, #tpu.memory_space<vmem>>, vector<512x16xf32>
    %cst_7 = arith.constant dense<0.000000e+00> : vector<256x16xf32>
    %13 = tpu.matmul %11, %12, %cst_7 {dimension_numbers = #tpu.dot_dimension_numbers<[1], [0], [0], [1], [0, 0, 1, 1], [], []>} : vector<256x512xf32>, vector<512x16xf32>, vector<256x16xf32> -> vector<256x16xf32>
    %14 = arith.addf %13, %10 : vector<256x16xf32>
    %c0_8 = arith.constant 0 : index
    %c0_9 = arith.constant 0 : index
    %15 = vector.load %arg5[%c0_8, %c0_9] : memref<1x16xf32, #tpu.memory_space<vmem>>, vector<1x16xf32>
    %16 = vector.broadcast %15 : vector<1x16xf32> to vector<256x16xf32>
    %17 = arith.addf %14, %16 : vector<256x16xf32>
    %cst_10 = arith.constant 0.000000e+00 : f32
    %18 = vector.broadcast %cst_10 : f32 to vector<256x16xf32>
    %19 = arith.maximumf %17, %18 : vector<256x16xf32>
    %c0_11 = arith.constant 0 : index
    %c0_12 = arith.constant 0 : index
    %20 = vector.load %arg6[%c0_11, %c0_12] : memref<256x16xf32, #tpu.memory_space<vmem>>, vector<256x16xf32>
    tpu.vector_store %arg6[%c0_11, %c0_12], %19 {strides = array<i32>} : memref<256x16xf32, #tpu.memory_space<vmem>>, vector<256x16xf32>,
    return
  }
  func.func @transform_0(%arg0: i32) -> (i32, i32) {
    %c0_i32 = arith.constant 0 : i32
    %c0_i32_0 = arith.constant 0 : i32
    return %arg0, %c0_i32 : i32, i32
  }
  func.func @transform_1(%arg0: i32) -> (i32, i32) {
    %c0_i32 = arith.constant 0 : i32
    %c0_i32_0 = arith.constant 0 : i32
    return %arg0, %c0_i32 : i32, i32
  }
  func.func @transform_2(%arg0: i32) -> (i32, i32) {
    %c0_i32 = arith.constant 0 : i32
    %c0_i32_0 = arith.constant 0 : i32
    %c0_i32_1 = arith.constant 0 : i32
    return %c0_i32, %c0_i32_0 : i32, i32
  }
  func.func @transform_3(%arg0: i32) -> (i32, i32) {
    %c0_i32 = arith.constant 0 : i32
    %c0_i32_0 = arith.constant 0 : i32
    %c0_i32_1 = arith.constant 0 : i32
    return %c0_i32, %c0_i32_0 : i32, i32
  }
  func.func @transform_4(%arg0: i32) -> (i32, i32) {
    %c0_i32 = arith.constant 0 : i32
    %c0_i32_0 = arith.constant 0 : i32
    %c0_i32_1 = arith.constant 0 : i32
    return %c0_i32, %c0_i32_0 : i32, i32
  }
  func.func @transform_5(%arg0: i32) -> (i32, i32) {
    %c0_i32 = arith.constant 0 : i32
    %c0_i32_0 = arith.constant 0 : i32
    return %arg0, %c0_i32 : i32, i32
  }
}

</mosaic_0001>

<bundles_post_ra>
// kernel: tpu_custom_call.1
= control target key start
LH: loop header
LB: loop body
LE: loop exit
PB: predicated region body
PF: predicated region fallthrough
CT: control target
= control target key end

     0   :  { %v5643_v3 = vmov 0.0   ;;  %s3208_s11 = smov 32   ;;  %s3209_s18 = smov 96   ;;  %vm564_vm0 = vcmask 261120   ;;  %vm597_vm1 = vcmask 523264   ;;  %vm630_vm2 = vcmask 785408   ;;  %s5637_s1 = inlined_call_operand.vmem [shape: f32[256,32], index: 1, kind: input, shape index: {}]   ;;  %s5638_s0 = inlined_call_operand.vmem [shape: f32[256,32], index: 0, kind: input, shape index: {}]   ;;  %s5639_s2 = inlined_call_operand.vmem [shape: f32[128,1040], index: 2, kind: input, shape index: {}]   ;;  %s5640_s3 = inlined_call_operand.vmem [shape: f32[512,16], index: 3, kind: input, shape index: {}]   ;;  %s5641_s4 = inlined_call_operand.vmem [shape: f32[1,16], index: 4, kind: input, shape index: {}]   ;;  %s5642_s5 = inlined_call_operand.vmem [shape: f32[256,16], index: 5, kind: output, shape index: {}]  }
   0x1   :  { %v76_v0 = vld [vmem:[%s5637_s1 + $0xc0] sm:$0xff]  ;;  %v77_v1 = vld [vmem:[%s5637_s1 + $0xc8] sm:$0xff]  ;;  %1015 = vmatprep.mubr.f32.mxu1 %v5643_v3  ;;  %871 = vmatprep.mubr.f32.mxu0 %v5643_v3  ;;  %v78_v8 = vld [vmem:[%s5637_s1 + $0xd0] sm:$0xff]  ;;  %s3210_s19 = smov 64   ;;  %vm2773_vm3 = vcmask 130048  }
   0x2   :  { %v3250_v2 = vld [vmem:[%s5638_s0 + $0xc0] sm:$0xff]  ;;  %v2975_v4 = vpack.i.bf16 %v77_v1, %v76_v0  ;;  %v3257_v5 = vld [vmem:[%s5638_s0 + $0xc8] sm:$0xff]  ;;  %v79_v9 = vld [vmem:[%s5637_s1 + $0xd8] sm:$0xff] }
   0x3   :  { %v172_v6 = vadd.f32 %v76_v0, %v3250_v2  ;;  %v108_v7 = vsub.f32 %v3250_v2, %v76_v0  ;;  %v173_v10 = vadd.f32 %v77_v1, %v3257_v5  ;;  %v109_v11 = vsub.f32 %v3257_v5, %v77_v1  ;;  %v3272_v12 = vld [vmem:[%s5638_s0 + $0xd0] sm:$0xff]  ;;  %v3277_v13 = vld [vmem:[%s5638_s0 + $0xd8] sm:$0xff]  ;;  %v80_v14 = vld [vmem:[%s5637_s1 + $0xe0] sm:$0xff] }
   0x4   :  { %2976 = vrot.lane.b32.xlu0 %v2975_v4, %s3208_s11  ;;  %v110_v16 = vsub.f32 %v3272_v12, %v78_v8  ;;  %v111_v17 = vsub.f32 %v3277_v13, %v79_v9  ;;  %v81_v18 = vld [vmem:[%s5637_s1 + $0xe8] sm:$0xff]  ;;  %v3291_v19 = vld [vmem:[%s5638_s0 + $0xe0] sm:$0xff]  ;;  %v2990_v23 = vpack.i.bf16 %v79_v9, %v78_v8  ;;  %v174_v26 = vadd.f32 %v78_v8, %v3272_v12  ;;  %v82_v32 = vld [vmem:[%s5637_s1 + $0xf0] sm:$0xff] }
   0x5   :  { %v140_v15 = vand.u32 2147483647, %v108_v7  ;;  %v3296_v20 = vld [vmem:[%s5638_s0 + $0xe8] sm:$0xff]  ;;  %v2985_v21 = vpack.i.bf16 %v173_v10, %v172_v6  ;;  %v141_v22 = vand.u32 2147483647, %v109_v11  ;;  %v175_v28 = vadd.f32 %v79_v9, %v3277_v13  ;;  %v83_v33 = vld [vmem:[%s5637_s1 + $0xf8] sm:$0xff] }
   0x6   :  { %v142_v24 = vand.u32 2147483647, %v110_v16  ;;  %v143_v25 = vand.u32 2147483647, %v111_v17  ;;  %v112_v29 = vsub.f32 %v3291_v19, %v80_v14  ;;  %v113_v30 = vsub.f32 %v3296_v20, %v81_v18  ;;  %v3313_v34 = vld [vmem:[%s5638_s0 + $0xf0] sm:$0xff]  ;;  %v3318_v35 = vld [vmem:[%s5638_s0 + $0xf8] sm:$0xff] }
   0x7   :  { %2986 = vrot.lane.b32.xlu1 %v2985_v21, %s3209_s18  ;;  %v2980_v27 = vpack.i.bf16 %v141_v22, %v140_v15  ;;  %v3000_v36 = vpack.i.bf16 %v175_v28, %v174_v26  ;;  %v3005_v39 = vpack.i.bf16 %v81_v18, %v80_v14  ;;  %v176_v40 = vadd.f32 %v80_v14, %v3291_v19  ;;  %v52_v45 = vld [vmem:[%s5637_s1] sm:$0xff]  ;;  %v53_v46 = vld [vmem:[%s5637_s1 + $0x8] sm:$0xff]  ;;  %v798_v58 = vld [vmem:[%s5639_s2 + $0x438] sm:$0xff] }
   0x8   :  { %v2995_v31 = vpack.i.bf16 %v143_v25, %v142_v24  ;;  %v144_v37 = vand.u32 2147483647, %v112_v29  ;;  %v145_v38 = vand.u32 2147483647, %v113_v30  ;;  %v177_v41 = vadd.f32 %v81_v18, %v3296_v20  ;;  %v3336_v47 = vld [vmem:[%s5638_s0] sm:$0xff]  ;;  %v3341_v48 = vld [vmem:[%s5638_s0 + $0x8] sm:$0xff] }
   0x9   :  { %2981 = vrot.lane.b32.xlu0 %v2980_v27, %s3210_s19  ;;  %v114_v42 = vsub.f32 %v3313_v34, %v82_v32  ;;  %v115_v43 = vsub.f32 %v3318_v35, %v83_v33  ;;  %v3020_v52 = vpack.i.bf16 %v83_v33, %v82_v32  ;;  %v178_v53 = vadd.f32 %v82_v32, %v3313_v34  ;;  %v799_v57 = vld [vmem:[%s5639_s2 + $0x440] sm:$0xff]  ;;  %v790_v59 = vld [vmem:[%s5639_s2 + $0x3f8] sm:$0xff]  ;;  %v3362_v61 = vld [vmem:[%s5637_s1 + $0x10] sm:$0xff] }
   0xa   :  { %v3010_v44 = vpack.i.bf16 %v145_v38, %v144_v37  ;;  %v3015_v49 = vpack.i.bf16 %v177_v41, %v176_v40  ;;  %v179_v54 = vadd.f32 %v83_v33, %v3318_v35  ;;  %v84_v55 = vsub.f32 %v3336_v47, %v52_v45  ;;  %2939 = vmatprep.subr.mxu1 %v799_v57  ;;  %v789_v62 = vld [vmem:[%s5639_s2 + $0x3f0] sm:$0xff]  ;;  %v3370_v63 = vld [vmem:[%s5637_s1 + $0x18] sm:$0xff]  ;;  %v780_v10 = vld [vmem:[%s5639_s2 + $0x3a8] sm:$0xff] }
   0xb   :  { %2991 = vrot.lane.b32.xlu1 %v2990_v23, %s3208_s11  ;;  %v146_v50 = vand.u32 2147483647, %v114_v42  ;;  %v147_v51 = vand.u32 2147483647, %v115_v43  ;;  %v85_v56 = vsub.f32 %v3341_v48, %v53_v46  ;;  %807 = vmatprep.subr.mxu0 %v799_v57  ;;  %v3375_v0 = vld [vmem:[%s5638_s0 + $0x10] sm:$0xff]  ;;  %v3380_v1 = vld [vmem:[%s5638_s0 + $0x18] sm:$0xff]  ;;  %v3035_v9 = vpack.i.bf16 %v53_v46, %v52_v45 }
   0xc   :  { %2955 = vmatpush1.msra.mxu1 %v798_v58  ;;  %808 = vmatpush1.msra.mxu0 %v798_v58  ;;  %v3030_v4 = vpack.i.bf16 %v179_v54, %v178_v53  ;;  %v116_v6 = vand.u32 2147483647, %v84_v55  ;;  %v781_v8 = vld [vmem:[%s5639_s2 + $0x3b0] sm:$0xff]  ;;  %v148_v11 = vadd.f32 %v52_v45, %v3336_v47  ;;  %v149_v14 = vadd.f32 %v53_v46, %v3341_v48  ;;  %v772_v17 = vld [vmem:[%s5639_s2 + $0x368] sm:$0xff]  ;;  %v771_v18 = vld [vmem:[%s5639_s2 + $0x360] sm:$0xff] }
   0xd   :  { %2996 = vrot.lane.b32.xlu0 %v2995_v31, %s3210_s19  ;;  %v3025_v60 = vpack.i.bf16 %v147_v51, %v146_v50  ;;  %2940 = vmatprep.subr.mxu1 %v790_v59  ;;  %v117_v7 = vand.u32 2147483647, %v85_v56  ;;  %v86_v15 = vsub.f32 %v3375_v0, %v3362_v61  ;;  %v87_v16 = vsub.f32 %v3380_v1, %v3370_v63  ;;  %v3406_v22 = vld [vmem:[%s5637_s1 + $0x20] sm:$0xff]  ;;  %v3411_v23 = vld [vmem:[%s5637_s1 + $0x28] sm:$0xff]  ;;  %v3431_v27 = vld [vmem:[%s5639_s2 + $0x318] sm:$0xff] }
   0xe   :  { %2956 = vmatpush1.msra.mxu1 %v789_v62  ;;  %809 = vmatprep.subr.mxu0 %v790_v59  ;;  %v3416_v24 = vld [vmem:[%s5639_s2 + $0x320] sm:$0xff]  ;;  %v3426_v26 = vld [vmem:[%s5638_s0 + $0x28] sm:$0xff]  ;;  %v3045_v28 = vpack.i.bf16 %v149_v14, %v148_v11  ;;  %v3437_v31 = vld [vmem:[%s5639_s2 + $0x2d8] sm:$0xff]  ;;  %v3050_v32 = vpack.i.bf16 %v3370_v63, %v3362_v61  ;;  %v150_v33 = vadd.f32 %v3362_v61, %v3375_v0 }
   0xf   :  { %3001 = vrot.lane.b32.xlu1 %v3000_v36, %s3209_s18  ;;  %2941 = vmatprep.subr.mxu1 %v781_v8  ;;  %v3040_v21 = vpack.i.bf16 %v117_v7, %v116_v6  ;;  %v3421_v25 = vld [vmem:[%s5638_s0 + $0x20] sm:$0xff]  ;;  %v118_v29 = vand.u32 2147483647, %v86_v15  ;;  %v119_v30 = vand.u32 2147483647, %v87_v16  ;;  %v3447_v36 = vld [vmem:[%s5639_s2 + $0x2d0] sm:$0xff]  ;;  %v151_v37 = vadd.f32 %v3370_v63, %v3380_v1 }
  0x10   :  { %810 = vmatpush1.msra.mxu0 %v789_v62  ;;  %2957 = vmatpush1.msra.mxu1 %v780_v10  ;;  %v88_v38 = vsub.f32 %v3421_v25, %v3406_v22  ;;  %v3460_v40 = vld [vmem:[%s5639_s2 + $0x290] sm:$0xff]  ;;  %v3466_v41 = vld [vmem:[%s5639_s2 + $0x288] sm:$0xff]  ;;  %v3499_v50 = vld [vmem:[%s5639_s2 + $0x240] sm:$0xff]  ;;  %v3065_v55 = vpack.i.bf16 %v3411_v23, %v3406_v22  ;;  %v152_v56 = vadd.f32 %v3406_v22, %v3421_v25 }
  0x11   :  { %3006 = vrot.lane.b32.xlu0 %v3005_v39, %s3208_s11  ;;  %2942 = vmatprep.subr.mxu1 %v772_v17  ;;  %v89_v39 = vsub.f32 %v3426_v26, %v3411_v23  ;;  %v3055_v42 = vpack.i.bf16 %v119_v30, %v118_v29  ;;  %v3472_v43 = vld [vmem:[%s5637_s1 + $0x30] sm:$0xff]  ;;  %v3483_v45 = vld [vmem:[%s5639_s2 + $0x248] sm:$0xff]  ;;  %v3060_v51 = vpack.i.bf16 %v151_v37, %v150_v33  ;;  %v3506_v54 = vld [vmem:[%s5639_s2 + $0x200] sm:$0xff] }
  0x12   :  { %811 = vmatprep.subr.mxu0 %v781_v8  ;;  %2958 = vmatpush1.msra.mxu1 %v771_v18  ;;  %v3488_v46 = vld [vmem:[%s5638_s0 + $0x30] sm:$0xff]  ;;  %v3516_v57 = vld [vmem:[%s5639_s2 + $0x1f8] sm:$0xff]  ;;  %v153_v58 = vadd.f32 %v3411_v23, %v3426_v26  ;;  %v3546_v6 = vld [vmem:[%s5637_s1 + $0x48] sm:$0xff] }
  0x13   :  { %3011 = vrot.lane.b32.xlu1 %v3010_v44, %s3210_s19  ;;  %2943 = vmatprep.subr.mxu1 %v3416_v24  ;;  %v3477_v44 = vld [vmem:[%s5637_s1 + $0x38] sm:$0xff]  ;;  %v121_v53 = vand.u32 2147483647, %v89_v39  ;;  %v90_v59 = vsub.f32 %v3488_v46, %v3472_v43  ;;  %v3535_v62 = vld [vmem:[%s5639_s2 + $0x1b0] sm:$0xff]  ;;  %v3557_v8 = vld [vmem:[%s5638_s0 + $0x40] sm:$0xff] }
  0x14   :  { %812 = vmatpush1.msra.mxu0 %v780_v10  ;;  %2959 = vmatpush1.msra.mxu1 %v3431_v27  ;;  %v3529_v61 = vld [vmem:[%s5639_s2 + $0x1b8] sm:$0xff]  ;;  %v3552_v7 = vld [vmem:[%s5639_s2 + $0x170] sm:$0xff]  ;;  %v3568_v10 = vld [vmem:[%s5639_s2 + $0x168] sm:$0xff]  ;;  %v3075_v11 = vpack.i.bf16 %v153_v58, %v152_v56 }
  0x15   :  { %3016 = vrot.lane.b32.xlu0 %v3015_v49, %s3209_s18  ;;  %2944 = vmatprep.subr.mxu1 %v3437_v31  ;;  %v3493_v49 = vld [vmem:[%s5638_s0 + $0x38] sm:$0xff]  ;;  %v122_v14 = vand.u32 2147483647, %v90_v59  ;;  %v3576_v16 = vld [vmem:[%s5639_s2 + $0x128] sm:$0xff]  ;;  %v62_v30 = vld [vmem:[%s5637_s1 + $0x50] sm:$0xff] }
  0x16   :  { %2960 = vmatpush1.msra.mxu1 %v3447_v36  ;;  %813 = vmatprep.subr.mxu0 %v772_v17  ;;  %v3080_v17 = vpack.i.bf16 %v3477_v44, %v3472_v43  ;;  %v155_v22 = vadd.f32 %v3477_v44, %v3493_v49  ;;  %v3620_v33 = vld [vmem:[%s5639_s2 + $0x98] sm:$0xff]  ;;  %v3666_v58 = vld [vmem:[%s5639_s2 + $0x8] sm:$0xff] }
  0x17   :  { %3021 = vrot.lane.b32.xlu1 %v3020_v52, %s3208_s11  ;;  %2945 = vmatprep.subr.mxu1 %v3460_v40  ;;  %v120_v52 = vand.u32 2147483647, %v88_v38  ;;  %v3630_v37 = vld [vmem:[%s5638_s0 + $0x58] sm:$0xff]  ;;  %v3636_v38 = vld [vmem:[%s5639_s2 + $0x90] sm:$0xff] }
  0x18   :  { %2961 = vmatpush1.msra.mxu1 %v3466_v41  ;;  %814 = vmatpush1.msra.mxu0 %v771_v18  ;;  %v154_v18 = vadd.f32 %v3472_v43, %v3488_v46 }
  0x19   :  { %3026 = vrot.lane.b32.xlu0 %v3025_v60, %s3210_s19  ;;  %2946 = vmatprep.subr.mxu1 %v3483_v45  ;;  %v91_v60 = vsub.f32 %v3493_v49, %v3477_v44  ;;  %v3070_v63 = vpack.i.bf16 %v121_v53, %v120_v52  ;;  %v3644_v44 = vld [vmem:[%s5639_s2 + $0x50] sm:$0xff] }
  0x1a   :  { %2962 = vmatpush1.msra.mxu1 %v3499_v50  ;;  %815 = vmatprep.subr.mxu0 %v3416_v24  ;;  %v3090_v39 = vpack.i.bf16 %v155_v22, %v154_v18 }
  0x1b   :  { %3031 = vrot.lane.b32.xlu1 %v3030_v4, %s3209_s18  ;;  %2947 = vmatprep.subr.mxu1 %v3506_v54  ;;  %v3541_v4 = vld [vmem:[%s5637_s1 + $0x40] sm:$0xff]  ;;  %v123_v15 = vand.u32 2147483647, %v91_v60 }
  0x1c   :  { %2963 = vmatpush1.msra.mxu1 %v3516_v57  ;;  %816 = vmatpush1.msra.mxu0 %v3431_v27  ;;  %v92_v23 = vsub.f32 %v3557_v8, %v3541_v4  ;;  %v3606_v27 = vld [vmem:[%s5639_s2 + $0xd8] sm:$0xff]  ;;  %v156_v52 = vadd.f32 %v3541_v4, %v3557_v8  ;;  %v64_v60 = vld [vmem:[%s5637_s1 + $0x60] sm:$0xff] }
  0x1d   :  { %3036 = vrot.lane.b32.xlu0 %v3035_v9, %s3208_s11  ;;  %v3562_v9 = vld [vmem:[%s5638_s0 + $0x48] sm:$0xff]  ;;  %2948 = vmatprep.subr.mxu1 %v3529_v61  ;;  %v3085_v29 = vpack.i.bf16 %v123_v15, %v122_v14 }
  0x1e   :  { %2964 = vmatpush1.msra.mxu1 %v3535_v62  ;;  %v93_v24 = vsub.f32 %v3562_v9, %v3546_v6  ;;  %817 = vmatprep.subr.mxu0 %v3437_v31  ;;  %v3625_v31 = vld [vmem:[%s5638_s0 + $0x50] sm:$0xff]  ;;  %v157_v53 = vadd.f32 %v3546_v6, %v3562_v9 }
  0x1f   :  { %3041 = vrot.lane.b32.xlu1 %v3040_v21, %s3210_s19  ;;  %2949 = vmatprep.subr.mxu1 %v3552_v7  ;;  %v3586_v21 = vld [vmem:[%s5639_s2 + $0x120] sm:$0xff]  ;;  %v158_v18 = vadd.f32 %v62_v30, %v3625_v31 }
  0x20   :  { %2965 = vmatpush1.msra.mxu1 %v3568_v10  ;;  %818 = vmatpush1.msra.mxu0 %v3447_v36  ;;  %v125_v43 = vand.u32 2147483647, %v93_v24  ;;  %v3654_v36 = vld [vmem:[%s5639_s2 + $0x48] sm:$0xff] }
  0x21   :  { %3046 = vrot.lane.b32.xlu0 %v3045_v28, %s3209_s18  ;;  %v3600_v28 = vld [vmem:[%s5639_s2 + $0xe0] sm:$0xff]  ;;  %2950 = vmatprep.subr.mxu1 %v3576_v16 }
  0x22   :  { %2966 = vmatpush1.msra.mxu1 %v3586_v21  ;;  %819 = vmatprep.subr.mxu0 %v3460_v40  ;;  %v3672_v40 = vld [vmem:[%s5639_s2] sm:$0xff] }
  0x23   :  { %3051 = vrot.lane.b32.xlu1 %v3050_v32, %s3208_s11  ;;  %v63_v32 = vld [vmem:[%s5637_s1 + $0x58] sm:$0xff]  ;;  %2951 = vmatprep.subr.mxu1 %v3600_v28 }
  0x24   :  { %2967 = vmatpush1.msra.mxu1 %v3606_v27  ;;  %v95_v56 = vsub.f32 %v3630_v37, %v63_v32  ;;  %820 = vmatpush1.msra.mxu0 %v3466_v41  ;;  %v3689_v41 = vld [vmem:[%s5638_s0 + $0x60] sm:$0xff]  ;;  %v159_v22 = vadd.f32 %v63_v32, %v3630_v37 }
  0x25   :  { %3056 = vrot.lane.b32.xlu0 %v3055_v42, %s3210_s19  ;;  %v124_v42 = vand.u32 2147483647, %v92_v23  ;;  %2952 = vmatprep.subr.mxu1 %v3620_v33  ;;  %v96_v23 = vsub.f32 %v3689_v41, %v64_v60 }
  0x26   :  { %2968 = vmatpush1.msra.mxu1 %v3636_v38  ;;  %821 = vmatprep.subr.mxu0 %v3483_v45  ;;  %v127_v15 = vand.u32 2147483647, %v95_v56 }
  0x27   :  { %3061 = vrot.lane.b32.xlu1 %v3060_v51, %s3209_s18  ;;  %v3095_v51 = vpack.i.bf16 %v3546_v6, %v3541_v4  ;;  %2953 = vmatprep.subr.mxu1 %v3644_v44  ;;  %v3100_v59 = vpack.i.bf16 %v125_v43, %v124_v42  ;;  %v65_v4 = vld [vmem:[%s5637_s1 + $0x68] sm:$0xff]  ;;  %v160_v42 = vadd.f32 %v64_v60, %v3689_v41 }
  0x28   :  { %2969 = vmatpush1.msra.mxu1 %v3654_v36  ;;  %v3694_v6 = vld [vmem:[%s5638_s0 + $0x68] sm:$0xff]  ;;  %822 = vmatpush1.msra.mxu0 %v3499_v50  ;;  %v67_v50 = vld [vmem:[%s5637_s1 + $0x78] sm:$0xff] }
  0x29   :  { %3066 = vrot.lane.b32.xlu0 %v3065_v55, %s3208_s11  ;;  %v94_v55 = vsub.f32 %v3625_v31, %v62_v30  ;;  %2954 = vmatprep.subr.mxu1 %v3666_v58  ;;  %v97_v45 = vsub.f32 %v3694_v6, %v65_v4  ;;  %v161_v43 = vadd.f32 %v65_v4, %v3694_v6 }
  0x2a   :  { %2970 = vmatpush1.msra.mxu1 %v3672_v40  ;;  %823 = vmatprep.subr.mxu0 %v3506_v54  ;;  %v3724_v54 = vld [vmem:[%s5638_s0 + $0x78] sm:$0xff] }
  0x2b   :  { %3071 = vrot.lane.b32.xlu1 %v3070_v63, %s3210_s19  ;;  %v801_v63 = vld [vmem:[%s5639_s2 + $0x450] sm:$0xff]  ;;  %v126_v14 = vand.u32 2147483647, %v94_v55  ;;  %824 = vmatpush1.msra.mxu0 %v3516_v57  ;;  %v3120_v57 = vpack.i.bf16 %v159_v22, %v158_v18 }
  0x2c   :  { %1064 = vmatprep.subr.mxu1 %v801_v63  ;;  %825 = vmatprep.subr.mxu0 %v3529_v61  ;;  %v128_v61 = vand.u32 2147483647, %v96_v23 }
  0x2d   :  { %3076 = vrot.lane.b32.xlu0 %v3075_v11, %s3209_s18  ;;  %v3105_v11 = vpack.i.bf16 %v157_v53, %v156_v52  ;;  %v3115_v24 = vpack.i.bf16 %v127_v15, %v126_v14  ;;  %826 = vmatpush1.msra.mxu0 %v3535_v62  ;;  %v99_v62 = vsub.f32 %v3724_v54, %v67_v50  ;;  %v68_v52 = vld [vmem:[%s5637_s1 + $0x80] sm:$0xff] }
  0x2e   :  { %827 = vmatprep.subr.mxu0 %v3552_v7  ;;  %v3748_v53 = vld [vmem:[%s5638_s0 + $0x80] sm:$0xff] }
  0x2f   :  { %3081 = vrot.lane.b32.xlu1 %v3080_v17, %s3208_s11  ;;  %v3110_v17 = vpack.i.bf16 %v63_v32, %v62_v30  ;;  %v3719_v30 = vld [vmem:[%s5638_s0 + $0x70] sm:$0xff]  ;;  %v129_v32 = vand.u32 2147483647, %v97_v45  ;;  %828 = vmatpush1.msra.mxu0 %v3568_v10  ;;  %v69_v10 = vld [vmem:[%s5637_s1 + $0x88] sm:$0xff]  ;;  %v100_v63 = vsub.f32 %v3748_v53, %v68_v52  ;;  %v164_v18 = vadd.f32 %v68_v52, %v3748_v53 }
  0x30   :  { %829 = vmatprep.subr.mxu0 %v3576_v16  ;;  %v37_v16 = vld [vmem:[%s5638_s0 + $0x88] sm:$0xff] }
  0x31   :  { %3086 = vrot.lane.b32.xlu0 %v3085_v29, %s3210_s19  ;;  %v66_v29 = vld [vmem:[%s5637_s1 + $0x70] sm:$0xff]  ;;  %830 = vmatpush1.msra.mxu0 %v3586_v21  ;;  %v3130_v7 = vpack.i.bf16 %v129_v32, %v128_v61  ;;  %v3135_v21 = vpack.i.bf16 %v161_v43, %v160_v42  ;;  %v132_v15 = vand.u32 2147483647, %v100_v63  ;;  %v165_v22 = vadd.f32 %v69_v10, %v37_v16 }
  0x32   :  { %831 = vmatprep.subr.mxu0 %v3600_v28  ;;  %v131_v28 = vand.u32 2147483647, %v99_v62  ;;  %v3140_v56 = vpack.i.bf16 %v67_v50, %v66_v29 }
  0x33   :  { %3091 = vrot.lane.b32.xlu1 %v3090_v39, %s3209_s18  ;;  %v3125_v39 = vpack.i.bf16 %v65_v4, %v64_v60  ;;  %832 = vmatpush1.msra.mxu0 %v3606_v27  ;;  %v163_v60 = vadd.f32 %v67_v50, %v3724_v54  ;;  %v101_v4 = vsub.f32 %v37_v16, %v69_v10  ;;  %v803_v27 = vld [vmem:[%s5639_s2 + $0x460] sm:$0xff] }
  0x34   :  { %833 = vmatprep.subr.mxu0 %v3620_v33  ;;  %v40_v50 = vld [vmem:[%s5638_s0 + $0xa0] sm:$0xff]  ;;  %v3165_v61 = vpack.i.bf16 %v165_v22, %v164_v18 }
  0x35   :  { %3096 = vrot.lane.b32.xlu0 %v3095_v51, %s3208_s11  ;;  %v98_v51 = vsub.f32 %v3719_v30, %v66_v29  ;;  %834 = vmatpush1.msra.mxu0 %v3636_v38  ;;  %v70_v38 = vld [vmem:[%s5637_s1 + $0x90] sm:$0xff] }
  0x36   :  { %835 = vmatprep.subr.mxu0 %v3644_v44  ;;  %v38_v44 = vld [vmem:[%s5638_s0 + $0x90] sm:$0xff] }
  0x37   :  { %3101 = vrot.lane.b32.xlu1 %v3100_v59, %s3210_s19  ;;  %v130_v55 = vand.u32 2147483647, %v98_v51  ;;  %v162_v59 = vadd.f32 %v66_v29, %v3719_v30  ;;  %836 = vmatpush1.msra.mxu0 %v3654_v36  ;;  %v39_v36 = vld [vmem:[%s5638_s0 + $0x98] sm:$0xff]  ;;  %v102_v23 = vsub.f32 %v38_v44, %v70_v38  ;;  %v73_v29 = vld [vmem:[%s5637_s1 + $0xa8] sm:$0xff]  ;;  %v166_v43 = vadd.f32 %v70_v38, %v38_v44 }
  0x38   :  { %837 = vmatprep.subr.mxu0 %v3666_v58  ;;  %v3155_v58 = vpack.i.bf16 %v69_v10, %v68_v52 }
  0x39   :  { %3106 = vrot.lane.b32.xlu0 %v3105_v11, %s3209_s18  ;;  %v3145_v33 = vpack.i.bf16 %v131_v28, %v130_v55  ;;  %v71_v11 = vld [vmem:[%s5637_s1 + $0x98] sm:$0xff]  ;;  %838 = vmatpush1.msra.mxu0 %v3672_v40  ;;  %v3150_v14 = vpack.i.bf16 %v163_v60, %v162_v59  ;;  %v72_v40 = vld [vmem:[%s5637_s1 + $0xa0] sm:$0xff]  ;;  %v134_v32 = vand.u32 2147483647, %v102_v23  ;;  %v42_v59 = vld [vmem:[%s5638_s0 + $0xb0] sm:$0xff] }
  0x3a   :  { %1321 = vmatprep.subr.mxu0 %v803_v27  ;;  %v103_v45 = vsub.f32 %v39_v36, %v71_v11  ;;  %v3170_v42 = vpack.i.bf16 %v71_v11, %v70_v38  ;;  %v167_v51 = vadd.f32 %v71_v11, %v39_v36  ;;  %v104_v62 = vsub.f32 %v40_v50, %v72_v40  ;;  %v74_v60 = vld [vmem:[%s5637_s1 + $0xb0] sm:$0xff]  ;;  %v75_v38 = vld [vmem:[%s5637_s1 + $0xb8] sm:$0xff] }
  0x3b   :  { %3111 = vrot.lane.b32.xlu1 %v3110_v17, %s3208_s11  ;;  %v133_v17 = vand.u32 2147483647, %v101_v4  ;;  %v3185_v55 = vpack.i.bf16 %v73_v29, %v72_v40  ;;  %v168_v28 = vadd.f32 %v72_v40, %v40_v50  ;;  %v106_v27 = vsub.f32 %v42_v59, %v74_v60 }
  0x3c   :  { %v3180_v10 = vpack.i.bf16 %v167_v51, %v166_v43  ;;  %v136_v16 = vand.u32 2147483647, %v104_v62  ;;  %v170_v44 = vadd.f32 %v74_v60, %v42_v59 }
  0x3d   :  { %3116 = vrot.lane.b32.xlu0 %v3115_v24, %s3210_s19  ;;  %v3160_v24 = vpack.i.bf16 %v133_v17, %v132_v15  ;;  %v138_v11 = vand.u32 2147483647, %v106_v27 }
  0x3f   :  { %3121 = vrot.lane.b32.xlu1 %v3120_v57, %s3209_s18  ;;  %v41_v57 = vld [vmem:[%s5638_s0 + $0xa8] sm:$0xff] }
  0x41   :  { %3126 = vrot.lane.b32.xlu0 %v3125_v39, %s3208_s11  ;;  %v135_v39 = vand.u32 2147483647, %v103_v45 }
  0x43   :  { %3131 = vrot.lane.b32.xlu1 %v3130_v7, %s3210_s19  ;;  %v105_v7 = vsub.f32 %v41_v57, %v73_v29  ;;  %v3175_v52 = vpack.i.bf16 %v135_v39, %v134_v32  ;;  %v800_v32 = vld [vmem:[%s5639_s2 + $0x448] sm:$0xff] }
  0x45   :  { %3136 = vrot.lane.b32.xlu0 %v3135_v21, %s3209_s18  ;;  %v137_v21 = vand.u32 2147483647, %v105_v7 }
  0x47   :  { %3141 = vrot.lane.b32.xlu1 %v3140_v56, %s3208_s11  ;;  %v169_v56 = vadd.f32 %v73_v29, %v41_v57  ;;  %v3190_v63 = vpack.i.bf16 %v137_v21, %v136_v16  ;;  %v783_v21 = vld [vmem:[%s5639_s2 + $0x3c0] sm:$0xff] }
  0x49   :  { %3146 = vrot.lane.b32.xlu0 %v3145_v33, %s3210_s19  ;;  %v3195_v4 = vpack.i.bf16 %v169_v56, %v168_v28  ;;  %v43_v33 = vld [vmem:[%s5638_s0 + $0xb8] sm:$0xff] }
  0x4a   :  { %v107_v36 = vsub.f32 %v43_v33, %v75_v38  ;;  %v171_v15 = vadd.f32 %v75_v38, %v43_v33 }
  0x4b   :  { %3151 = vrot.lane.b32.xlu1 %v3150_v14, %s3209_s18 }
  0x4c   :  { %v139_v14 = vand.u32 2147483647, %v107_v36 }
  0x4d   :  { %3156 = vrot.lane.b32.xlu0 %v3155_v58, %s3208_s11 }
  0x4f   :  { %3161 = vrot.lane.b32.xlu1 %v3160_v24, %s3210_s19 }
  0x51   :  { %3166 = vrot.lane.b32.xlu0 %v3165_v61, %s3209_s18 }
  0x53   :  { %3171 = vrot.lane.b32.xlu1 %v3170_v42, %s3208_s11 }
  0x55   :  { %3176 = vrot.lane.b32.xlu0 %v3175_v52, %s3210_s19  ;;  %v791_v52 = vld [vmem:[%s5639_s2 + $0x400] sm:$0xff] }
  0x57   :  { %3181 = vrot.lane.b32.xlu1 %v3180_v10, %s3209_s18 }
  0x59   :  { %3186 = vrot.lane.b32.xlu0 %v3185_v55, %s3208_s11  ;;  %v782_v55 = vld [vmem:[%s5639_s2 + $0x3b8] sm:$0xff] }
  0x5b   :  { %3191 = vrot.lane.b32.xlu1 %v3190_v63, %s3210_s19 }
  0x5d   :  { %3196 = vrot.lane.b32.xlu0 %v3195_v4, %s3209_s18  ;;  %v773_v4 = vld [vmem:[%s5639_s2 + $0x370] sm:$0xff] }
  0x5f   :  { %256 = vrot.lane.b32.xlu1 %v74_v60, %s3208_s11 }
  0x61   :  { %384 = vrot.lane.b32.xlu0 %v138_v11, %s3210_s19  ;;  %v765_v11 = vld [vmem:[%s5639_s2 + $0x330] sm:$0xff] }
  0x63   :  { %512 = vrot.lane.b32.xlu1 %v170_v44, %s3209_s18  ;;  %v764_v44 = vld [vmem:[%s5639_s2 + $0x328] sm:$0xff] }
  0x65   :  { %258 = vrot.lane.b32.xlu0 %v75_v38, %s3208_s11 }
  0x67   :  { %386 = vrot.lane.b32.xlu1 %v139_v14, %s3210_s19 }
  0x69   :  { %514 = vrot.lane.b32.xlu0 %v171_v15, %s3209_s18  ;;  %v756_v15 = vld [vmem:[%s5639_s2 + $0x2e8] sm:$0xff] }
  0x76   :  { %v2977_v17 = vpop.permute.xlu0 %2976 }
  0x77   :  { %v2978_v58 = vunpack.i.l.bf16 %v2977_v17  ;;  %v2979_v22 = vunpack.i.h.bf16 %v2977_v17 }
  0x79   :  { %v2987_v18 = vpop.permute.xlu1 %2986  ;;  %v589_v29 = vsel %vm564_vm0, %v3250_v2, %v2978_v58  ;;  %v590_v39 = vsel %vm564_vm0, %v3257_v5, %v2979_v22  ;;  %v792_v2 = vld [vmem:[%s5639_s2 + $0x408] sm:$0xff] }
  0x7a   :  { %v2988_v23 = vunpack.i.l.bf16 %v2987_v18  ;;  %v2989_v42 = vunpack.i.h.bf16 %v2987_v18  ;;  %v755_v18 = vld [vmem:[%s5639_s2 + $0x2e0] sm:$0xff] }
  0x7b   :  { %v2982_v45 = vpop.permute.xlu0 %2981 }
  0x7c   :  { %v2984_v24 = vunpack.i.h.bf16 %v2982_v45  ;;  %v2983_v40 = vunpack.i.l.bf16 %v2982_v45 }
  0x7d   :  { %v2992_v50 = vpop.permute.xlu1 %2991 }
  0x7e   :  { %v622_v57 = vsel %vm597_vm1, %v589_v29, %v2983_v40  ;;  %v2993_v61 = vunpack.i.l.bf16 %v2992_v50  ;;  %v623_v62 = vsel %vm597_vm1, %v590_v39, %v2984_v24  ;;  %v2994_v10 = vunpack.i.h.bf16 %v2992_v50  ;;  %v747_v24 = vld [vmem:[%s5639_s2 + $0x2a0] sm:$0xff]  ;;  %v746_v40 = vld [vmem:[%s5639_s2 + $0x298] sm:$0xff]  ;;  %v737_v39 = vld [vmem:[%s5639_s2 + $0x250] sm:$0xff] }
  0x7f   :  { %v2997_v43 = vpop.permute.xlu0 %2996  ;;  %v3833_v51 = vsel %vm630_vm2, %v622_v57, %v2988_v23  ;;  %v3853_v59 = vsel %vm630_vm2, %v623_v62, %v2989_v42  ;;  %v738_v57 = vld [vmem:[%s5639_s2 + $0x258] sm:$0xff]  ;;  %v729_v62 = vld [vmem:[%s5639_s2 + $0x210] sm:$0xff] }
  0x80   :  { %v2998_v7 = vunpack.i.l.bf16 %v2997_v43  ;;  %1016 = vmatmul.mubr.f32.vlgmr.msra.gmra.mxu1 %v3833_v51  ;;  %v591_v5 = vsel %vm564_vm0, %v3272_v12, %v2993_v61  ;;  %v774_v12 = vld [vmem:[%s5639_s2 + $0x378] sm:$0xff]  ;;  %v2999_v60 = vunpack.i.h.bf16 %v2997_v43  ;;  %v592_v27 = vsel %vm564_vm0, %v3277_v13, %v2994_v10 }
  0x81   :  { %1065 = vmatpush1.msra.mxu1 %v800_v32  ;;  %v3002_v16 = vpop.permute.xlu1 %3001  ;;  %1021 = vmatprep.mubr.f32.mxu1 %v5643_v3 }
  0x82   :  { %1066 = vmatprep.subr.mxu1 %v792_v2  ;;  %v3003_v28 = vunpack.i.l.bf16 %v3002_v16  ;;  %v624_v63 = vsel %vm597_vm1, %v591_v5, %v2998_v7  ;;  %v3004_v36 = vunpack.i.h.bf16 %v3002_v16  ;;  %v625_v17 = vsel %vm597_vm1, %v592_v27, %v2999_v60  ;;  %v728_v7 = vld [vmem:[%s5639_s2 + $0x208] sm:$0xff] }
  0x83   :  { %1067 = vmatpush1.msra.mxu1 %v791_v52  ;;  %v3007_v56 = vpop.permute.xlu0 %3006  ;;  %v720_v5 = vld [vmem:[%s5639_s2 + $0x1c8] sm:$0xff] }
  0x84   :  { %1068 = vmatprep.subr.mxu1 %v783_v21  ;;  %1022 = vmatmul.mubr.f32.gmra.mxu1 %v3853_v59  ;;  %v3008_v33 = vunpack.i.l.bf16 %v3007_v56  ;;  %v3875_v13 = vsel %vm630_vm2, %v624_v63, %v3003_v28  ;;  %v3009_v22 = vunpack.i.h.bf16 %v3007_v56  ;;  %v719_v56 = vld [vmem:[%s5639_s2 + $0x1c0] sm:$0xff] }
  0x85   :  { %1069 = vmatpush1.msra.mxu1 %v782_v55  ;;  %v3012_v38 = vpop.permute.xlu1 %3011  ;;  %1027 = vmatprep.mubr.f32.mxu1 %v5643_v3 }
  0x86   :  { %1070 = vmatprep.subr.mxu1 %v774_v12  ;;  %v3013_v58 = vunpack.i.l.bf16 %v3012_v38  ;;  %v593_v23 = vsel %vm564_vm0, %v3291_v19, %v3008_v33  ;;  %v3898_v19 = vsel %vm630_vm2, %v625_v17, %v3004_v36  ;;  %v3014_v61 = vunpack.i.h.bf16 %v3012_v38 }
  0x87   :  { %1071 = vmatpush1.msra.mxu1 %v773_v4  ;;  %v3872_v14 = vpop.permute.xlu0 %3016  ;;  %v594_v42 = vsel %vm564_vm0, %v3296_v20, %v3009_v22  ;;  %v711_v4 = vld [vmem:[%s5639_s2 + $0x180] sm:$0xff]  ;;  %v701_v22 = vld [vmem:[%s5639_s2 + $0x130] sm:$0xff] }
  0x88   :  { %1072 = vmatprep.subr.mxu1 %v765_v11  ;;  %1028 = vmatmul.mubr.f32.gmra.mxu1 %v3875_v13  ;;  %v3018_v29 = vunpack.i.l.bf16 %v3872_v14  ;;  %v626_v32 = vsel %vm597_vm1, %v593_v23, %v3013_v58  ;;  %v3019_v52 = vunpack.i.h.bf16 %v3872_v14  ;;  %v627_v16 = vsel %vm597_vm1, %v594_v42, %v3014_v61 }
  0x89   :  { %1073 = vmatpush1.msra.mxu1 %v764_v44  ;;  %v3022_v45 = vpop.permute.xlu1 %3021  ;;  %1033 = vmatprep.mubr.f32.mxu1 %v5643_v3 }
  0x8a   :  { %1074 = vmatprep.subr.mxu1 %v756_v15  ;;  %v3023_v43 = vunpack.i.l.bf16 %v3022_v45  ;;  %v3921_v20 = vsel %vm630_vm2, %v626_v32, %v3018_v29  ;;  %v3024_v12 = vunpack.i.h.bf16 %v3022_v45  ;;  %v3948_v15 = vsel %vm630_vm2, %v627_v16, %v3019_v52 }
  0x8b   :  { %1075 = vmatpush1.msra.mxu1 %v755_v18  ;;  %v3895_v50 = vpop.permute.xlu0 %3026 }
  0x8c   :  { %1076 = vmatprep.subr.mxu1 %v747_v24  ;;  %1034 = vmatmul.mubr.f32.gmra.mxu1 %v3898_v19  ;;  %v3028_v21 = vunpack.i.l.bf16 %v3895_v50  ;;  %v595_v60 = vsel %vm564_vm0, %v3313_v34, %v3023_v43  ;;  %v710_v34 = vld [vmem:[%s5639_s2 + $0x178] sm:$0xff]  ;;  %v3029_v44 = vunpack.i.h.bf16 %v3895_v50  ;;  %v596_v23 = vsel %vm564_vm0, %v3318_v35, %v3024_v12  ;;  %v693_v24 = vld [vmem:[%s5639_s2 + $0xf0] sm:$0xff]  ;;  %v692_v35 = vld [vmem:[%s5639_s2 + $0xe8] sm:$0xff] }
  0x8d   :  { %1077 = vmatpush1.msra.mxu1 %v746_v40  ;;  %v3910_v2 = vpop.permute.xlu1 %3031  ;;  %1039 = vmatprep.mubr.f32.mxu1 %v5643_v3 }
  0x8e   :  { %1078 = vmatprep.subr.mxu1 %v738_v57  ;;  %v3033_v36 = vunpack.i.l.bf16 %v3910_v2  ;;  %v3034_v61 = vunpack.i.h.bf16 %v3910_v2  ;;  %v629_v43 = vsel %vm597_vm1, %v596_v23, %v3029_v44  ;;  %v683_v2 = vld [vmem:[%s5639_s2 + $0xa0] sm:$0xff] }
  0x8f   :  { %1079 = vmatpush1.msra.mxu1 %v737_v39  ;;  %v3037_v10 = vpop.permute.xlu0 %3036  ;;  %v684_v39 = vld [vmem:[%s5639_s2 + $0xa8] sm:$0xff] }
  0x90   :  { %v3039_v55 = vunpack.i.h.bf16 %v3037_v10  ;;  %v3038_v28 = vunpack.i.l.bf16 %v3037_v10  ;;  %1080 = vmatprep.subr.mxu1 %v729_v62  ;;  %1040 = vmatmul.mubr.f32.gmra.mxu1 %v3921_v20 }
  0x91   :  { %1081 = vmatpush1.msra.mxu1 %v728_v7  ;;  %v3042_v63 = vpop.permute.xlu1 %3041  ;;  %1045 = vmatprep.mubr.f32.mxu1 %v5643_v3 }
  0x92   :  { %v565_v27 = vsel %vm564_vm0, %v3336_v47, %v3038_v28  ;;  %v566_v33 = vsel %vm564_vm0, %v3341_v48, %v3039_v55  ;;  %1082 = vmatprep.subr.mxu1 %v720_v5  ;;  %v3044_v38 = vunpack.i.h.bf16 %v3042_v63  ;;  %v3043_v11 = vunpack.i.l.bf16 %v3042_v63  ;;  %v702_v47 = vld [vmem:[%s5639_s2 + $0x138] sm:$0xff]  ;;  %v675_v5 = vld [vmem:[%s5639_s2 + $0x60] sm:$0xff]  ;;  %v665_v63 = vld [vmem:[%s5639_s2 + $0x10] sm:$0xff] }
  0x93   :  { %1083 = vmatpush1.msra.mxu1 %v719_v56  ;;  %v3047_v14 = vpop.permute.xlu0 %3046  ;;  %v628_v48 = vsel %vm597_vm1, %v595_v60, %v3028_v21  ;;  %v674_v28 = vld [vmem:[%s5639_s2 + $0x58] sm:$0xff]  ;;  %v4003_v56 = vsel %vm630_vm2, %v629_v43, %v3034_v61 }
  0x94   :  { %v598_v17 = vsel %vm597_vm1, %v565_v27, %v3043_v11  ;;  %1084 = vmatprep.subr.mxu1 %v711_v4  ;;  %v3049_v58 = vunpack.i.h.bf16 %v3047_v14  ;;  %v3048_v18 = vunpack.i.l.bf16 %v3047_v14  ;;  %1046 = vmatmul.mubr.f32.gmra.mxu1 %v3948_v15  ;;  %v599_v45 = vsel %vm597_vm1, %v566_v33, %v3044_v38  ;;  %v805_v38 = vld [vmem:[%s5639_s2 + $0x470] sm:$0xff] }
  0x95   :  { %1085 = vmatpush1.msra.mxu1 %v710_v34  ;;  %1051 = vmatprep.mubr.f32.mxu1 %v5643_v3  ;;  %v3052_v40 = vpop.permute.xlu1 %3051  ;;  %v3975_v32 = vsel %vm630_vm2, %v628_v48, %v3033_v36  ;;  %v804_v36 = vld [vmem:[%s5639_s2 + $0x468] sm:$0xff] }
  0x96   :  { %1086 = vmatprep.subr.mxu1 %v702_v47  ;;  %v3054_v29 = vunpack.i.h.bf16 %v3052_v40  ;;  %v3053_v50 = vunpack.i.l.bf16 %v3052_v40  ;;  %v3967_v57 = vsel %vm630_vm2, %v598_v17, %v3048_v18  ;;  %v3988_v52 = vsel %vm630_vm2, %v599_v45, %v3049_v58  ;;  %v796_v48 = vld [vmem:[%s5639_s2 + $0x428] sm:$0xff]  ;;  %v787_v40 = vld [vmem:[%s5639_s2 + $0x3e0] sm:$0xff] }
  0x97   :  { %1087 = vmatpush1.msra.mxu1 %v701_v22  ;;  %872 = vmatmul.mubr.f32.vlgmr.msra.gmra.mxu0 %v3967_v57  ;;  %v3057_v42 = vpop.permute.xlu0 %3056 }
  0x98   :  { %1088 = vmatprep.subr.mxu1 %v693_v24  ;;  %v567_v62 = vsel %vm564_vm0, %v3375_v0, %v3053_v50  ;;  %1052 = vmatmul.mubr.f32.gmra.mxu1 %v3975_v32  ;;  %v3058_v7 = vunpack.i.l.bf16 %v3057_v42  ;;  %v3059_v10 = vunpack.i.h.bf16 %v3057_v42  ;;  %v568_v0 = vsel %vm564_vm0, %v3380_v1, %v3054_v29  ;;  %v666_v1 = vld [vmem:[%s5639_s2 + $0x18] sm:$0xff] }
  0x99   :  { %1089 = vmatpush1.msra.mxu1 %v692_v35  ;;  %877 = vmatprep.mubr.f32.mxu0 %v5643_v3  ;;  %v3062_v16 = vpop.permute.xlu1 %3061  ;;  %v786_v50 = vld [vmem:[%s5639_s2 + $0x3d8] sm:$0xff] }
  0x9a   :  { %1090 = vmatprep.subr.mxu1 %v684_v39  ;;  %v600_v21 = vsel %vm597_vm1, %v567_v62, %v3058_v7  ;;  %1057 = vmatprep.mubr.f32.mxu1 %v5643_v3  ;;  %v3063_v55 = vunpack.i.l.bf16 %v3062_v16  ;;  %v3064_v60 = vunpack.i.h.bf16 %v3062_v16  ;;  %v601_v33 = vsel %vm597_vm1, %v568_v0, %v3059_v10  ;;  %v778_v39 = vld [vmem:[%s5639_s2 + $0x398] sm:$0xff]  ;;  %v777_v10 = vld [vmem:[%s5639_s2 + $0x390] sm:$0xff] }
  0x9b   :  { %1091 = vmatpush1.msra.mxu1 %v683_v2  ;;  %878 = vmatmul.mubr.f32.gmra.mxu0 %v3988_v52  ;;  %v3067_v12 = vpop.permute.xlu0 %3066  ;;  %v769_v16 = vld [vmem:[%s5639_s2 + $0x350] sm:$0xff]  ;;  %v794_v0 = vld [vmem:[%s5639_s2 + $0x418] sm:$0xff] }
  0x9c   :  { %1092 = vmatprep.subr.mxu1 %v675_v5  ;;  %1058 = vmatmul.mubr.f32.gmra.mxu1 %v4003_v56  ;;  %v3068_v4 = vunpack.i.l.bf16 %v3067_v12  ;;  %v4013_v27 = vsel %vm630_vm2, %v600_v21, %v3063_v55  ;;  %v3069_v34 = vunpack.i.h.bf16 %v3067_v12  ;;  %v4032_v58 = vsel %vm630_vm2, %v601_v33, %v3064_v60  ;;  %v768_v55 = vld [vmem:[%s5639_s2 + $0x348] sm:$0xff] }
  0x9d   :  { %1093 = vmatpush1.msra.mxu1 %v674_v28  ;;  %883 = vmatprep.mubr.f32.mxu0 %v5643_v3  ;;  %v3072_v11 = vpop.permute.xlu1 %3071  ;;  %v760_v33 = vld [vmem:[%s5639_s2 + $0x308] sm:$0xff] }
  0x9e   :  { %1094 = vmatprep.subr.mxu1 %v666_v1  ;;  %1128 = vmatprep.mubr.f32.mxu1 %v5643_v3  ;;  %v569_v44 = vsel %vm564_vm0, %v3421_v25, %v3068_v4  ;;  %v3073_v14 = vunpack.i.l.bf16 %v3072_v11  ;;  %v795_v25 = vld [vmem:[%s5639_s2 + $0x420] sm:$0xff]  ;;  %v3074_v18 = vunpack.i.h.bf16 %v3072_v11  ;;  %v570_v45 = vsel %vm564_vm0, %v3426_v26, %v3069_v34  ;;  %v802_v26 = vld [vmem:[%s5639_s2 + $0x458] sm:$0xff]  ;;  %v793_v4 = vld [vmem:[%s5639_s2 + $0x410] sm:$0xff] }
  0x9f   :  { %1095 = vmatpush1.msra.mxu1 %v665_v63  ;;  %884 = vmatmul.mubr.f32.gmra.mxu0 %v4013_v27  ;;  %v3077_v47 = vpop.permute.xlu0 %3076  ;;  %v759_v34 = vld [vmem:[%s5639_s2 + $0x300] sm:$0xff] }
  0xa0   :  { %1578 = vmatprep.subr.mxu1 %v805_v38  ;;  %1129 = vmatmul.mubr.f32.vlgmr.msra.gmra.mxu1 %v3967_v57  ;;  %v3078_v17 = vunpack.i.l.bf16 %v3077_v47  ;;  %v602_v22 = vsel %vm597_vm1, %v569_v44, %v3073_v14  ;;  %v3079_v35 = vunpack.i.h.bf16 %v3077_v47  ;;  %v603_v42 = vsel %vm597_vm1, %v570_v45, %v3074_v18  ;;  %v785_v38 = vld [vmem:[%s5639_s2 + $0x3d0] sm:$0xff]  ;;  %v776_v18 = vld [vmem:[%s5639_s2 + $0x388] sm:$0xff]  ;;  %v750_v45 = vld [vmem:[%s5639_s2 + $0x2b8] sm:$0xff] }
  0xa1   :  { %1579 = vmatpush1.msra.mxu1 %v804_v36  ;;  %889 = vmatprep.mubr.f32.mxu0 %v5643_v3  ;;  %v3082_v23 = vpop.permute.xlu1 %3081 }
  0xa2   :  { %1134 = vmatprep.mubr.f32.mxu1 %v5643_v3  ;;  %v3083_v24 = vunpack.i.l.bf16 %v3082_v23  ;;  %1580 = vmatprep.subr.mxu1 %v796_v48  ;;  %v4055_v61 = vsel %vm630_vm2, %v602_v22, %v3078_v17  ;;  %v3084_v2 = vunpack.i.h.bf16 %v3082_v23  ;;  %v4077_v21 = vsel %vm630_vm2, %v603_v42, %v3079_v35  ;;  %v784_v17 = vld [vmem:[%s5639_s2 + $0x3c8] sm:$0xff]  ;;  %v751_v22 = vld [vmem:[%s5639_s2 + $0x2c0] sm:$0xff]  ;;  %v742_v42 = vld [vmem:[%s5639_s2 + $0x278] sm:$0xff] }
  0xa3   :  { %890 = vmatmul.mubr.f32.gmra.mxu0 %v4032_v58  ;;  %1581 = vmatpush1.msra.mxu1 %v795_v25  ;;  %v3087_v29 = vpop.permute.xlu0 %3086  ;;  %v775_v35 = vld [vmem:[%s5639_s2 + $0x380] sm:$0xff] }
  0xa4   :  { %1135 = vmatmul.mubr.f32.gmra.mxu1 %v3988_v52  ;;  %895 = vmatprep.mubr.f32.mxu0 %v5643_v3  ;;  %v3088_v43 = vunpack.i.l.bf16 %v3087_v29  ;;  %v571_v7 = vsel %vm564_vm0, %v3488_v46, %v3083_v24  ;;  %v3089_v28 = vunpack.i.h.bf16 %v3087_v29  ;;  %v572_v60 = vsel %vm564_vm0, %v3493_v49, %v3084_v2 }
  0xa5   :  { %1140 = vmatprep.mubr.f32.mxu1 %v5643_v3  ;;  %v3092_v62 = vpop.permute.xlu1 %3091  ;;  %1582 = vmatprep.subr.mxu1 %v787_v40 }
  0xa6   :  { %1583 = vmatpush1.msra.mxu1 %v786_v50  ;;  %1322 = vmatpush1.msra.mxu0 %v802_v26  ;;  %v3093_v46 = vunpack.i.l.bf16 %v3092_v62  ;;  %v604_v1 = vsel %vm597_vm1, %v571_v7, %v3088_v43  ;;  %v3094_v11 = vunpack.i.h.bf16 %v3092_v62  ;;  %v605_v44 = vsel %vm597_vm1, %v572_v60, %v3089_v28  ;;  %v741_v62 = vld [vmem:[%s5639_s2 + $0x270] sm:$0xff] }
  0xa7   :  { %896 = vmatmul.mubr.f32.gmra.mxu0 %v4055_v61  ;;  %v3097_v5 = vpop.permute.xlu0 %3096  ;;  %1584 = vmatprep.subr.mxu1 %v778_v39  ;;  %v767_v39 = vld [vmem:[%s5639_s2 + $0x340] sm:$0xff]  ;;  %v733_v28 = vld [vmem:[%s5639_s2 + $0x230] sm:$0xff] }
  0xa8   :  { %1141 = vmatmul.mubr.f32.gmra.mxu1 %v4013_v27  ;;  %901 = vmatprep.mubr.f32.mxu0 %v5643_v3  ;;  %v3098_v63 = vunpack.i.l.bf16 %v3097_v5  ;;  %v4099_v49 = vsel %vm630_vm2, %v604_v1, %v3093_v46  ;;  %v3099_v47 = vunpack.i.h.bf16 %v3097_v5  ;;  %v4121_v23 = vsel %vm630_vm2, %v605_v44, %v3094_v11  ;;  %v757_v11 = vld [vmem:[%s5639_s2 + $0x2f0] sm:$0xff]  ;;  %v724_v44 = vld [vmem:[%s5639_s2 + $0x1e8] sm:$0xff] }
  0xa9   :  { %1146 = vmatprep.mubr.f32.mxu1 %v5643_v3  ;;  %v3102_v12 = vpop.permute.xlu1 %3101  ;;  %1585 = vmatpush1.msra.mxu1 %v777_v10 }
  0xaa   :  { %1586 = vmatprep.subr.mxu1 %v769_v16  ;;  %1323 = vmatprep.subr.mxu0 %v794_v0  ;;  %v3103_v36 = vunpack.i.l.bf16 %v3102_v12  ;;  %v573_v48 = vsel %vm564_vm0, %v3557_v8, %v3098_v63  ;;  %v3104_v24 = vunpack.i.h.bf16 %v3102_v12  ;;  %v574_v50 = vsel %vm564_vm0, %v3562_v9, %v3099_v47  ;;  %v766_v0 = vld [vmem:[%s5639_s2 + $0x338] sm:$0xff]  ;;  %v732_v12 = vld [vmem:[%s5639_s2 + $0x228] sm:$0xff] }
  0xab   :  { %902 = vmatmul.mubr.f32.gmra.mxu0 %v4077_v21  ;;  %1587 = vmatpush1.msra.mxu1 %v768_v55  ;;  %v3107_v14 = vpop.permute.xlu0 %3106  ;;  %v758_v55 = vld [vmem:[%s5639_s2 + $0x2f8] sm:$0xff] }
  0xac   :  { %1147 = vmatmul.mubr.f32.gmra.mxu1 %v4032_v58  ;;  %907 = vmatprep.mubr.f32.mxu0 %v5643_v3  ;;  %v3108_v8 = vunpack.i.l.bf16 %v3107_v14  ;;  %v606_v40 = vsel %vm597_vm1, %v573_v48, %v3103_v36  ;;  %v3109_v43 = vunpack.i.h.bf16 %v3107_v14  ;;  %v607_v2 = vsel %vm597_vm1, %v574_v50, %v3104_v24  ;;  %v723_v14 = vld [vmem:[%s5639_s2 + $0x1e0] sm:$0xff] }
  0xad   :  { %1152 = vmatprep.mubr.f32.mxu1 %v5643_v3  ;;  %1324 = vmatpush1.msra.mxu0 %v793_v4  ;;  %v3112_v25 = vpop.permute.xlu1 %3111  ;;  %v715_v24 = vld [vmem:[%s5639_s2 + $0x1a0] sm:$0xff] }
  0xae   :  { %1588 = vmatprep.subr.mxu1 %v760_v33  ;;  %1325 = vmatprep.subr.mxu0 %v785_v38  ;;  %v3113_v26 = vunpack.i.l.bf16 %v3112_v25  ;;  %v4143_v9 = vsel %vm630_vm2, %v606_v40, %v3108_v8  ;;  %v3114_v5 = vunpack.i.h.bf16 %v3112_v25  ;;  %v4165_v1 = vsel %vm630_vm2, %v607_v2, %v3109_v43  ;;  %v739_v43 = vld [vmem:[%s5639_s2 + $0x260] sm:$0xff]  ;;  %v706_v2 = vld [vmem:[%s5639_s2 + $0x158] sm:$0xff] }
  0xaf   :  { %908 = vmatmul.mubr.f32.gmra.mxu0 %v4099_v49  ;;  %1589 = vmatpush1.msra.mxu1 %v759_v34  ;;  %v3117_v29 = vpop.permute.xlu0 %3116  ;;  %v749_v34 = vld [vmem:[%s5639_s2 + $0x2b0] sm:$0xff] }
  0xb0   :  { %1153 = vmatmul.mubr.f32.gmra.mxu1 %v4055_v61  ;;  %913 = vmatprep.mubr.f32.mxu0 %v5643_v3  ;;  %v3118_v7 = vunpack.i.l.bf16 %v3117_v29  ;;  %v575_v16 = vsel %vm564_vm0, %v3625_v31, %v3113_v26  ;;  %v3119_v60 = vunpack.i.h.bf16 %v3117_v29  ;;  %v576_v33 = vsel %vm564_vm0, %v3630_v37, %v3114_v5  ;;  %v714_v29 = vld [vmem:[%s5639_s2 + $0x198] sm:$0xff] }
  0xb1   :  { %1158 = vmatprep.mubr.f32.mxu1 %v5643_v3  ;;  %1326 = vmatpush1.msra.mxu0 %v784_v17  ;;  %v3122_v10 = vpop.permute.xlu1 %3121 }
  0xb2   :  { %1327 = vmatprep.subr.mxu0 %v776_v18  ;;  %1590 = vmatprep.subr.mxu1 %v751_v22  ;;  %v3123_v31 = vunpack.i.l.bf16 %v3122_v10  ;;  %v608_v63 = vsel %vm597_vm1, %v575_v16, %v3118_v7  ;;  %v3124_v36 = vunpack.i.h.bf16 %v3122_v10  ;;  %v609_v47 = vsel %vm597_vm1, %v576_v33, %v3119_v60  ;;  %v748_v22 = vld [vmem:[%s5639_s2 + $0x2a8] sm:$0xff]  ;;  %v705_v10 = vld [vmem:[%s5639_s2 + $0x150] sm:$0xff] }
  0xb3   :  { %914 = vmatmul.mubr.f32.gmra.mxu0 %v4121_v23  ;;  %1591 = vmatpush1.msra.mxu1 %v750_v45  ;;  %v3127_v46 = vpop.permute.xlu0 %3126  ;;  %v740_v45 = vld [vmem:[%s5639_s2 + $0x268] sm:$0xff]  ;;  %v697_v60 = vld [vmem:[%s5639_s2 + $0x110] sm:$0xff] }
  0xb4   :  { %1159 = vmatmul.mubr.f32.gmra.mxu1 %v4077_v21  ;;  %919 = vmatprep.mubr.f32.mxu0 %v5643_v3  ;;  %v3128_v38 = vunpack.i.l.bf16 %v3127_v46  ;;  %v4187_v37 = vsel %vm630_vm2, %v608_v63, %v3123_v31  ;;  %v3129_v25 = vunpack.i.h.bf16 %v3127_v46  ;;  %v4209_v40 = vsel %vm630_vm2, %v609_v47, %v3124_v36  ;;  %v721_v36 = vld [vmem:[%s5639_s2 + $0x1d0] sm:$0xff]  ;;  %v688_v47 = vld [vmem:[%s5639_s2 + $0xc8] sm:$0xff] }
  0xb5   :  { %1164 = vmatprep.mubr.f32.mxu1 %v5643_v3  ;;  %1328 = vmatpush1.msra.mxu0 %v775_v35  ;;  %v3132_v4 = vpop.permute.xlu1 %3131 }
  0xb6   :  { %1329 = vmatprep.subr.mxu0 %v767_v39  ;;  %1592 = vmatprep.subr.mxu1 %v742_v42  ;;  %v3133_v48 = vunpack.i.l.bf16 %v3132_v4  ;;  %v577_v18 = vsel %vm564_vm0, %v3689_v41, %v3128_v38  ;;  %v3134_v50 = vunpack.i.h.bf16 %v3132_v4  ;;  %v578_v39 = vsel %vm564_vm0, %v3694_v6, %v3129_v25  ;;  %v696_v4 = vld [vmem:[%s5639_s2 + $0x108] sm:$0xff] }
  0xb7   :  { %920 = vmatmul.mubr.f32.gmra.mxu0 %v4143_v9  ;;  %1593 = vmatpush1.msra.mxu1 %v741_v62  ;;  %v3137_v17 = vpop.permute.xlu0 %3136  ;;  %v731_v62 = vld [vmem:[%s5639_s2 + $0x220] sm:$0xff] }
  0xb8   :  { %1165 = vmatmul.mubr.f32.gmra.mxu1 %v4099_v49  ;;  %925 = vmatprep.mubr.f32.mxu0 %v5643_v3  ;;  %v3138_v41 = vunpack.i.l.bf16 %v3137_v17  ;;  %v610_v26 = vsel %vm597_vm1, %v577_v18, %v3133_v48  ;;  %v3139_v7 = vunpack.i.h.bf16 %v3137_v17  ;;  %v611_v5 = vsel %vm597_vm1, %v578_v39, %v3134_v50  ;;  %v687_v17 = vld [vmem:[%s5639_s2 + $0xc0] sm:$0xff] }
  0xb9   :  { %1170 = vmatprep.mubr.f32.mxu1 %v5643_v3  ;;  %1330 = vmatpush1.msra.mxu0 %v766_v0  ;;  %v3142_v8 = vpop.permute.xlu1 %3141  ;;  %v679_v50 = vld [vmem:[%s5639_s2 + $0x80] sm:$0xff] }
  0xba   :  { %1331 = vmatprep.subr.mxu0 %v758_v55  ;;  %1594 = vmatprep.subr.mxu1 %v733_v28  ;;  %v3143_v42 = vunpack.i.l.bf16 %v3142_v8  ;;  %v4231_v6 = vsel %vm630_vm2, %v610_v26, %v3138_v41  ;;  %v3144_v46 = vunpack.i.h.bf16 %v3142_v8  ;;  %v730_v28 = vld [vmem:[%s5639_s2 + $0x218] sm:$0xff]  ;;  %v4253_v63 = vsel %vm630_vm2, %v611_v5, %v3139_v7  ;;  %v695_v5 = vld [vmem:[%s5639_s2 + $0x100] sm:$0xff] }
  0xbb   :  { %926 = vmatmul.mubr.f32.gmra.mxu0 %v4165_v1  ;;  %1595 = vmatpush1.msra.mxu1 %v732_v12  ;;  %v3147_v35 = vpop.permute.xlu0 %3146  ;;  %v722_v12 = vld [vmem:[%s5639_s2 + $0x1d8] sm:$0xff] }
  0xbc   :  { %1171 = vmatmul.mubr.f32.gmra.mxu1 %v4121_v23  ;;  %931 = vmatprep.mubr.f32.mxu0 %v5643_v3  ;;  %v3148_v16 = vunpack.i.l.bf16 %v3147_v35  ;;  %v579_v55 = vsel %vm564_vm0, %v3719_v30, %v3143_v42  ;;  %v3149_v33 = vunpack.i.h.bf16 %v3147_v35  ;;  %v678_v35 = vld [vmem:[%s5639_s2 + $0x78] sm:$0xff] }
  0xbd   :  { %1176 = vmatprep.mubr.f32.mxu1 %v5643_v3  ;;  %1332 = vmatpush1.msra.mxu0 %v757_v11  ;;  %v3152_v0 = vpop.permute.xlu1 %3151 }
  0xbe   :  { %1333 = vmatprep.subr.mxu0 %v749_v34  ;;  %1596 = vmatprep.subr.mxu1 %v724_v44  ;;  %v3153_v30 = vunpack.i.l.bf16 %v3152_v0  ;;  %v612_v38 = vsel %vm597_vm1, %v579_v55, %v3148_v16  ;;  %v580_v34 = vsel %vm564_vm0, %v3724_v54, %v3144_v46  ;;  %v3154_v48 = vunpack.i.h.bf16 %v3152_v0  ;;  %v670_v16 = vld [vmem:[%s5639_s2 + $0x38] sm:$0xff]  ;;  %v669_v55 = vld [vmem:[%s5639_s2 + $0x30] sm:$0xff] }
  0xbf   :  { %932 = vmatmul.mubr.f32.gmra.mxu0 %v4187_v37  ;;  %1597 = vmatpush1.msra.mxu1 %v723_v14  ;;  %v3157_v31 = vpop.permute.xlu0 %3156  ;;  %v713_v14 = vld [vmem:[%s5639_s2 + $0x190] sm:$0xff]  ;;  %v613_v25 = vsel %vm597_vm1, %v580_v34, %v3149_v33  ;;  %v694_v33 = vld [vmem:[%s5639_s2 + $0xf8] sm:$0xff] }
  0xc0   :  { %1177 = vmatmul.mubr.f32.gmra.mxu1 %v4143_v9  ;;  %937 = vmatprep.mubr.f32.mxu0 %v5643_v3  ;;  %v3158_v44 = vunpack.i.l.bf16 %v3157_v31  ;;  %v4275_v54 = vsel %vm630_vm2, %v612_v38, %v3153_v30  ;;  %v3159_v8 = vunpack.i.h.bf16 %v3157_v31  ;;  %v4297_v26 = vsel %vm630_vm2, %v613_v25, %v3154_v48  ;;  %v3201_v30 = vld [vmem:[%s5638_s0 + $0x90] sm:$0xff] }
  0xc1   :  { %1182 = vmatprep.mubr.f32.mxu1 %v5643_v3  ;;  %1334 = vmatpush1.msra.mxu0 %v748_v22  ;;  %v3162_v11 = vpop.permute.xlu1 %3161 }
  0xc2   :  { %1335 = vmatprep.subr.mxu0 %v740_v45  ;;  %1598 = vmatprep.subr.mxu1 %v715_v24  ;;  %v3163_v18 = vunpack.i.l.bf16 %v3162_v11  ;;  %v581_v45 = vsel %vm564_vm0, %v3748_v53, %v3158_v44  ;;  %v712_v24 = vld [vmem:[%s5639_s2 + $0x188] sm:$0xff]  ;;  %v3164_v39 = vunpack.i.h.bf16 %v3162_v11  ;;  %v686_v11 = vld [vmem:[%s5639_s2 + $0xb8] sm:$0xff] }
  0xc3   :  { %938 = vmatmul.mubr.f32.gmra.mxu0 %v4209_v40  ;;  %1599 = vmatpush1.msra.mxu1 %v714_v29  ;;  %v3167_v22 = vpop.permute.xlu0 %3166  ;;  %v704_v29 = vld [vmem:[%s5639_s2 + $0x148] sm:$0xff] }
  0xc4   :  { %1183 = vmatmul.mubr.f32.gmra.mxu1 %v4165_v1  ;;  %943 = vmatprep.mubr.f32.mxu0 %v5643_v3  ;;  %v3168_v53 = vunpack.i.l.bf16 %v3167_v22  ;;  %v614_v42 = vsel %vm597_vm1, %v581_v45, %v3163_v18  ;;  %v3169_v0 = vunpack.i.h.bf16 %v3167_v22  ;;  %v685_v18 = vld [vmem:[%s5639_s2 + $0xb0] sm:$0xff] }
  0xc5   :  { %1188 = vmatprep.mubr.f32.mxu1 %v5643_v3  ;;  %1336 = vmatpush1.msra.mxu0 %v739_v43  ;;  %v3172_v41 = vpop.permute.xlu1 %3171  ;;  %v677_v22 = vld [vmem:[%s5639_s2 + $0x70] sm:$0xff] }
  0xc6   :  { %1337 = vmatprep.subr.mxu0 %v731_v62  ;;  %1600 = vmatprep.subr.mxu1 %v706_v2  ;;  %v3200_v62 = vld [vmem:[%s5638_s0 + $0x88] sm:$0xff]  ;;  %v3173_v7 = vunpack.i.l.bf16 %v3172_v41  ;;  %v4321_v46 = vsel %vm630_vm2, %v614_v42, %v3168_v53  ;;  %v3203_v53 = vld [vmem:[%s5638_s0 + $0xa0] sm:$0xff] }
  0xc7   :  { %944 = vmatmul.mubr.f32.gmra.mxu0 %v4231_v6  ;;  %1601 = vmatpush1.msra.mxu1 %v705_v10  ;;  %v3177_v43 = vpop.permute.xlu0 %3176  ;;  %v582_v2 = vsel %vm564_vm0, %v3200_v62, %v3159_v8  ;;  %v703_v10 = vld [vmem:[%s5639_s2 + $0x140] sm:$0xff]  ;;  %v676_v42 = vld [vmem:[%s5639_s2 + $0x68] sm:$0xff] }
  0xc8   :  { %1189 = vmatmul.mubr.f32.gmra.mxu1 %v4187_v37  ;;  %949 = vmatprep.mubr.f32.mxu0 %v5643_v3  ;;  %v3178_v31 = vunpack.i.l.bf16 %v3177_v43 }
  0xc9   :  { %1194 = vmatprep.mubr.f32.mxu1 %v5643_v3  ;;  %1338 = vmatpush1.msra.mxu0 %v730_v28  ;;  %v615_v28 = vsel %vm597_vm1, %v582_v2, %v3164_v39 }
  0xca   :  { %1339 = vmatprep.subr.mxu0 %v722_v12  ;;  %1602 = vmatprep.subr.mxu1 %v697_v60  ;;  %v3182_v12 = vpop.permute.xlu1 %3181  ;;  %v3174_v60 = vunpack.i.h.bf16 %v3172_v41  ;;  %v4342_v44 = vsel %vm630_vm2, %v615_v28, %v3169_v0  ;;  %v806_v28 = vld [vmem:[%s5639_s2 + $0x478] sm:$0xff] }
  0xcb   :  { %950 = vmatmul.mubr.f32.gmra.mxu0 %v4253_v63  ;;  %1603 = vmatpush1.msra.mxu1 %v696_v4  ;;  %v583_v4 = vsel %vm564_vm0, %v3201_v30, %v3173_v7  ;;  %v3187_v38 = vpop.permute.xlu0 %3186  ;;  %v3183_v34 = vunpack.i.l.bf16 %v3182_v12  ;;  %v3184_v8 = vunpack.i.h.bf16 %v3182_v12 }
  0xcc   :  { %1195 = vmatmul.mubr.f32.gmra.mxu1 %v4209_v40  ;;  %955 = vmatprep.mubr.f32.mxu0 %v5643_v3 }
  0xcd   :  { %1200 = vmatprep.mubr.f32.mxu1 %v5643_v3  ;;  %1340 = vmatpush1.msra.mxu0 %v721_v36  ;;  %v3179_v36 = vunpack.i.h.bf16 %v3177_v43  ;;  %v668_v43 = vld [vmem:[%s5639_s2 + $0x28] sm:$0xff] }
  0xce   :  { %1341 = vmatprep.subr.mxu0 %v713_v14  ;;  %1604 = vmatprep.subr.mxu1 %v688_v47  ;;  %v616_v14 = vsel %vm597_vm1, %v583_v4, %v3178_v31  ;;  %v3202_v47 = vld [vmem:[%s5638_s0 + $0x98] sm:$0xff]  ;;  %v3192_v25 = vpop.permute.xlu1 %3191  ;;  %v3205_v4 = vld [vmem:[%s5638_s0 + $0xb0] sm:$0xff] }
  0xcf   :  { %956 = vmatmul.mubr.f32.gmra.mxu0 %v4275_v54  ;;  %1605 = vmatpush1.msra.mxu1 %v687_v17  ;;  %v584_v48 = vsel %vm564_vm0, %v3202_v47, %v3174_v60  ;;  %v3188_v17 = vunpack.i.l.bf16 %v3187_v38  ;;  %v4361_v45 = vsel %vm630_vm2, %v616_v14, %v3183_v34  ;;  %v3193_v41 = vunpack.i.l.bf16 %v3192_v25 }
  0xd0   :  { %1201 = vmatmul.mubr.f32.gmra.mxu1 %v4231_v6  ;;  %961 = vmatprep.mubr.f32.mxu0 %v5643_v3  ;;  %v3194_v7 = vunpack.i.h.bf16 %v3192_v25 }
  0xd1   :  { %1206 = vmatprep.mubr.f32.mxu1 %v5643_v3  ;;  %1342 = vmatpush1.msra.mxu0 %v712_v24  ;;  %v617_v24 = vsel %vm597_vm1, %v584_v48, %v3179_v36  ;;  %v3206_v36 = vld [vmem:[%s5638_s0 + $0xb8] sm:$0xff] }
  0xd2   :  { %1343 = vmatprep.subr.mxu0 %v704_v29  ;;  %1606 = vmatprep.subr.mxu1 %v679_v50  ;;  %v3197_v29 = vpop.permute.xlu0 %3196  ;;  %v3189_v50 = vunpack.i.h.bf16 %v3187_v38  ;;  %v257_v39 = vpop.permute.xlu1 %256  ;;  %v4379_v2 = vsel %vm630_vm2, %v617_v24, %v3184_v8  ;;  %v788_v8 = vld [vmem:[%s5639_s2 + $0x3e8] sm:$0xff]  ;;  %v779_v24 = vld [vmem:[%s5639_s2 + $0x3a0] sm:$0xff] }
  0xd3   :  { %962 = vmatmul.mubr.f32.gmra.mxu0 %v4297_v26  ;;  %1607 = vmatpush1.msra.mxu1 %v678_v35  ;;  %v585_v35 = vsel %vm564_vm0, %v3203_v53, %v3188_v17  ;;  %v3198_v62 = vunpack.i.l.bf16 %v3197_v29  ;;  %v3199_v31 = vunpack.i.h.bf16 %v3197_v29  ;;  %v761_v29 = vld [vmem:[%s5639_s2 + $0x310] sm:$0xff]  ;;  %v743_v53 = vld [vmem:[%s5639_s2 + $0x280] sm:$0xff] }
  0xd4   :  { %1207 = vmatmul.mubr.f32.gmra.mxu1 %v4253_v63  ;;  %967 = vmatprep.mubr.f32.mxu0 %v5643_v3 }
  0xd5   :  { %1212 = vmatprep.mubr.f32.mxu1 %v5643_v3  ;;  %1344 = vmatpush1.msra.mxu0 %v703_v10  ;;  %v618_v10 = vsel %vm597_vm1, %v585_v35, %v3193_v41  ;;  %v770_v41 = vld [vmem:[%s5639_s2 + $0x358] sm:$0xff] }
  0xd6   :  { %1345 = vmatprep.subr.mxu0 %v695_v5  ;;  %1608 = vmatprep.subr.mxu1 %v670_v16  ;;  %v385_v5 = vpop.permute.xlu0 %384  ;;  %v3204_v16 = vld [vmem:[%s5638_s0 + $0xa8] sm:$0xff]  ;;  %v4397_v12 = vsel %vm630_vm2, %v618_v10, %v3198_v62  ;;  %v513_v60 = vpop.permute.xlu1 %512  ;;  %v734_v35 = vld [vmem:[%s5639_s2 + $0x238] sm:$0xff]  ;;  %v2202_v62 = vld [vmem:[%s5640_s3 + $0x70] sm:$0xff] }
  0xd7   :  { %968 = vmatmul.mubr.f32.gmra.mxu0 %v4321_v46  ;;  %1609 = vmatpush1.msra.mxu1 %v669_v55  ;;  %v586_v0 = vsel %vm564_vm0, %v3204_v16, %v3189_v50  ;;  %v667_v55 = vld [vmem:[%s5639_s2 + $0x20] sm:$0xff]  ;;  %v752_v50 = vld [vmem:[%s5639_s2 + $0x2c8] sm:$0xff] }
  0xd8   :  { %1213 = vmatmul.mubr.f32.gmra.mxu1 %v4275_v54  ;;  %973 = vmatprep.mubr.f32.mxu0 %v5643_v3  ;;  %v619_v30 = vsel %vm597_vm1, %v586_v0, %v3194_v7  ;;  %v2201_v7 = vld [vmem:[%s5640_s3 + $0x68] sm:$0xff]  ;;  %v707_v10 = vld [vmem:[%s5639_s2 + $0x160] sm:$0xff]  ;;  %v689_v0 = vld [vmem:[%s5639_s2 + $0xd0] sm:$0xff] }
  0xd9   :  { %1218 = vmatprep.mubr.f32.mxu1 %v5643_v3  ;;  %1346 = vmatpush1.msra.mxu0 %v694_v33  ;;  %v587_v33 = vsel %vm564_vm0, %v3205_v4, %v257_v39  ;;  %v725_v39 = vld [vmem:[%s5639_s2 + $0x1f0] sm:$0xff]  ;;  %v2200_v16 = vld [vmem:[%s5640_s3 + $0x60] sm:$0xff] }
  0xda   :  { %1347 = vmatprep.subr.mxu0 %v686_v11  ;;  %2252 = vmatprep.subr.mxu1 %v5643_v3  ;;  %v259_v38 = vpop.permute.xlu0 %258  ;;  %v4409_v11 = vsel %vm630_vm2, %v619_v30, %v3199_v31  ;;  %v620_v34 = vsel %vm597_vm1, %v587_v33, %v385_v5  ;;  %v387_v47 = vpop.permute.xlu1 %386  ;;  %v698_v5 = vld [vmem:[%s5639_s2 + $0x118] sm:$0xff]  ;;  %v2198_v31 = vld [vmem:[%s5640_s3 + $0x50] sm:$0xff]  ;;  %v2197_v30 = vld [vmem:[%s5640_s3 + $0x48] sm:$0xff] }
  0xdb   :  { %974 = vmatmul.mubr.f32.gmra.mxu0 %v4342_v44  ;;  %v588_v14 = vsel %vm564_vm0, %v3206_v36, %v259_v38  ;;  %v4419_v48 = vsel %vm630_vm2, %v620_v34, %v513_v60  ;;  %v671_v60 = vld [vmem:[%s5639_s2 + $0x40] sm:$0xff]  ;;  %v2195_v33 = vld [vmem:[%s5640_s3 + $0x38] sm:$0xff]  ;;  %v2194_v38 = vld [vmem:[%s5640_s3 + $0x30] sm:$0xff] }
  0xdc   :  { %1219 = vmatmul.mubr.f32.gmra.mxu1 %v4297_v26  ;;  %979 = vmatprep.mubr.f32.mxu0 %v5643_v3  ;;  %v621_v17 = vsel %vm597_vm1, %v588_v14, %v387_v47  ;;  %v2196_v4 = vld [vmem:[%s5640_s3 + $0x40] sm:$0xff]  ;;  %v2193_v34 = vld [vmem:[%s5640_s3 + $0x28] sm:$0xff] }
  0xdd   :  { %1224 = vmatprep.mubr.f32.mxu1 %v5643_v3  ;;  %1348 = vmatpush1.msra.mxu0 %v685_v18  ;;  %v2192_v47 = vld [vmem:[%s5640_s3 + $0x20] sm:$0xff] }
  0xde   :  { %1349 = vmatprep.subr.mxu0 %v677_v22  ;;  %v515_v25 = vpop.permute.xlu0 %514  ;;  %v797_v22 = vld [vmem:[%s5639_s2 + $0x430] sm:$0xff] }
  0xdf   :  { %980 = vmatmul.mubr.f32.gmra.mxu0 %v4361_v45  ;;  %v4428_v18 = vsel %vm630_vm2, %v621_v17, %v515_v25  ;;  %v2191_v25 = vld [vmem:[%s5640_s3 + $0x18] sm:$0xff] }
  0xe0   :  { %1225 = vmatmul.mubr.f32.gmra.mxu1 %v4321_v46  ;;  %985 = vmatprep.mubr.f32.mxu0 %v5643_v3 }
  0xe1   :  { %1230 = vmatprep.mubr.f32.mxu1 %v5643_v3  ;;  %1350 = vmatpush1.msra.mxu0 %v676_v42  ;;  %v716_v42 = vld [vmem:[%s5639_s2 + $0x1a8] sm:$0xff] }
  0xe2   :  { %1351 = vmatprep.subr.mxu0 %v668_v43  ;;  %v2203_v43 = vld [vmem:[%s5640_s3 + $0x78] sm:$0xff] }
  0xe3   :  { %986 = vmatmul.mubr.f32.gmra.mxu0 %v4379_v2 }
  0xe4   :  { %1231 = vmatmul.mubr.f32.gmra.mxu1 %v4342_v44  ;;  %991 = vmatprep.mubr.f32.mxu0 %v5643_v3 }
  0xe5   :  { %1236 = vmatprep.mubr.f32.mxu1 %v5643_v3  ;;  %1352 = vmatpush1.msra.mxu0 %v667_v55  ;;  %v2199_v55 = vld [vmem:[%s5640_s3 + $0x58] sm:$0xff] }
  0xe6   :  { %2859 = vmatprep.subr.mxu0 %v806_v28 }
  0xe7   :  { %992 = vmatmul.mubr.f32.gmra.mxu0 %v4397_v12 }
  0xe8   :  { %1237 = vmatmul.mubr.f32.gmra.mxu1 %v4361_v45  ;;  %997 = vmatprep.mubr.f32.mxu0 %v5643_v3 }
  0xe9   :  { %1242 = vmatprep.mubr.f32.mxu1 %v5643_v3 }
  0xeb   :  { %998 = vmatmul.mubr.f32.gmra.mxu0 %v4409_v11 }
  0xec   :  { %1243 = vmatmul.mubr.f32.gmra.mxu1 %v4379_v2  ;;  %1003 = vmatprep.mubr.f32.mxu0 %v5643_v3 }
  0xed   :  { %1248 = vmatprep.mubr.f32.mxu1 %v5643_v3 }
  0xef   :  { %1004 = vmatmul.mubr.f32.gmra.mxu0 %v4419_v48 }
  0xf0   :  { %1249 = vmatmul.mubr.f32.gmra.mxu1 %v4397_v12  ;;  %1009 = vmatprep.mubr.f32.mxu0 %v5643_v3 }
  0xf1   :  { %1254 = vmatprep.mubr.f32.mxu1 %v5643_v3 }
  0xf3   :  { %1010 = vmatmul.mubr.f32.gmra.mxu0 %v4428_v18 }
  0xf4   :  { %1255 = vmatmul.mubr.f32.gmra.mxu1 %v4409_v11  ;;  %1385 = vmatprep.mubr.f32.mxu0 %v5643_v3 }
  0xf5   :  { %1260 = vmatprep.mubr.f32.mxu1 %v5643_v3 }
  0xf7   :  { %1386 = vmatmul.mubr.f32.vlgmr.msra.gmra.mxu0 %v3967_v57 }
  0xf8   :  { %1261 = vmatmul.mubr.f32.gmra.mxu1 %v4419_v48  ;;  %1391 = vmatprep.mubr.f32.mxu0 %v5643_v3 }
  0xf9   :  { %1266 = vmatprep.mubr.f32.mxu1 %v5643_v3  ;;  %2860 = vmatpush3.msra.mxu0 %v806_v28  ;;  %v680_v28 = vld [vmem:[%s5639_s2 + $0x88] sm:$0xff] }
  0xfa   :  { %2861 = vmatprep.subr.mxu0 %v797_v22 }
  0xfb   :  { %1392 = vmatmul.mubr.f32.gmra.mxu0 %v3988_v52 }
  0xfc   :  { %1267 = vmatmul.mubr.f32.gmra.mxu1 %v4428_v18  ;;  %1397 = vmatprep.mubr.f32.mxu0 %v5643_v3 }
  0xfd   :  { %1272 = vmatprep.mubr.f32.mxu1 %v5643_v3  ;;  %2862 = vmatpush3.msra.mxu0 %v797_v22 }
  0xfe   :  { %2863 = vmatprep.subr.mxu0 %v788_v8 }
  0xff   :  { %1398 = vmatmul.mubr.f32.gmra.mxu0 %v4013_v27 }
 0x100   :  { %1273 = vmatmul.mubr.f32.gmra.mxu1 %v3833_v51  ;;  %1403 = vmatprep.mubr.f32.mxu0 %v5643_v3 }
 0x101   :  { %1278 = vmatprep.mubr.f32.mxu1 %v5643_v3  ;;  %2864 = vmatpush3.msra.mxu0 %v788_v8  ;;  %v2190_v8 = vld [vmem:[%s5640_s3 + $0x10] sm:$0xff] }
 0x102   :  { %2865 = vmatprep.subr.mxu0 %v779_v24 }
 0x103   :  { %1404 = vmatmul.mubr.f32.gmra.mxu0 %v4032_v58 }
 0x104   :  { %1279 = vmatmul.mubr.f32.gmra.mxu1 %v3853_v59  ;;  %1409 = vmatprep.mubr.f32.mxu0 %v5643_v3 }
 0x105   :  { %1284 = vmatprep.mubr.f32.mxu1 %v5643_v3  ;;  %2866 = vmatpush3.msra.mxu0 %v779_v24 }
 0x106   :  { %2867 = vmatprep.subr.mxu0 %v770_v41 }
 0x107   :  { %1410 = vmatmul.mubr.f32.gmra.mxu0 %v4055_v61 }
 0x108   :  { %1285 = vmatmul.mubr.f32.gmra.mxu1 %v3875_v13  ;;  %1415 = vmatprep.mubr.f32.mxu0 %v5643_v3 }
 0x109   :  { %1290 = vmatprep.mubr.f32.mxu1 %v5643_v3  ;;  %2868 = vmatpush3.msra.mxu0 %v770_v41 }
 0x10a   :  { %2869 = vmatprep.subr.mxu0 %v761_v29 }
 0x10b   :  { %1416 = vmatmul.mubr.f32.gmra.mxu0 %v4077_v21 }
 0x10c   :  { %1291 = vmatmul.mubr.f32.gmra.mxu1 %v3898_v19  ;;  %1421 = vmatprep.mubr.f32.mxu0 %v5643_v3 }
 0x10d   :  { %1296 = vmatprep.mubr.f32.mxu1 %v5643_v3  ;;  %2870 = vmatpush3.msra.mxu0 %v761_v29  ;;  %v2189_v29 = vld [vmem:[%s5640_s3 + $0x8] sm:$0xff] }
 0x10e   :  { %2871 = vmatprep.subr.mxu0 %v752_v50 }
 0x10f   :  { %1422 = vmatmul.mubr.f32.gmra.mxu0 %v4099_v49 }
 0x110   :  { %1297 = vmatmul.mubr.f32.gmra.mxu1 %v3921_v20  ;;  %1427 = vmatprep.mubr.f32.mxu0 %v5643_v3 }
 0x111   :  { %1302 = vmatprep.mubr.f32.mxu1 %v5643_v3  ;;  %2872 = vmatpush3.msra.mxu0 %v752_v50 }
 0x112   :  { %2873 = vmatprep.subr.mxu0 %v743_v53 }
 0x113   :  { %1428 = vmatmul.mubr.f32.gmra.mxu0 %v4121_v23 }
 0x114   :  { %1303 = vmatmul.mubr.f32.gmra.mxu1 %v3948_v15  ;;  %1433 = vmatprep.mubr.f32.mxu0 %v5643_v3 }
 0x115   :  { %1308 = vmatprep.mubr.f32.mxu1 %v5643_v3  ;;  %2874 = vmatpush3.msra.mxu0 %v743_v53  ;;  %v2188_v53 = vld [vmem:[%s5640_s3] sm:$0xff] }
 0x116   :  { %2875 = vmatprep.subr.mxu0 %v734_v35 }
 0x117   :  { %1434 = vmatmul.mubr.f32.gmra.mxu0 %v4143_v9 }
 0x118   :  { %1309 = vmatmul.mubr.f32.gmra.mxu1 %v3975_v32  ;;  %1439 = vmatprep.mubr.f32.mxu0 %v5643_v3 }
 0x119   :  { %1314 = vmatprep.mubr.f32.mxu1 %v5643_v3  ;;  %2876 = vmatpush3.msra.mxu0 %v734_v35 }
 0x11a   :  { %2877 = vmatprep.subr.mxu0 %v725_v39 }
 0x11b   :  { %1440 = vmatmul.mubr.f32.gmra.mxu0 %v4165_v1 }
 0x11c   :  { %1315 = vmatmul.mubr.f32.gmra.mxu1 %v4003_v56  ;;  %1445 = vmatprep.mubr.f32.mxu0 %v5643_v3 }
 0x11d   :  { %1642 = vmatprep.mubr.f32.mxu1 %v5643_v3  ;;  %2878 = vmatpush3.msra.mxu0 %v725_v39  ;;  %v2219_v39 = vld [vmem:[%s5640_s3 + $0xf8] sm:$0xff] }
 0x11e   :  { %2879 = vmatprep.subr.mxu0 %v716_v42 }
 0x11f   :  { %1446 = vmatmul.mubr.f32.gmra.mxu0 %v4187_v37 }
 0x120   :  { %1643 = vmatmul.mubr.f32.vlgmr.msra.gmra.mxu1 %v3967_v57  ;;  %1451 = vmatprep.mubr.f32.mxu0 %v5643_v3 }
 0x121   :  { %1648 = vmatprep.mubr.f32.mxu1 %v5643_v3  ;;  %2253 = vmatpush1.msra.mxu1 %v2203_v43 }
 0x122   :  { %2254 = vmatprep.subr.mxu1 %v5643_v3  ;;  %2880 = vmatpush3.msra.mxu0 %v716_v42 }
 0x123   :  { %1452 = vmatmul.mubr.f32.gmra.mxu0 %v4209_v40  ;;  %2255 = vmatpush1.msra.mxu1 %v2202_v62  ;;  %v2218_v62 = vld [vmem:[%s5640_s3 + $0xf0] sm:$0xff] }
 0x124   :  { %1649 = vmatmul.mubr.f32.gmra.mxu1 %v3988_v52  ;;  %1457 = vmatprep.mubr.f32.mxu0 %v5643_v3 }
 0x125   :  { %1654 = vmatprep.mubr.f32.mxu1 %v5643_v3  ;;  %2256 = vmatprep.subr.mxu1 %v5643_v3 }
 0x126   :  { %2257 = vmatpush1.msra.mxu1 %v2201_v7  ;;  %2881 = vmatprep.subr.mxu0 %v707_v10 }
 0x127   :  { %1458 = vmatmul.mubr.f32.gmra.mxu0 %v4231_v6  ;;  %2258 = vmatprep.subr.mxu1 %v5643_v3 }
 0x128   :  { %1655 = vmatmul.mubr.f32.gmra.mxu1 %v4013_v27  ;;  %1463 = vmatprep.mubr.f32.mxu0 %v5643_v3 }
 0x129   :  { %1660 = vmatprep.mubr.f32.mxu1 %v5643_v3  ;;  %2882 = vmatpush3.msra.mxu0 %v707_v10  ;;  %v2217_v10 = vld [vmem:[%s5640_s3 + $0xe8] sm:$0xff] }
 0x12a   :  { %2883 = vmatprep.subr.mxu0 %v698_v5  ;;  %2259 = vmatpush1.msra.mxu1 %v2200_v16 }
 0x12b   :  { %1464 = vmatmul.mubr.f32.gmra.mxu0 %v4253_v63  ;;  %2260 = vmatprep.subr.mxu1 %v5643_v3 }
 0x12c   :  { %1661 = vmatmul.mubr.f32.gmra.mxu1 %v4032_v58  ;;  %1469 = vmatprep.mubr.f32.mxu0 %v5643_v3 }
 0x12d   :  { %1666 = vmatprep.mubr.f32.mxu1 %v5643_v3  ;;  %2884 = vmatpush3.msra.mxu0 %v698_v5 }
 0x12e   :  { %2885 = vmatprep.subr.mxu0 %v689_v0  ;;  %2261 = vmatpush1.msra.mxu1 %v2199_v55 }
 0x12f   :  { %1470 = vmatmul.mubr.f32.gmra.mxu0 %v4275_v54  ;;  %2262 = vmatprep.subr.mxu1 %v5643_v3 }
 0x130   :  { %1667 = vmatmul.mubr.f32.gmra.mxu1 %v4055_v61  ;;  %1475 = vmatprep.mubr.f32.mxu0 %v5643_v3 }
 0x131   :  { %1672 = vmatprep.mubr.f32.mxu1 %v5643_v3  ;;  %2886 = vmatpush3.msra.mxu0 %v689_v0  ;;  %v2216_v0 = vld [vmem:[%s5640_s3 + $0xe0] sm:$0xff] }
 0x132   :  { %2887 = vmatprep.subr.mxu0 %v680_v28  ;;  %2263 = vmatpush1.msra.mxu1 %v2198_v31 }
 0x133   :  { %1476 = vmatmul.mubr.f32.gmra.mxu0 %v4297_v26  ;;  %2264 = vmatprep.subr.mxu1 %v5643_v3 }
 0x134   :  { %1673 = vmatmul.mubr.f32.gmra.mxu1 %v4077_v21  ;;  %1481 = vmatprep.mubr.f32.mxu0 %v5643_v3 }
 0x135   :  { %1678 = vmatprep.mubr.f32.mxu1 %v5643_v3  ;;  %2888 = vmatpush3.msra.mxu0 %v680_v28 }
 0x136   :  { %2889 = vmatprep.subr.mxu0 %v671_v60  ;;  %2265 = vmatpush1.msra.mxu1 %v2197_v30 }
 0x137   :  { %1482 = vmatmul.mubr.f32.gmra.mxu0 %v4321_v46  ;;  %2266 = vmatprep.subr.mxu1 %v5643_v3 }
 0x138   :  { %1679 = vmatmul.mubr.f32.gmra.mxu1 %v4099_v49  ;;  %1487 = vmatprep.mubr.f32.mxu0 %v5643_v3 }
 0x139   :  { %1684 = vmatprep.mubr.f32.mxu1 %v5643_v3  ;;  %2890 = vmatpush3.msra.mxu0 %v671_v60  ;;  %v2215_v60 = vld [vmem:[%s5640_s3 + $0xd8] sm:$0xff] }
 0x13a   :  { %2267 = vmatpush1.msra.mxu1 %v2196_v4  ;;  %2477 = vmatprep.subr.mxu0 %v5643_v3 }
 0x13b   :  { %1488 = vmatmul.mubr.f32.gmra.mxu0 %v4342_v44  ;;  %2268 = vmatprep.subr.mxu1 %v5643_v3 }
 0x13c   :  { %1685 = vmatmul.mubr.f32.gmra.mxu1 %v4121_v23  ;;  %1493 = vmatprep.mubr.f32.mxu0 %v5643_v3 }
 0x13d   :  { %1690 = vmatprep.mubr.f32.mxu1 %v5643_v3  ;;  %2269 = vmatpush1.msra.mxu1 %v2195_v33  ;;  %v2214_v33 = vld [vmem:[%s5640_s3 + $0xd0] sm:$0xff] }
 0x13e   :  { %2270 = vmatprep.subr.mxu1 %v5643_v3 }
 0x13f   :  { %1494 = vmatmul.mubr.f32.gmra.mxu0 %v4361_v45  ;;  %2271 = vmatpush1.msra.mxu1 %v2194_v38 }
 0x140   :  { %v4597_v36 = vpop.f32.mrf.mxu1  ;;  %1691 = vmatmul.mubr.f32.gmra.mxu1 %v4143_v9  ;;  %1499 = vmatprep.mubr.f32.mxu0 %v5643_v3 }
 0x141   :  { %5645 = vst [vmem:[#allocation2_spill] sm:$0xff] %v4597_v36  ;;  %1696 = vmatprep.mubr.f32.mxu1 %v5643_v3  ;;  %2272 = vmatprep.subr.mxu1 %v5643_v3 }
 0x142   :  { %v4603_v14 = vpop.f32.mrf.mxu1  ;;  %2273 = vmatpush1.msra.mxu1 %v2193_v34 }
 0x143   :  { %5646 = vst [vmem:[#allocation3_spill] sm:$0xff] %v4603_v14  ;;  %1500 = vmatmul.mubr.f32.gmra.mxu0 %v4379_v2  ;;  %2274 = vmatprep.subr.mxu1 %v5643_v3  ;;  %v2235_v14 = vld [vmem:[%s5640_s3 + $0x178] sm:$0xff] }
 0x144   :  { %v4610_v17 = vpop.f32.mrf.mxu1  ;;  %1697 = vmatmul.mubr.f32.gmra.mxu1 %v4165_v1  ;;  %1505 = vmatprep.mubr.f32.mxu0 %v5643_v3 }
 0x145   :  { %5647 = vst [vmem:[#allocation4_spill] sm:$0xff] %v4610_v17  ;;  %1702 = vmatprep.mubr.f32.mxu1 %v5643_v3  ;;  %2275 = vmatpush1.msra.mxu1 %v2192_v47 }
 0x146   :  { %v4618_v22 = vpop.f32.mrf.mxu1  ;;  %2276 = vmatprep.subr.mxu1 %v5643_v3 }
 0x147   :  { %5648 = vst [vmem:[#allocation5_spill] sm:$0xff] %v4618_v22  ;;  %1506 = vmatmul.mubr.f32.gmra.mxu0 %v4397_v12  ;;  %2277 = vmatpush1.msra.mxu1 %v2191_v25  ;;  %v2213_v25 = vld [vmem:[%s5640_s3 + $0xc8] sm:$0xff] }
 0x148   :  { %v4625_v24 = vpop.f32.mrf.mxu1  ;;  %1703 = vmatmul.mubr.f32.gmra.mxu1 %v4187_v37  ;;  %1511 = vmatprep.mubr.f32.mxu0 %v5643_v3 }
 0x149   :  { %5649 = vst [vmem:[#allocation6_spill] sm:$0xff] %v4625_v24  ;;  %1708 = vmatprep.mubr.f32.mxu1 %v5643_v3  ;;  %2278 = vmatprep.subr.mxu1 %v5643_v3 }
 0x14a   :  { %v4631_v41 = vpop.f32.mrf.mxu1  ;;  %2279 = vmatpush1.msra.mxu1 %v2190_v8 }
 0x14b   :  { %5650 = vst [vmem:[#allocation7_spill] sm:$0xff] %v4631_v41  ;;  %1512 = vmatmul.mubr.f32.gmra.mxu0 %v4409_v11  ;;  %2280 = vmatprep.subr.mxu1 %v5643_v3 }
 0x14c   :  { %v4638_v50 = vpop.f32.mrf.mxu1  ;;  %1709 = vmatmul.mubr.f32.gmra.mxu1 %v4209_v40  ;;  %1517 = vmatprep.mubr.f32.mxu0 %v5643_v3 }
 0x14d   :  { %5651 = vst [vmem:[#allocation8_spill] sm:$0xff] %v4638_v50  ;;  %1714 = vmatprep.mubr.f32.mxu1 %v5643_v3  ;;  %2281 = vmatpush1.msra.mxu1 %v2189_v29  ;;  %v2207_v50 = vld [vmem:[%s5640_s3 + $0x98] sm:$0xff] }
 0x14e   :  { %v4646_v35 = vpop.f32.mrf.mxu1  ;;  %2282 = vmatprep.subr.mxu1 %v5643_v3 }
 0x14f   :  { %5652 = vst [vmem:[#allocation9_spill] sm:$0xff] %v4646_v35  ;;  %1518 = vmatmul.mubr.f32.gmra.mxu0 %v4419_v48  ;;  %2283 = vmatpush1.msra.mxu1 %v2188_v53 }
 0x150   :  { %v4653_v42 = vpop.f32.mrf.mxu1  ;;  %1715 = vmatmul.mubr.f32.gmra.mxu1 %v4231_v6  ;;  %1523 = vmatprep.mubr.f32.mxu0 %v5643_v3 }
 0x151   :  { %5653 = vst [vmem:[#allocation10_spill] sm:$0xff] %v4653_v42  ;;  %1720 = vmatprep.mubr.f32.mxu1 %v5643_v3  ;;  %2284 = vmatprep.subr.mxu1 %v5643_v3 }
 0x152   :  { %v4659_v43 = vpop.f32.mrf.mxu1  ;;  %2285 = vmatpush2.msra.mxu1 %v2219_v39  ;;  %v2212_v39 = vld [vmem:[%s5640_s3 + $0xc0] sm:$0xff] }
 0x153   :  { %5654 = vst [vmem:[#allocation11_spill] sm:$0xff] %v4659_v43  ;;  %1524 = vmatmul.mubr.f32.gmra.mxu0 %v4428_v18  ;;  %2286 = vmatprep.subr.mxu1 %v5643_v3 }
 0x154   :  { %v4666_v7 = vpop.f32.mrf.mxu1  ;;  %1721 = vmatmul.mubr.f32.gmra.mxu1 %v4253_v63  ;;  %1529 = vmatprep.mubr.f32.mxu0 %v5643_v3 }
 0x155   :  { %5655 = vst [vmem:[#allocation12_spill] sm:$0xff] %v4666_v7  ;;  %1726 = vmatprep.mubr.f32.mxu1 %v5643_v3  ;;  %2287 = vmatpush2.msra.mxu1 %v2218_v62 }
 0x156   :  { %v4674_v5 = vpop.f32.mrf.mxu1  ;;  %2288 = vmatprep.subr.mxu1 %v5643_v3 }
 0x157   :  { %5656 = vst [vmem:[#allocation13_spill] sm:$0xff] %v4674_v5  ;;  %v4677_v16 = vpop.f32.mrf.mxu0  ;;  %1530 = vmatmul.mubr.f32.gmra.mxu0 %v3833_v51  ;;  %2289 = vmatpush2.msra.mxu1 %v2217_v10 }
 0x158   :  { %v4683_v55 = vpop.f32.mrf.mxu1  ;;  %1727 = vmatmul.mubr.f32.gmra.mxu1 %v4275_v54  ;;  %1535 = vmatprep.mubr.f32.mxu0 %v5643_v3 }
 0x159   :  { %5657 = vst [vmem:[#allocation14_spill] sm:$0xff] %v4683_v55  ;;  %v4687_v28 = vpop.f32.mrf.mxu0  ;;  %1732 = vmatprep.mubr.f32.mxu1 %v5643_v3  ;;  %2290 = vmatprep.subr.mxu1 %v5643_v3 }
 0x15a   :  { %v4691_v31 = vpop.f32.mrf.mxu1  ;;  %2291 = vmatpush2.msra.mxu1 %v2216_v0  ;;  %v2211_v0 = vld [vmem:[%s5640_s3 + $0xb8] sm:$0xff] }
 0x15b   :  { %5658 = vst [vmem:[#allocation15_spill] sm:$0xff] %v4691_v31  ;;  %v4696_v30 = vpop.f32.mrf.mxu0  ;;  %1536 = vmatmul.mubr.f32.gmra.mxu0 %v3853_v59  ;;  %2292 = vmatprep.subr.mxu1 %v5643_v3 }
 0x15c   :  { %v4700_v4 = vpop.f32.mrf.mxu1  ;;  %1733 = vmatmul.mubr.f32.gmra.mxu1 %v4297_v26  ;;  %1541 = vmatprep.mubr.f32.mxu0 %v5643_v3 }
 0x15d   :  { %5659 = vst [vmem:[#allocation16_spill] sm:$0xff] %v4700_v4  ;;  %v4707_v38 = vpop.f32.mrf.mxu0  ;;  %1738 = vmatprep.mubr.f32.mxu1 %v5643_v3  ;;  %2293 = vmatpush2.msra.mxu1 %v2215_v60  ;;  %v2210_v4 = vld [vmem:[%s5640_s3 + $0xb0] sm:$0xff] }
 0x15e   :  { %v4710_v34 = vpop.f32.mrf.mxu1  ;;  %2294 = vmatprep.subr.mxu1 %v5643_v3 }
 0x15f   :  { %5660 = vst [vmem:[#allocation17_spill] sm:$0xff] %v4710_v34  ;;  %v4713_v47 = vpop.f32.mrf.mxu0  ;;  %1542 = vmatmul.mubr.f32.gmra.mxu0 %v3875_v13  ;;  %2295 = vmatpush2.msra.mxu1 %v2214_v33 }
 0x160   :  { %v4719_v8 = vpop.f32.mrf.mxu1  ;;  %1739 = vmatmul.mubr.f32.gmra.mxu1 %v4321_v46  ;;  %1547 = vmatprep.mubr.f32.mxu0 %v5643_v3 }
 0x161   :  { %v4723_v29 = vpop.f32.mrf.mxu0  ;;  %1744 = vmatprep.mubr.f32.mxu1 %v5643_v3  ;;  %2296 = vmatprep.subr.mxu1 %v5643_v3 }
 0x162   :  { %v4727_v53 = vpop.f32.mrf.mxu1  ;;  %2297 = vmatpush2.msra.mxu1 %v2213_v25 }
 0x163   :  { %v4732_v62 = vpop.f32.mrf.mxu0  ;;  %1548 = vmatmul.mubr.f32.gmra.mxu0 %v3898_v19  ;;  %2298 = vmatprep.subr.mxu1 %v5643_v3 }
 0x164   :  { %v4736_v10 = vpop.f32.mrf.mxu1  ;;  %1745 = vmatmul.mubr.f32.gmra.mxu1 %v4342_v44  ;;  %1553 = vmatprep.mubr.f32.mxu0 %v5643_v3 }
 0x165   :  { %v4743_v60 = vpop.f32.mrf.mxu0  ;;  %1750 = vmatprep.mubr.f32.mxu1 %v5643_v3  ;;  %2299 = vmatpush2.msra.mxu1 %v2212_v39 }
 0x166   :  { %v4746_v33 = vpop.f32.mrf.mxu1  ;;  %2300 = vmatprep.subr.mxu1 %v5643_v3 }
 0x167   :  { %v4749_v25 = vpop.f32.mrf.mxu0  ;;  %1554 = vmatmul.mubr.f32.gmra.mxu0 %v3921_v20  ;;  %2301 = vmatpush2.msra.mxu1 %v2211_v0  ;;  %v2209_v0 = vld [vmem:[%s5640_s3 + $0xa8] sm:$0xff] }
 0x168   :  { %v4755_v34 = vpop.f32.mrf.mxu1  ;;  %1751 = vmatmul.mubr.f32.gmra.mxu1 %v4361_v45  ;;  %1559 = vmatprep.mubr.f32.mxu0 %v5643_v3 }
 0x169   :  { %v4759_v39 = vpop.f32.mrf.mxu0  ;;  %1756 = vmatprep.mubr.f32.mxu1 %v5643_v3  ;;  %2302 = vmatprep.subr.mxu1 %v5643_v3 }
 0x16a   :  { %v4763_v55 = vpop.f32.mrf.mxu1  ;;  %2303 = vmatpush2.msra.mxu1 %v2210_v4  ;;  %v2208_v4 = vld [vmem:[%s5640_s3 + $0xa0] sm:$0xff] }
 0x16b   :  { %v4768_v31 = vpop.f32.mrf.mxu0  ;;  %1560 = vmatmul.mubr.f32.gmra.mxu0 %v3948_v15  ;;  %2304 = vmatprep.subr.mxu1 %v5643_v3 }
 0x16c   :  { %v4772_v7 = vpop.f32.mrf.mxu1  ;;  %1757 = vmatmul.mubr.f32.gmra.mxu1 %v4379_v2  ;;  %1565 = vmatprep.mubr.f32.mxu0 %v5643_v3 }
 0x16d   :  { %v4779_v5 = vpop.f32.mrf.mxu0  ;;  %1762 = vmatprep.mubr.f32.mxu1 %v5643_v3  ;;  %2305 = vmatpush2.msra.mxu1 %v2209_v0 }
 0x16e   :  { %v4782_v42 = vpop.f32.mrf.mxu1  ;;  %2306 = vmatprep.subr.mxu1 %v5643_v3 }
 0x16f   :  { %v4785_v43 = vpop.f32.mrf.mxu0  ;;  %1566 = vmatmul.mubr.f32.gmra.mxu0 %v3975_v32  ;;  %2307 = vmatpush2.msra.mxu1 %v2208_v4  ;;  %v2206_v4 = vld [vmem:[%s5640_s3 + $0x90] sm:$0xff] }
 0x170   :  { %v4791_v35 = vpop.f32.mrf.mxu1  ;;  %1763 = vmatmul.mubr.f32.gmra.mxu1 %v4397_v12  ;;  %1571 = vmatprep.mubr.f32.mxu0 %v5643_v3 }
 0x171   :  { %5661 = vst [vmem:[#allocation18_spill] sm:$0xff] %v4791_v35  ;;  %v4795_v0 = vpop.f32.mrf.mxu0  ;;  %1768 = vmatprep.mubr.f32.mxu1 %v5643_v3  ;;  %2308 = vmatprep.subr.mxu1 %v5643_v3 }
 0x172   :  { %v4799_v24 = vpop.f32.mrf.mxu1  ;;  %2309 = vmatpush2.msra.mxu1 %v2207_v50  ;;  %v2205_v50 = vld [vmem:[%s5640_s3 + $0x88] sm:$0xff] }
 0x173   :  { %v4804_v41 = vpop.f32.mrf.mxu0  ;;  %1572 = vmatmul.mubr.f32.gmra.mxu0 %v4003_v56  ;;  %2310 = vmatprep.subr.mxu1 %v5643_v3 }
 0x174   :  { %v4808_v17 = vpop.f32.mrf.mxu1  ;;  %1769 = vmatmul.mubr.f32.gmra.mxu1 %v4409_v11  ;;  %2891 = vmatprep.mubr.f32.mxu0 %v3967_v57 }
 0x175   :  { %5662 = vst [vmem:[#allocation19_spill] sm:$0xff] %v4808_v17  ;;  %v4815_v22 = vpop.f32.mrf.mxu0  ;;  %1774 = vmatprep.mubr.f32.mxu1 %v5643_v3  ;;  %2311 = vmatpush2.msra.mxu1 %v2206_v4  ;;  %v2204_v4 = vld [vmem:[%s5640_s3 + $0x80] sm:$0xff] }
 0x176   :  { %v4818_v36 = vpop.f32.mrf.mxu1  ;;  %2312 = vmatprep.subr.mxu1 %v5643_v3 }
 0x177   :  { %5663 = vst [vmem:[#allocation20_spill] sm:$0xff] %v4818_v36  ;;  %v4824_v17 = vpop.f32.mrf.mxu0  ;;  %2892 = vmatmul.mubr.f32.vlgmr.msra.gmra.mxu0 %v3988_v52  ;;  %2313 = vmatpush2.msra.mxu1 %v2205_v50  ;;  %v2234_v52 = vld [vmem:[%s5640_s3 + $0x170] sm:$0xff] }
 0x178   :  { %v4827_v57 = vpop.f32.mrf.mxu1  ;;  %1775 = vmatmul.mubr.f32.gmra.mxu1 %v4419_v48  ;;  %2894 = vmatprep.mubr.f32.mxu0 %v4013_v27 }
 0x179   :  { %5664 = vst [vmem:[#allocation21_spill] sm:$0xff] %v4827_v57  ;;  %v4834_v36 = vpop.f32.mrf.mxu0  ;;  %1780 = vmatprep.mubr.f32.mxu1 %v5643_v3  ;;  %2478 = vmatpush1.msra.mxu0 %v2235_v14 }
 0x17a   :  { %v4837_v35 = vpop.f32.mrf.mxu1  ;;  %2479 = vmatprep.subr.mxu0 %v5643_v3  ;;  %2314 = vmatprep.subr.mxu1 %v5643_v3 }
 0x17b   :  { %v4844_v27 = vpop.f32.mrf.mxu0  ;;  %2895 = vmatmul.mubr.f32.gmra.mxu0 %v4032_v58  ;;  %2315 = vmatpush2.msra.mxu1 %v2204_v4  ;;  %v2233_v58 = vld [vmem:[%s5640_s3 + $0x168] sm:$0xff] }
 0x17c   :  { %v4847_v50 = vpop.f32.mrf.mxu1  ;;  %1781 = vmatmul.mubr.f32.gmra.mxu1 %v4428_v18  ;;  %2897 = vmatprep.mubr.f32.mxu0 %v4055_v61 }
 0x17d   :  { %5665 = vst [vmem:[#allocation22_spill] sm:$0xff] %v4847_v50  ;;  %v4851_v14 = vpop.f32.mrf.mxu0  ;;  %1786 = vmatprep.mubr.f32.mxu1 %v5643_v3  ;;  %2480 = vmatpush1.msra.mxu0 %v2234_v52 }
 0x17e   :  { %v4854_v57 = vpop.f32.mrf.mxu1  ;;  %2481 = vmatprep.subr.mxu0 %v5643_v3 }
 0x17f   :  { %5666 = vst [vmem:[#allocation23_spill] sm:$0xff] %v4854_v57  ;;  %v4860_v4 = vpop.f32.mrf.mxu0  ;;  %2898 = vmatmul.mubr.f32.gmra.mxu0 %v4077_v21  ;;  %v2232_v57 = vld [vmem:[%s5640_s3 + $0x160] sm:$0xff] }
 0x180   :  { %v4863_v50 = vpop.f32.mrf.mxu1  ;;  %1787 = vmatmul.mubr.f32.gmra.mxu1 %v3833_v51  ;;  %2900 = vmatprep.mubr.f32.mxu0 %v4099_v49 }
 0x181   :  { %5667 = vst [vmem:[#allocation24_spill] sm:$0xff] %v4863_v50  ;;  %v4867_v61 = vpop.f32.mrf.mxu0  ;;  %1792 = vmatprep.mubr.f32.mxu1 %v5643_v3  ;;  %2482 = vmatpush1.msra.mxu0 %v2233_v58 }
 0x182   :  { %v4870_v52 = vpop.f32.mrf.mxu1  ;;  %2483 = vmatprep.subr.mxu0 %v5643_v3 }
 0x183   :  { %5668 = vst [vmem:[#allocation25_spill] sm:$0xff] %v4870_v52  ;;  %v4876_v21 = vpop.f32.mrf.mxu0  ;;  %2901 = vmatmul.mubr.f32.gmra.mxu0 %v4121_v23  ;;  %v2231_v52 = vld [vmem:[%s5640_s3 + $0x158] sm:$0xff] }
 0x184   :  { %v4879_v50 = vpop.f32.mrf.mxu1  ;;  %1793 = vmatmul.mubr.f32.gmra.mxu1 %v3853_v59  ;;  %2903 = vmatprep.mubr.f32.mxu0 %v4143_v9 }
 0x185   :  { %5669 = vst [vmem:[#allocation26_spill] sm:$0xff] %v4879_v50  ;;  %v4883_v49 = vpop.f32.mrf.mxu0  ;;  %1798 = vmatprep.mubr.f32.mxu1 %v5643_v3  ;;  %2484 = vmatpush1.msra.mxu0 %v2232_v57 }
 0x186   :  { %v4886_v58 = vpop.f32.mrf.mxu1  ;;  %2485 = vmatprep.subr.mxu0 %v5643_v3 }
 0x187   :  { %5670 = vst [vmem:[#allocation27_spill] sm:$0xff] %v4886_v58  ;;  %v4892_v23 = vpop.f32.mrf.mxu0  ;;  %2904 = vmatmul.mubr.f32.gmra.mxu0 %v4165_v1  ;;  %v2230_v58 = vld [vmem:[%s5640_s3 + $0x150] sm:$0xff] }
 0x188   :  { %v4895_v50 = vpop.f32.mrf.mxu1  ;;  %1799 = vmatmul.mubr.f32.gmra.mxu1 %v3875_v13  ;;  %2906 = vmatprep.mubr.f32.mxu0 %v4187_v37 }
 0x189   :  { %5671 = vst [vmem:[#allocation28_spill] sm:$0xff] %v4895_v50  ;;  %v4899_v9 = vpop.f32.mrf.mxu0  ;;  %1804 = vmatprep.mubr.f32.mxu1 %v5643_v3  ;;  %2486 = vmatpush1.msra.mxu0 %v2231_v52 }
 0x18a   :  { %v4902_v57 = vpop.f32.mrf.mxu1  ;;  %2487 = vmatprep.subr.mxu0 %v5643_v3 }
 0x18b   :  { %5672 = vst [vmem:[#allocation29_spill] sm:$0xff] %v4902_v57  ;;  %v4908_v1 = vpop.f32.mrf.mxu0  ;;  %2907 = vmatmul.mubr.f32.gmra.mxu0 %v4209_v40  ;;  %v2229_v57 = vld [vmem:[%s5640_s3 + $0x148] sm:$0xff] }
 0x18c   :  { %v4911_v50 = vpop.f32.mrf.mxu1  ;;  %1805 = vmatmul.mubr.f32.gmra.mxu1 %v3898_v19  ;;  %2909 = vmatprep.mubr.f32.mxu0 %v4231_v6 }
 0x18d   :  { %5673 = vst [vmem:[#allocation30_spill] sm:$0xff] %v4911_v50  ;;  %v4915_v37 = vpop.f32.mrf.mxu0  ;;  %1810 = vmatprep.mubr.f32.mxu1 %v5643_v3  ;;  %2488 = vmatpush1.msra.mxu0 %v2230_v58 }
 0x18e   :  { %v4918_v52 = vpop.f32.mrf.mxu1  ;;  %2489 = vmatprep.subr.mxu0 %v5643_v3 }
 0x18f   :  { %5674 = vst [vmem:[#allocation31_spill] sm:$0xff] %v4918_v52  ;;  %v4924_v40 = vpop.f32.mrf.mxu0  ;;  %2910 = vmatmul.mubr.f32.gmra.mxu0 %v4253_v63  ;;  %v2228_v52 = vld [vmem:[%s5640_s3 + $0x140] sm:$0xff] }
 0x190   :  { %v4927_v50 = vpop.f32.mrf.mxu1  ;;  %1811 = vmatmul.mubr.f32.gmra.mxu1 %v3921_v20  ;;  %2912 = vmatprep.mubr.f32.mxu0 %v4275_v54 }
 0x191   :  { %5675 = vst [vmem:[#allocation32_spill] sm:$0xff] %v4927_v50  ;;  %v4931_v6 = vpop.f32.mrf.mxu0  ;;  %1816 = vmatprep.mubr.f32.mxu1 %v5643_v3  ;;  %2490 = vmatpush1.msra.mxu0 %v2229_v57 }
 0x192   :  { %v4934_v58 = vpop.f32.mrf.mxu1  ;;  %2491 = vmatprep.subr.mxu0 %v5643_v3 }
 0x193   :  { %5676 = vst [vmem:[#allocation33_spill] sm:$0xff] %v4934_v58  ;;  %v4940_v63 = vpop.f32.mrf.mxu0  ;;  %2913 = vmatmul.mubr.f32.gmra.mxu0 %v4297_v26  ;;  %v2227_v58 = vld [vmem:[%s5640_s3 + $0x138] sm:$0xff] }
 0x194   :  { %v4943_v50 = vpop.f32.mrf.mxu1  ;;  %1817 = vmatmul.mubr.f32.gmra.mxu1 %v3948_v15  ;;  %2915 = vmatprep.mubr.f32.mxu0 %v4321_v46 }
 0x195   :  { %5677 = vst [vmem:[#allocation34_spill] sm:$0xff] %v4943_v50  ;;  %v4947_v54 = vpop.f32.mrf.mxu0  ;;  %1822 = vmatprep.mubr.f32.mxu1 %v5643_v3  ;;  %2492 = vmatpush1.msra.mxu0 %v2228_v52 }
 0x196   :  { %v4950_v57 = vpop.f32.mrf.mxu1  ;;  %2493 = vmatprep.subr.mxu0 %v5643_v3 }
 0x197   :  { %5678 = vst [vmem:[#allocation35_spill] sm:$0xff] %v4950_v57  ;;  %v4956_v26 = vpop.f32.mrf.mxu0  ;;  %2916 = vmatmul.mubr.f32.gmra.mxu0 %v4342_v44  ;;  %v2226_v57 = vld [vmem:[%s5640_s3 + $0x130] sm:$0xff] }
 0x198   :  { %v4959_v50 = vpop.f32.mrf.mxu1  ;;  %1823 = vmatmul.mubr.f32.gmra.mxu1 %v3975_v32  ;;  %2918 = vmatprep.mubr.f32.mxu0 %v4361_v45 }
 0x199   :  { %5679 = vst [vmem:[#allocation36_spill] sm:$0xff] %v4959_v50  ;;  %v4963_v46 = vpop.f32.mrf.mxu0  ;;  %1828 = vmatprep.mubr.f32.mxu1 %v5643_v3  ;;  %2494 = vmatpush1.msra.mxu0 %v2227_v58  ;;  %v2225_v58 = vld [vmem:[%s5640_s3 + $0x128] sm:$0xff] }
 0x19a   :  { %v4966_v52 = vpop.f32.mrf.mxu1  ;;  %2495 = vmatprep.subr.mxu0 %v5643_v3 }
 0x19b   :  { %5680 = vst [vmem:[#allocation37_spill] sm:$0xff] %v4966_v52  ;;  %v4972_v44 = vpop.f32.mrf.mxu0  ;;  %2919 = vmatmul.mubr.f32.gmra.mxu0 %v4379_v2  ;;  %v5684_v52 = vmov 0.0   ;;  %v2224_v2 = vld [vmem:[%s5640_s3 + $0x120] sm:$0xff] }
 0x19c   :  { %5681 = vst [vmem:[#allocation38_spill] sm:$0xff] %v4972_v44  ;;  %v4975_v50 = vpop.f32.mrf.mxu1  ;;  %1829 = vmatmul.mubr.f32.gmra.mxu1 %v4003_v56  ;;  %2921 = vmatprep.mubr.f32.mxu0 %v4397_v12 }
 0x19d   :  { %5682 = vst [vmem:[#allocation39_spill] sm:$0xff] %v4975_v50  ;;  %v4979_v45 = vpop.f32.mrf.mxu0  ;;  %2496 = vmatpush1.msra.mxu0 %v2226_v57  ;;  %v2223_v50 = vld [vmem:[%s5640_s3 + $0x118] sm:$0xff] }
 0x19e   :  { %v4984_v3 = vpop.f32.mrf.mxu1  ;;  %2497 = vmatprep.subr.mxu0 %v5684_v52 }
 0x19f   :  { %5683 = vst [vmem:[#allocation40_spill] sm:$0xff] %v4984_v3  ;;  %v4987_v44 = vpop.f32.mrf.mxu0  ;;  %2922 = vmatmul.mubr.f32.gmra.mxu0 %v4409_v11 }
 0x1a0   :  { %v4993_v12 = vpop.f32.mrf.mxu1  ;;  %2924 = vmatprep.mubr.f32.mxu0 %v4419_v48  ;;  %2498 = vmatpush1.msra.mxu0 %v2225_v58  ;;  %v2222_v48 = vld [vmem:[%s5640_s3 + $0x110] sm:$0xff] }
 0x1a1   :  { %5685 = vst [vmem:[#allocation41_spill] sm:$0xff] %v4993_v12  ;;  %v4996_v57 = vpop.f32.mrf.mxu0  ;;  %2499 = vmatprep.subr.mxu0 %v5684_v52 }
 0x1a2   :  { %v5002_v3 = vpop.f32.mrf.mxu1  ;;  %2500 = vmatpush1.msra.mxu0 %v2224_v2  ;;  %v2221_v2 = vld [vmem:[%s5640_s3 + $0x108] sm:$0xff] }
 0x1a3   :  { %5686 = vst [vmem:[#allocation42_spill] sm:$0xff] %v5002_v3  ;;  %v5004_v11 = vpop.f32.mrf.mxu0  ;;  %2925 = vmatmul.mubr.f32.gmra.mxu0 %v4428_v18  ;;  %2501 = vmatprep.subr.mxu0 %v5684_v52 }
 0x1a4   :  { %v5011_v58 = vpop.f32.mrf.mxu1  ;;  %2927 = vmatprep.mubr.f32.mxu0 %v3833_v51  ;;  %2502 = vmatpush1.msra.mxu0 %v2223_v50  ;;  %v2220_v51 = vld [vmem:[%s5640_s3 + $0x100] sm:$0xff] }
 0x1a5   :  { %5687 = vst [vmem:[#allocation43_spill] sm:$0xff] %v5011_v58  ;;  %v5014_v12 = vpop.f32.mrf.mxu0  ;;  %2503 = vmatprep.subr.mxu0 %v5684_v52 }
 0x1a6   :  { %v5020_v18 = vpop.f32.mrf.mxu1  ;;  %2504 = vmatpush1.msra.mxu0 %v2222_v48  ;;  %v2251_v48 = vld [vmem:[%s5640_s3 + $0x1f8] sm:$0xff] }
 0x1a7   :  { %5688 = vst [vmem:[#allocation44_spill] sm:$0xff] %v5020_v18  ;;  %v5022_v3 = vpop.f32.mrf.mxu0  ;;  %2928 = vmatmul.mubr.f32.gmra.mxu0 %v3853_v59  ;;  %2505 = vmatprep.subr.mxu0 %v5684_v52 }
 0x1a8   :  { %v5029_v50 = vpop.f32.mrf.mxu1  ;;  %2930 = vmatprep.mubr.f32.mxu0 %v3875_v13  ;;  %2506 = vmatpush1.msra.mxu0 %v2221_v2  ;;  %v2250_v13 = vld [vmem:[%s5640_s3 + $0x1f0] sm:$0xff] }
 0x1a9   :  { %5689 = vst [vmem:[#allocation45_spill] sm:$0xff] %v5029_v50  ;;  %v5032_v58 = vpop.f32.mrf.mxu0  ;;  %2507 = vmatprep.subr.mxu0 %v5684_v52 }
 0x1aa   :  { %v5038_v59 = vpop.f32.mrf.mxu1  ;;  %2508 = vmatpush1.msra.mxu0 %v2220_v51  ;;  %v2249_v51 = vld [vmem:[%s5640_s3 + $0x1e8] sm:$0xff] }
 0x1ab   :  { %5690 = vst [vmem:[#allocation46_spill] sm:$0xff] %v5038_v59  ;;  %v5040_v18 = vpop.f32.mrf.mxu0  ;;  %2931 = vmatmul.mubr.f32.gmra.mxu0 %v3898_v19  ;;  %2509 = vmatprep.subr.mxu0 %v5684_v52 }
 0x1ac   :  { %5691 = vst [vmem:[#allocation47_spill] sm:$0xff] %v5040_v18  ;;  %v5047_v2 = vpop.f32.mrf.mxu1  ;;  %2933 = vmatprep.mubr.f32.mxu0 %v3921_v20  ;;  %2510 = vmatpush2.msra.mxu0 %v2251_v48  ;;  %v2248_v20 = vld [vmem:[%s5640_s3 + $0x1e0] sm:$0xff] }
 0x1ad   :  { %5692 = vst [vmem:[#allocation48_spill] sm:$0xff] %v5047_v2  ;;  %v5050_v50 = vpop.f32.mrf.mxu0  ;;  %2511 = vmatprep.subr.mxu0 %v5684_v52 }
 0x1ae   :  { %v5056_v19 = vpop.f32.mrf.mxu1  ;;  %2512 = vmatpush2.msra.mxu0 %v2250_v13  ;;  %v2247_v13 = vld [vmem:[%s5640_s3 + $0x1d8] sm:$0xff] }
 0x1af   :  { %5693 = vst [vmem:[#allocation49_spill] sm:$0xff] %v5056_v19  ;;  %v5058_v59 = vpop.f32.mrf.mxu0  ;;  %2934 = vmatmul.mubr.f32.gmra.mxu0 %v3948_v15  ;;  %2513 = vmatprep.subr.mxu0 %v5684_v52 }
 0x1b0   :  { %5694 = vst [vmem:[#allocation50_spill] sm:$0xff] %v5058_v59  ;;  %v5065_v48 = vpop.f32.mrf.mxu1  ;;  %2936 = vmatprep.mubr.f32.mxu0 %v3975_v32  ;;  %2514 = vmatpush2.msra.mxu0 %v2249_v51  ;;  %v2246_v32 = vld [vmem:[%s5640_s3 + $0x1d0] sm:$0xff] }
 0x1b1   :  { %5695 = vst [vmem:[#allocation51_spill] sm:$0xff] %v5065_v48  ;;  %v5068_v2 = vpop.f32.mrf.mxu0  ;;  %2515 = vmatprep.subr.mxu0 %v5684_v52 }
 0x1b2   :  { %5696 = vst [vmem:[#allocation52_spill] sm:$0xff] %v5068_v2  ;;  %v5074_v15 = vpop.f32.mrf.mxu1  ;;  %2516 = vmatpush2.msra.mxu0 %v2248_v20  ;;  %v2245_v20 = vld [vmem:[%s5640_s3 + $0x1c8] sm:$0xff] }
 0x1b3   :  { %5697 = vst [vmem:[#allocation53_spill] sm:$0xff] %v5074_v15  ;;  %v5076_v19 = vpop.f32.mrf.mxu0  ;;  %2937 = vmatmul.mubr.f32.gmra.mxu0 %v4003_v56  ;;  %2517 = vmatprep.subr.mxu0 %v5684_v52 }
 0x1b4   :  { %5698 = vst [vmem:[#allocation54_spill] sm:$0xff] %v5076_v19  ;;  %v5083_v51 = vpop.f32.mrf.mxu1  ;;  %2518 = vmatpush2.msra.mxu0 %v2247_v13  ;;  %v2244_v19 = vld [vmem:[%s5640_s3 + $0x1c0] sm:$0xff] }
 0x1b5   :  { %5699 = vst [vmem:[#allocation55_spill] sm:$0xff] %v5083_v51  ;;  %v5085_v48 = vpop.f32.mrf.mxu0  ;;  %2519 = vmatprep.subr.mxu0 %v5684_v52 }
 0x1b6   :  { %5700 = vst [vmem:[#allocation56_spill] sm:$0xff] %v5085_v48  ;;  %v5091_v15 = vpop.f32.mrf.mxu1  ;;  %2520 = vmatpush2.msra.mxu0 %v2246_v32  ;;  %v2243_v48 = vld [vmem:[%s5640_s3 + $0x1b8] sm:$0xff] }
 0x1b7   :  { %5701 = vst [vmem:[#allocation57_spill] sm:$0xff] %v5091_v15  ;;  %v1387_v56 = vpop.f32.mrf.mxu0  ;;  %2521 = vmatprep.subr.mxu0 %v5684_v52 }
 0x1b8   :  { %v5097_v51 = vpop.f32.mrf.mxu1  ;;  %2522 = vmatpush2.msra.mxu0 %v2245_v20  ;;  %v2060_v59 = vmul.f32 %v1387_v56, %v4677_v16  ;;  %v2242_v20 = vld [vmem:[%s5640_s3 + $0x1b0] sm:$0xff] }
 0x1b9   :  { %5702 = vst [vmem:[#allocation58_spill] sm:$0xff] %v5097_v51  ;;  %v1389_v13 = vpop.f32.mrf.mxu0  ;;  %2523 = vmatprep.subr.mxu0 %v5684_v52 }
 0x1ba   :  { %v2061_v15 = vmul.f32 %v1389_v13, %v4687_v28  ;;  %v5104_v32 = vpop.f32.mrf.mxu1  ;;  %2524 = vmatpush2.msra.mxu0 %v2244_v19  ;;  %v2241_v28 = vld [vmem:[%s5640_s3 + $0x1a8] sm:$0xff] }
 0x1bb   :  { %v1393_v2 = vpop.f32.mrf.mxu0  ;;  %2525 = vmatprep.subr.mxu0 %v5684_v52 }
 0x1bc   :  { %v5111_v51 = vpop.f32.mrf.mxu1  ;;  %2316 = vmatprep.mubr.f32.mxu1 %v2061_v15  ;;  %2526 = vmatpush2.msra.mxu0 %v2243_v48  ;;  %v2064_v56 = vmul.f32 %v1393_v2, %v4696_v30 }
 0x1bd   :  { %v1395_v18 = vpop.f32.mrf.mxu0  ;;  %2317 = vmatmul.mubr.f32.vlgmr.msra.gmra.mxu1 %v2060_v59  ;;  %2527 = vmatprep.subr.mxu0 %v5684_v52  ;;  %v2240_v59 = vld [vmem:[%s5640_s3 + $0x1a0] sm:$0xff] }
 0x1be   :  { %v2065_v16 = vmul.f32 %v1395_v18, %v4707_v38  ;;  %v5118_v19 = vpop.f32.mrf.mxu1  ;;  %2528 = vmatpush2.msra.mxu0 %v2242_v20  ;;  %v2239_v38 = vld [vmem:[%s5640_s3 + $0x198] sm:$0xff] }
 0x1bf   :  { %v1399_v13 = vpop.f32.mrf.mxu0  ;;  %2529 = vmatprep.subr.mxu0 %v5684_v52 }
 0x1c0   :  { %v5125_v48 = vpop.f32.mrf.mxu1  ;;  %2321 = vmatprep.mubr.f32.mxu1 %v2065_v16  ;;  %2530 = vmatpush2.msra.mxu0 %v2241_v28  ;;  %v2068_v2 = vmul.f32 %v1399_v13, %v4713_v47  ;;  %v2238_v28 = vld [vmem:[%s5640_s3 + $0x190] sm:$0xff] }
 0x1c1   :  { %v1401_v15 = vpop.f32.mrf.mxu0  ;;  %2322 = vmatmul.mubr.f32.gmra.mxu1 %v2064_v56  ;;  %2531 = vmatprep.subr.mxu0 %v5684_v52 }
 0x1c2   :  { %v2069_v30 = vmul.f32 %v1401_v15, %v4723_v29  ;;  %v5132_v18 = vpop.f32.mrf.mxu1  ;;  %2532 = vmatpush2.msra.mxu0 %v2240_v59  ;;  %v2237_v29 = vld [vmem:[%s5640_s3 + $0x188] sm:$0xff] }
 0x1c3   :  { %v1405_v20 = vpop.f32.mrf.mxu0  ;;  %2533 = vmatprep.subr.mxu0 %v5684_v52 }
 0x1c4   :  { %v5139_v16 = vpop.f32.mrf.mxu1  ;;  %2326 = vmatprep.mubr.f32.mxu1 %v2069_v30  ;;  %2534 = vmatpush2.msra.mxu0 %v2239_v38  ;;  %v2072_v59 = vmul.f32 %v1405_v20, %v4732_v62  ;;  %v2236_v38 = vld [vmem:[%s5640_s3 + $0x180] sm:$0xff] }
 0x1c5   :  { %5703 = vst [vmem:[#allocation59_spill] sm:$0xff] %v5139_v16  ;;  %v1407_v56 = vpop.f32.mrf.mxu0  ;;  %2327 = vmatmul.mubr.f32.gmra.mxu1 %v2068_v2  ;;  %2535 = vmatprep.subr.mxu0 %v5684_v52 }
 0x1c6   :  { %v2073_v47 = vmul.f32 %v1407_v56, %v4743_v60  ;;  %v5146_v13 = vpop.f32.mrf.mxu1  ;;  %2536 = vmatpush2.msra.mxu0 %v2238_v28 }
 0x1c7   :  { %v1411_v15 = vpop.f32.mrf.mxu0  ;;  %2537 = vmatprep.subr.mxu0 %v5684_v52 }
 0x1c8   :  { %v5153_v30 = vpop.f32.mrf.mxu1  ;;  %2331 = vmatprep.mubr.f32.mxu1 %v2073_v47  ;;  %2538 = vmatpush2.msra.mxu0 %v2237_v29  ;;  %v2076_v62 = vmul.f32 %v1411_v15, %v4749_v25 }
 0x1c9   :  { %5704 = vst [vmem:[#allocation60_spill] sm:$0xff] %v5153_v30  ;;  %v1413_v2 = vpop.f32.mrf.mxu0  ;;  %2332 = vmatmul.mubr.f32.gmra.mxu1 %v2072_v59  ;;  %2539 = vmatprep.subr.mxu0 %v5684_v52 }
 0x1ca   :  { %v2077_v60 = vmul.f32 %v1413_v2, %v4759_v39  ;;  %v5157_v28 = vpop.f32.mrf.mxu1  ;;  %2540 = vmatpush2.msra.mxu0 %v2236_v38 }
 0x1cb   :  { %v1417_v20 = vpop.f32.mrf.mxu0 }
 0x1cc   :  { %v5160_v56 = vpop.f32.mrf.mxu1  ;;  %2336 = vmatprep.mubr.f32.mxu1 %v2077_v60  ;;  %v2080_v59 = vmul.f32 %v1417_v20, %v4768_v31 }
 0x1cd   :  { %v1419_v16 = vpop.f32.mrf.mxu0  ;;  %2337 = vmatmul.mubr.f32.gmra.mxu1 %v2076_v62 }
 0x1ce   :  { %v2081_v47 = vmul.f32 %v1419_v16, %v4779_v5  ;;  %v5163_v29 = vpop.f32.mrf.mxu1 }
 0x1cf   :  { %v1423_v52 = vpop.f32.mrf.mxu0 }
 0x1d0   :  { %v5166_v30 = vpop.f32.mrf.mxu1  ;;  %2341 = vmatprep.mubr.f32.mxu1 %v2081_v47  ;;  %v2084_v38 = vmul.f32 %v1423_v52, %v4785_v43 }
 0x1d1   :  { %v1425_v39 = vpop.f32.mrf.mxu0  ;;  %2342 = vmatmul.mubr.f32.gmra.mxu1 %v2080_v59 }
 0x1d2   :  { %v2085_v25 = vmul.f32 %v1425_v39, %v4795_v0  ;;  %v5169_v15 = vpop.f32.mrf.mxu1 }
 0x1d3   :  { %v1429_v2 = vpop.f32.mrf.mxu0 }
 0x1d4   :  { %v5172_v60 = vpop.f32.mrf.mxu1  ;;  %2346 = vmatprep.mubr.f32.mxu1 %v2085_v25  ;;  %v2088_v62 = vmul.f32 %v1429_v2, %v4804_v41 }
 0x1d5   :  { %v1431_v5 = vpop.f32.mrf.mxu0  ;;  %2347 = vmatmul.mubr.f32.gmra.mxu1 %v2084_v38 }
 0x1d6   :  { %v2089_v31 = vmul.f32 %v1431_v5, %v4815_v22  ;;  %v5175_v16 = vpop.f32.mrf.mxu1 }
 0x1d7   :  { %v1435_v20 = vpop.f32.mrf.mxu0 }
 0x1d8   :  { %v5178_v47 = vpop.f32.mrf.mxu1  ;;  %2351 = vmatprep.mubr.f32.mxu1 %v2089_v31  ;;  %v2092_v52 = vmul.f32 %v1435_v20, %v4824_v17 }
 0x1d9   :  { %v1437_v0 = vpop.f32.mrf.mxu0  ;;  %2352 = vmatmul.mubr.f32.gmra.mxu1 %v2088_v62 }
 0x1da   :  { %v2093_v43 = vmul.f32 %v1437_v0, %v4834_v36  ;;  %v5181_v59 = vpop.f32.mrf.mxu1 }
 0x1db   :  { %v1441_v39 = vpop.f32.mrf.mxu0 }
 0x1dc   :  { %v5184_v25 = vpop.f32.mrf.mxu1  ;;  %2356 = vmatprep.mubr.f32.mxu1 %v2093_v43  ;;  %v2096_v2 = vmul.f32 %v1441_v39, %v4844_v27 }
 0x1dd   :  { %v1443_v22 = vpop.f32.mrf.mxu0  ;;  %2357 = vmatmul.mubr.f32.gmra.mxu1 %v2092_v52 }
 0x1de   :  { %v2097_v41 = vmul.f32 %v1443_v22, %v4851_v14  ;;  %v5187_v38 = vpop.f32.mrf.mxu1 }
 0x1df   :  { %v1447_v5 = vpop.f32.mrf.mxu0 }
 0x1e0   :  { %v1644_v31 = vpop.f32.mrf.mxu1  ;;  %2361 = vmatprep.mubr.f32.mxu1 %v2097_v41  ;;  %v2100_v20 = vmul.f32 %v1447_v5, %v4860_v4 }
 0x1e1   :  { %v1449_v36 = vpop.f32.mrf.mxu0  ;;  %2362 = vmatmul.mubr.f32.gmra.mxu1 %v2096_v2  ;;  %v2062_v52 = vmul.f32 %v1644_v31, %v4719_v8 }
 0x1e2   :  { %v2101_v62 = vmul.f32 %v1449_v36, %v4867_v61  ;;  %v1646_v17 = vpop.f32.mrf.mxu1 }
 0x1e3   :  { %v2063_v0 = vmul.f32 %v1646_v17, %v4727_v53  ;;  %v1453_v43 = vpop.f32.mrf.mxu0 }
 0x1e4   :  { %v1650_v14 = vpop.f32.mrf.mxu1  ;;  %2366 = vmatprep.mubr.f32.mxu1 %v2101_v62  ;;  %v2104_v41 = vmul.f32 %v1453_v43, %v4876_v21 }
 0x1e5   :  { %v1455_v22 = vpop.f32.mrf.mxu0  ;;  %2367 = vmatmul.mubr.f32.gmra.mxu1 %v2100_v20  ;;  %2541 = vmatprep.mubr.f32.mxu0 %v2063_v0  ;;  %v2066_v4 = vmul.f32 %v1650_v14, %v4736_v10 }
 0x1e6   :  { %v2105_v27 = vmul.f32 %v1455_v22, %v4883_v49  ;;  %v1652_v39 = vpop.f32.mrf.mxu1  ;;  %2542 = vmatmul.mubr.f32.vlgmr.msra.gmra.mxu0 %v2062_v52 }
 0x1e7   :  { %v2067_v61 = vmul.f32 %v1652_v39, %v4746_v33  ;;  %v1459_v2 = vpop.f32.mrf.mxu0 }
 0x1e8   :  { %v1656_v53 = vpop.f32.mrf.mxu1  ;;  %2371 = vmatprep.mubr.f32.mxu1 %v2105_v27  ;;  %v2108_v49 = vmul.f32 %v1459_v2, %v4892_v23  ;;  %v5706_v2 = vld [vmem:[#allocation20_spill] sm:$0xff] }
 0x1e9   :  { %v1461_v5 = vpop.f32.mrf.mxu0  ;;  %2372 = vmatmul.mubr.f32.gmra.mxu1 %v2104_v41  ;;  %2546 = vmatprep.mubr.f32.mxu0 %v2067_v61  ;;  %v2070_v21 = vmul.f32 %v1656_v53, %v4755_v34 }
 0x1ea   :  { %v2109_v8 = vmul.f32 %v1461_v5, %v4899_v9  ;;  %v1658_v31 = vpop.f32.mrf.mxu1  ;;  %2547 = vmatmul.mubr.f32.gmra.mxu0 %v2066_v4 }
 0x1eb   :  { %v2071_v36 = vmul.f32 %v1658_v31, %v4763_v55  ;;  %v1465_v62 = vpop.f32.mrf.mxu0 }
 0x1ec   :  { %v1662_v33 = vpop.f32.mrf.mxu1  ;;  %2376 = vmatprep.mubr.f32.mxu1 %v2109_v8  ;;  %v2112_v9 = vmul.f32 %v1465_v62, %v4908_v1  ;;  %v5705_v1 = vld [vmem:[#allocation18_spill] sm:$0xff] }
 0x1ed   :  { %v1467_v17 = vpop.f32.mrf.mxu0  ;;  %2377 = vmatmul.mubr.f32.gmra.mxu1 %v2108_v49  ;;  %2551 = vmatprep.mubr.f32.mxu0 %v2071_v36  ;;  %v2074_v23 = vmul.f32 %v1662_v33, %v4772_v7 }
 0x1ee   :  { %v2113_v10 = vmul.f32 %v1467_v17, %v4915_v37  ;;  %v1664_v20 = vpop.f32.mrf.mxu1  ;;  %2552 = vmatmul.mubr.f32.gmra.mxu0 %v2070_v21 }
 0x1ef   :  { %v2075_v0 = vmul.f32 %v1664_v20, %v4782_v42  ;;  %v1471_v43 = vpop.f32.mrf.mxu0 }
 0x1f0   :  { %v1668_v55 = vpop.f32.mrf.mxu1  ;;  %2381 = vmatprep.mubr.f32.mxu1 %v2113_v10  ;;  %v2116_v37 = vmul.f32 %v1471_v43, %v4924_v40  ;;  %v5707_v40 = vld [vmem:[#allocation19_spill] sm:$0xff] }
 0x1f1   :  { %v1473_v52 = vpop.f32.mrf.mxu0  ;;  %2382 = vmatmul.mubr.f32.gmra.mxu1 %v2112_v9  ;;  %2556 = vmatprep.mubr.f32.mxu0 %v2075_v0  ;;  %v2078_v39 = vmul.f32 %v1668_v55, %v5705_v1  ;;  %v5709_v9 = vld [vmem:[#allocation38_spill] sm:$0xff]  ;;  %v5710_v0 = vld [vmem:[#allocation23_spill] sm:$0xff]  ;;  %v5713_v1 = vld [vmem:[#allocation24_spill] sm:$0xff] }
 0x1f2   :  { %v2117_v34 = vmul.f32 %v1473_v52, %v4931_v6  ;;  %v1670_v14 = vpop.f32.mrf.mxu1  ;;  %2557 = vmatmul.mubr.f32.gmra.mxu0 %v2074_v23 }
 0x1f3   :  { %v2079_v22 = vmul.f32 %v1670_v14, %v4799_v24  ;;  %v1477_v27 = vpop.f32.mrf.mxu0 }
 0x1f4   :  { %v1674_v42 = vpop.f32.mrf.mxu1  ;;  %2386 = vmatprep.mubr.f32.mxu1 %v2117_v34  ;;  %v2120_v6 = vmul.f32 %v1477_v27, %v4940_v63  ;;  %v5708_v63 = vld [vmem:[#allocation21_spill] sm:$0xff] }
 0x1f5   :  { %v1479_v41 = vpop.f32.mrf.mxu0  ;;  %2387 = vmatmul.mubr.f32.gmra.mxu1 %v2116_v37  ;;  %2561 = vmatprep.mubr.f32.mxu0 %v2079_v22  ;;  %v2082_v5 = vmul.f32 %v1674_v42, %v5707_v40  ;;  %v5712_v37 = vld [vmem:[#allocation25_spill] sm:$0xff] }
 0x1f6   :  { %v2121_v7 = vmul.f32 %v1479_v41, %v4947_v54  ;;  %v1676_v61 = vpop.f32.mrf.mxu1  ;;  %2562 = vmatmul.mubr.f32.gmra.mxu0 %v2078_v39 }
 0x1f7   :  { %v2083_v4 = vmul.f32 %v1676_v61, %v5706_v2  ;;  %v1483_v53 = vpop.f32.mrf.mxu0 }
 0x1f8   :  { %v1680_v24 = vpop.f32.mrf.mxu1  ;;  %2391 = vmatprep.mubr.f32.mxu1 %v2121_v7  ;;  %v2124_v54 = vmul.f32 %v1483_v53, %v4956_v26  ;;  %v5711_v26 = vld [vmem:[#allocation22_spill] sm:$0xff] }
 0x1f9   :  { %v1485_v8 = vpop.f32.mrf.mxu0  ;;  %2392 = vmatmul.mubr.f32.gmra.mxu1 %v2120_v6  ;;  %2566 = vmatprep.mubr.f32.mxu0 %v2083_v4  ;;  %v2086_v21 = vmul.f32 %v1680_v24, %v5708_v63  ;;  %v5714_v6 = vld [vmem:[#allocation27_spill] sm:$0xff] }
 0x1fa   :  { %v2125_v31 = vmul.f32 %v1485_v8, %v4963_v46  ;;  %v1682_v49 = vpop.f32.mrf.mxu1  ;;  %2567 = vmatmul.mubr.f32.gmra.mxu0 %v2082_v5 }
 0x1fb   :  { %v2087_v36 = vmul.f32 %v1682_v49, %v4837_v35  ;;  %v1489_v62 = vpop.f32.mrf.mxu0 }
 0x1fc   :  { %v1686_v33 = vpop.f32.mrf.mxu1  ;;  %2396 = vmatprep.mubr.f32.mxu1 %v2125_v31  ;;  %v2128_v46 = vmul.f32 %v1489_v62, %v5709_v9  ;;  %v5716_v31 = vld [vmem:[#allocation29_spill] sm:$0xff] }
 0x1fd   :  { %v1491_v17 = vpop.f32.mrf.mxu0  ;;  %2397 = vmatmul.mubr.f32.gmra.mxu1 %v2124_v54  ;;  %2571 = vmatprep.mubr.f32.mxu0 %v2087_v36  ;;  %v2090_v55 = vmul.f32 %v1686_v33, %v5711_v26 }
 0x1fe   :  { %v2129_v10 = vmul.f32 %v1491_v17, %v4979_v45  ;;  %v1688_v20 = vpop.f32.mrf.mxu1  ;;  %2572 = vmatmul.mubr.f32.gmra.mxu0 %v2086_v21  ;;  %v5718_v17 = vld [vmem:[#allocation47_spill] sm:$0xff] }
 0x1ff   :  { %v2091_v43 = vmul.f32 %v1688_v20, %v5710_v0  ;;  %v1495_v23 = vpop.f32.mrf.mxu0 }
 0x200   :  { %v1692_v35 = vpop.f32.mrf.mxu1  ;;  %2401 = vmatprep.mubr.f32.mxu1 %v2129_v10  ;;  %v2132_v45 = vmul.f32 %v1495_v23, %v4987_v44  ;;  %v5715_v44 = vld [vmem:[#allocation26_spill] sm:$0xff]  ;;  %v5719_v10 = vld [vmem:[#allocation31_spill] sm:$0xff]  ;;  %v5721_v23 = vld [vmem:[#allocation52_spill] sm:$0xff] }
 0x201   :  { %v1497_v52 = vpop.f32.mrf.mxu0  ;;  %2402 = vmatmul.mubr.f32.gmra.mxu1 %v2128_v46  ;;  %2576 = vmatprep.mubr.f32.mxu0 %v2091_v43  ;;  %v2094_v39 = vmul.f32 %v1692_v35, %v5713_v1  ;;  %v5722_v35 = vld [vmem:[#allocation50_spill] sm:$0xff]  ;;  %v5725_v1 = vld [vmem:[#allocation56_spill] sm:$0xff] }
 0x202   :  { %v2133_v34 = vmul.f32 %v1497_v52, %v4996_v57  ;;  %v1694_v14 = vpop.f32.mrf.mxu1  ;;  %2577 = vmatmul.mubr.f32.gmra.mxu0 %v2090_v55  ;;  %v5723_v52 = vld [vmem:[#allocation33_spill] sm:$0xff] }
 0x203   :  { %v2095_v22 = vmul.f32 %v1694_v14, %v5712_v37  ;;  %v1501_v27 = vpop.f32.mrf.mxu0 }
 0x204   :  { %v1698_v42 = vpop.f32.mrf.mxu1  ;;  %2406 = vmatprep.mubr.f32.mxu1 %v2133_v34  ;;  %v2136_v57 = vmul.f32 %v1501_v27, %v5004_v11  ;;  %v5717_v11 = vld [vmem:[#allocation28_spill] sm:$0xff] }
 0x205   :  { %v1503_v41 = vpop.f32.mrf.mxu0  ;;  %2407 = vmatmul.mubr.f32.gmra.mxu1 %v2132_v45  ;;  %2581 = vmatprep.mubr.f32.mxu0 %v2095_v22  ;;  %v2098_v53 = vmul.f32 %v1698_v42, %v5715_v44  ;;  %v5724_v45 = vld [vmem:[#allocation32_spill] sm:$0xff] }
 0x206   :  { %v2137_v7 = vmul.f32 %v1503_v41, %v5014_v12  ;;  %v1700_v61 = vpop.f32.mrf.mxu1  ;;  %2582 = vmatmul.mubr.f32.gmra.mxu0 %v2094_v39  ;;  %v5726_v41 = vld [vmem:[#allocation54_spill] sm:$0xff] }
 0x207   :  { %v2099_v2 = vmul.f32 %v1700_v61, %v5714_v6  ;;  %v1507_v4 = vpop.f32.mrf.mxu0  ;;  %v5727_v61 = vld [vmem:[#allocation35_spill] sm:$0xff] }
 0x208   :  { %v1704_v40 = vpop.f32.mrf.mxu1  ;;  %2411 = vmatprep.mubr.f32.mxu1 %v2137_v7  ;;  %v2140_v12 = vmul.f32 %v1507_v4, %v5022_v3  ;;  %v5720_v3 = vld [vmem:[#allocation30_spill] sm:$0xff] }
 0x209   :  { %v1509_v5 = vpop.f32.mrf.mxu0  ;;  %2412 = vmatmul.mubr.f32.gmra.mxu1 %v2136_v57  ;;  %2586 = vmatprep.mubr.f32.mxu0 %v2099_v2  ;;  %v2102_v36 = vmul.f32 %v1704_v40, %v5717_v11  ;;  %v5728_v2 = vld [vmem:[#allocation34_spill] sm:$0xff]  ;;  %v5729_v40 = vld [vmem:[#allocation3_spill] sm:$0xff]  ;;  %v5732_v11 = vld [vmem:[#allocation36_spill] sm:$0xff] }
 0x20a   :  { %v2141_v24 = vmul.f32 %v1509_v5, %v5032_v58  ;;  %v1706_v8 = vpop.f32.mrf.mxu1  ;;  %2587 = vmatmul.mubr.f32.gmra.mxu0 %v2098_v53 }
 0x20b   :  { %v2103_v49 = vmul.f32 %v1706_v8, %v5716_v31  ;;  %v1513_v54 = vpop.f32.mrf.mxu0  ;;  %v5730_v8 = vld [vmem:[#allocation2_spill] sm:$0xff]  ;;  %v5731_v31 = vld [vmem:[#allocation37_spill] sm:$0xff] }
 0x20c   :  { %v1710_v62 = vpop.f32.mrf.mxu1  ;;  %2416 = vmatprep.mubr.f32.mxu1 %v2141_v24  ;;  %v2144_v58 = vmul.f32 %v1513_v54, %v5718_v17 }
 0x20d   :  { %v1515_v63 = vpop.f32.mrf.mxu0  ;;  %2417 = vmatmul.mubr.f32.gmra.mxu1 %v2140_v12  ;;  %2591 = vmatprep.mubr.f32.mxu0 %v2103_v49  ;;  %v2106_v46 = vmul.f32 %v1710_v62, %v5720_v3 }
 0x20e   :  { %v2145_v21 = vmul.f32 %v1515_v63, %v5050_v50  ;;  %v1712_v33 = vpop.f32.mrf.mxu1  ;;  %2592 = vmatmul.mubr.f32.gmra.mxu0 %v2102_v36 }
 0x20f   :  { %v2107_v20 = vmul.f32 %v1712_v33, %v5719_v10  ;;  %v1519_v9 = vpop.f32.mrf.mxu0 }
 0x210   :  { %v1716_v0 = vpop.f32.mrf.mxu1  ;;  %2421 = vmatprep.mubr.f32.mxu1 %v2145_v21  ;;  %v2148_v50 = vmul.f32 %v1519_v9, %v5722_v35  ;;  %v5733_v21 = vld [vmem:[#allocation5_spill] sm:$0xff] }
 0x211   :  { %v1521_v43 = vpop.f32.mrf.mxu0  ;;  %2422 = vmatmul.mubr.f32.gmra.mxu1 %v2144_v58  ;;  %2596 = vmatprep.mubr.f32.mxu0 %v2107_v20  ;;  %v2110_v37 = vmul.f32 %v1716_v0, %v5724_v45  ;;  %v5734_v58 = vld [vmem:[#allocation4_spill] sm:$0xff] }
 0x212   :  { %v2149_v26 = vmul.f32 %v1521_v43, %v5721_v23  ;;  %v1718_v55 = vpop.f32.mrf.mxu1  ;;  %2597 = vmatmul.mubr.f32.gmra.mxu0 %v2106_v46  ;;  %v5735_v20 = vld [vmem:[#allocation40_spill] sm:$0xff]  ;;  %v5736_v46 = vld [vmem:[#allocation39_spill] sm:$0xff] }
 0x213   :  { %v2111_v34 = vmul.f32 %v1718_v55, %v5723_v52  ;;  %v1525_v14 = vpop.f32.mrf.mxu0 }
 0x214   :  { %v1722_v22 = vpop.f32.mrf.mxu1  ;;  %2426 = vmatprep.mubr.f32.mxu1 %v2149_v26  ;;  %v2152_v7 = vmul.f32 %v1525_v14, %v5726_v41  ;;  %v5737_v26 = vld [vmem:[#allocation7_spill] sm:$0xff] }
 0x215   :  { %v1527_v27 = vpop.f32.mrf.mxu0  ;;  %2427 = vmatmul.mubr.f32.gmra.mxu1 %v2148_v50  ;;  %2601 = vmatprep.mubr.f32.mxu0 %v2111_v34  ;;  %v2114_v4 = vmul.f32 %v1722_v22, %v5728_v2  ;;  %v5738_v50 = vld [vmem:[#allocation6_spill] sm:$0xff] }
 0x216   :  { %v2153_v39 = vmul.f32 %v1527_v27, %v5725_v1  ;;  %v1724_v42 = vpop.f32.mrf.mxu1  ;;  %2602 = vmatmul.mubr.f32.gmra.mxu0 %v2110_v37  ;;  %v5739_v34 = vld [vmem:[#allocation42_spill] sm:$0xff]  ;;  %v5740_v37 = vld [vmem:[#allocation41_spill] sm:$0xff] }
 0x217   :  { %v2115_v57 = vmul.f32 %v1724_v42, %v5727_v61  ;;  %v1531_v6 = vpop.f32.mrf.mxu0 }
 0x218   :  { %v1728_v44 = vpop.f32.mrf.mxu1  ;;  %2431 = vmatprep.mubr.f32.mxu1 %v2153_v39  ;;  %v2156_v12 = vmul.f32 %v1531_v6, %v5730_v8  ;;  %v5741_v39 = vld [vmem:[#allocation9_spill] sm:$0xff] }
 0x219   :  { %v1533_v53 = vpop.f32.mrf.mxu0  ;;  %2432 = vmatmul.mubr.f32.gmra.mxu1 %v2152_v7  ;;  %2606 = vmatprep.mubr.f32.mxu0 %v2115_v57  ;;  %v2118_v36 = vmul.f32 %v1728_v44, %v5732_v11  ;;  %v5742_v7 = vld [vmem:[#allocation8_spill] sm:$0xff] }
 0x21a   :  { %v2157_v5 = vmul.f32 %v1533_v53, %v5729_v40  ;;  %v1730_v24 = vpop.f32.mrf.mxu1  ;;  %2607 = vmatmul.mubr.f32.gmra.mxu0 %v2114_v4  ;;  %v5743_v57 = vld [vmem:[#allocation44_spill] sm:$0xff]  ;;  %v5744_v4 = vld [vmem:[#allocation43_spill] sm:$0xff] }
 0x21b   :  { %v2119_v49 = vmul.f32 %v1730_v24, %v5731_v31  ;;  %v1537_v54 = vpop.f32.mrf.mxu0 }
 0x21c   :  { %v1734_v62 = vpop.f32.mrf.mxu1  ;;  %2436 = vmatprep.mubr.f32.mxu1 %v2157_v5  ;;  %v2160_v10 = vmul.f32 %v1537_v54, %v5734_v58  ;;  %v5745_v5 = vld [vmem:[#allocation11_spill] sm:$0xff] }
 0x21d   :  { %v1539_v63 = vpop.f32.mrf.mxu0  ;;  %2437 = vmatmul.mubr.f32.gmra.mxu1 %v2156_v12  ;;  %2611 = vmatprep.mubr.f32.mxu0 %v2119_v49  ;;  %v2122_v0 = vmul.f32 %v1734_v62, %v5736_v46  ;;  %v5746_v12 = vld [vmem:[#allocation10_spill] sm:$0xff] }
 0x21e   :  { %v2161_v33 = vmul.f32 %v1539_v63, %v5733_v21  ;;  %v1736_v17 = vpop.f32.mrf.mxu1  ;;  %2612 = vmatmul.mubr.f32.gmra.mxu0 %v2118_v36  ;;  %v5747_v49 = vld [vmem:[#allocation46_spill] sm:$0xff]  ;;  %v5748_v36 = vld [vmem:[#allocation45_spill] sm:$0xff] }
 0x21f   :  { %v2123_v9 = vmul.f32 %v1736_v17, %v5735_v20  ;;  %v1543_v3 = vpop.f32.mrf.mxu0 }
 0x220   :  { %v1740_v43 = vpop.f32.mrf.mxu1  ;;  %2441 = vmatprep.mubr.f32.mxu1 %v2161_v33  ;;  %v2164_v52 = vmul.f32 %v1543_v3, %v5738_v50  ;;  %v5749_v33 = vld [vmem:[#allocation13_spill] sm:$0xff] }
 0x221   :  { %v1545_v23 = vpop.f32.mrf.mxu0  ;;  %2442 = vmatmul.mubr.f32.gmra.mxu1 %v2160_v10  ;;  %2616 = vmatprep.mubr.f32.mxu0 %v2123_v9  ;;  %v2126_v22 = vmul.f32 %v1740_v43, %v5740_v37  ;;  %v5750_v10 = vld [vmem:[#allocation12_spill] sm:$0xff]  ;;  %v5751_v9 = vld [vmem:[#allocation49_spill] sm:$0xff] }
 0x222   :  { %v2165_v55 = vmul.f32 %v1545_v23, %v5737_v26  ;;  %v1742_v35 = vpop.f32.mrf.mxu1  ;;  %2617 = vmatmul.mubr.f32.gmra.mxu0 %v2122_v0  ;;  %v5752_v0 = vld [vmem:[#allocation48_spill] sm:$0xff] }
 0x223   :  { %v2127_v14 = vmul.f32 %v1742_v35, %v5739_v34  ;;  %v1549_v45 = vpop.f32.mrf.mxu0 }
 0x224   :  { %v1746_v27 = vpop.f32.mrf.mxu1  ;;  %2446 = vmatprep.mubr.f32.mxu1 %v2165_v55  ;;  %v2168_v61 = vmul.f32 %v1549_v45, %v5742_v7  ;;  %v5753_v55 = vld [vmem:[#allocation15_spill] sm:$0xff] }
 0x225   :  { %v1551_v1 = vpop.f32.mrf.mxu0  ;;  %2447 = vmatmul.mubr.f32.gmra.mxu1 %v2164_v52  ;;  %2621 = vmatprep.mubr.f32.mxu0 %v2127_v14  ;;  %v2130_v44 = vmul.f32 %v1746_v27, %v5744_v4  ;;  %v5754_v52 = vld [vmem:[#allocation14_spill] sm:$0xff]  ;;  %v5755_v14 = vld [vmem:[#allocation53_spill] sm:$0xff] }
 0x226   :  { %v2169_v42 = vmul.f32 %v1551_v1, %v5741_v39  ;;  %v1748_v41 = vpop.f32.mrf.mxu1  ;;  %2622 = vmatmul.mubr.f32.gmra.mxu0 %v2126_v22  ;;  %v5756_v22 = vld [vmem:[#allocation51_spill] sm:$0xff] }
 0x227   :  { %v2131_v6 = vmul.f32 %v1748_v41, %v5743_v57  ;;  %v1555_v2 = vpop.f32.mrf.mxu0 }
 0x228   :  { %v1752_v53 = vpop.f32.mrf.mxu1  ;;  %2451 = vmatprep.mubr.f32.mxu1 %v2169_v42  ;;  %v2172_v31 = vmul.f32 %v1555_v2, %v5746_v12  ;;  %v5757_v42 = vld [vmem:[#allocation17_spill] sm:$0xff] }
 0x229   :  { %v1557_v40 = vpop.f32.mrf.mxu0  ;;  %2452 = vmatmul.mubr.f32.gmra.mxu1 %v2168_v61  ;;  %2626 = vmatprep.mubr.f32.mxu0 %v2131_v6  ;;  %v2134_v62 = vmul.f32 %v1752_v53, %v5748_v36  ;;  %v5758_v61 = vld [vmem:[#allocation16_spill] sm:$0xff]  ;;  %v5759_v6 = vld [vmem:[#allocation57_spill] sm:$0xff] }
 0x22a   :  { %v2173_v24 = vmul.f32 %v1557_v40, %v5745_v5  ;;  %v1754_v8 = vpop.f32.mrf.mxu1  ;;  %2627 = vmatmul.mubr.f32.gmra.mxu0 %v2130_v44  ;;  %v5760_v44 = vld [vmem:[#allocation55_spill] sm:$0xff] }
 0x22b   :  { %v2135_v54 = vmul.f32 %v1754_v8, %v5747_v49  ;;  %v1561_v11 = vpop.f32.mrf.mxu0 }
 0x22c   :  { %v1758_v63 = vpop.f32.mrf.mxu1  ;;  %2456 = vmatprep.mubr.f32.mxu1 %v2173_v24  ;;  %v2176_v20 = vmul.f32 %v1561_v11, %v5750_v10 }
 0x22d   :  { %v1563_v21 = vpop.f32.mrf.mxu0  ;;  %2457 = vmatmul.mubr.f32.gmra.mxu1 %v2172_v31  ;;  %2631 = vmatprep.mubr.f32.mxu0 %v2135_v54  ;;  %v2138_v43 = vmul.f32 %v1758_v63, %v5752_v0  ;;  %v5761_v31 = vld [vmem:[#allocation58_spill] sm:$0xff] }
 0x22e   :  { %v2177_v17 = vmul.f32 %v1563_v21, %v5749_v33  ;;  %v1760_v58 = vpop.f32.mrf.mxu1  ;;  %2632 = vmatmul.mubr.f32.gmra.mxu0 %v2134_v62 }
 0x22f   :  { %v2139_v3 = vmul.f32 %v1760_v58, %v5751_v9  ;;  %v1567_v46 = vpop.f32.mrf.mxu0 }
 0x230   :  { %v1764_v23 = vpop.f32.mrf.mxu1  ;;  %2461 = vmatprep.mubr.f32.mxu1 %v2177_v17  ;;  %v2180_v34 = vmul.f32 %v1567_v46, %v5754_v52  ;;  %v5762_v46 = vld [vmem:[#allocation59_spill] sm:$0xff] }
 0x231   :  { %v1569_v26 = vpop.f32.mrf.mxu0  ;;  %2462 = vmatmul.mubr.f32.gmra.mxu1 %v2176_v20  ;;  %2636 = vmatprep.mubr.f32.mxu0 %v2139_v3  ;;  %v2142_v27 = vmul.f32 %v1764_v23, %v5756_v22 }
 0x232   :  { %v2181_v35 = vmul.f32 %v1569_v26, %v5753_v55  ;;  %v1766_v50 = vpop.f32.mrf.mxu1  ;;  %2637 = vmatmul.mubr.f32.gmra.mxu0 %v2138_v43  ;;  %v5763_v55 = vld [vmem:[#allocation60_spill] sm:$0xff] }
 0x233   :  { %v2143_v45 = vmul.f32 %v1766_v50, %v5755_v14  ;;  %v1573_v37 = vpop.f32.mrf.mxu0 }
 0x234   :  { %v1770_v1 = vpop.f32.mrf.mxu1  ;;  %2466 = vmatprep.mubr.f32.mxu1 %v2181_v35  ;;  %v2184_v57 = vmul.f32 %v1573_v37, %v5758_v61 }
 0x235   :  { %v1575_v39 = vpop.f32.mrf.mxu0  ;;  %2467 = vmatmul.mubr.f32.gmra.mxu1 %v2180_v34  ;;  %2641 = vmatprep.mubr.f32.mxu0 %v2143_v45  ;;  %v2146_v53 = vmul.f32 %v1770_v1, %v5760_v44 }
 0x236   :  { %v2185_v41 = vmul.f32 %v1575_v39, %v5757_v42  ;;  %v1772_v7 = vpop.f32.mrf.mxu1  ;;  %2642 = vmatmul.mubr.f32.gmra.mxu0 %v2142_v27 }
 0x237   :  { %v2147_v2 = vmul.f32 %v1772_v7, %v5759_v6  ;;  %v5277_v4 = vpop.f32.mrf.mxu0 }
 0x238   :  { %v1776_v40 = vpop.f32.mrf.mxu1  ;;  %2471 = vmatprep.mubr.f32.mxu1 %v2185_v41 }
 0x239   :  { %v5280_v5 = vpop.f32.mrf.mxu0  ;;  %2472 = vmatmul.mubr.f32.gmra.mxu1 %v2184_v57  ;;  %2646 = vmatprep.mubr.f32.mxu0 %v2147_v2  ;;  %v2150_v49 = vmul.f32 %v1776_v40, %v5761_v31 }
 0x23a   :  { %v1778_v24 = vpop.f32.mrf.mxu1  ;;  %2647 = vmatmul.mubr.f32.gmra.mxu0 %v2146_v53 }
 0x23b   :  { %v2151_v8 = vmul.f32 %v1778_v24, %v5104_v32  ;;  %v5283_v12 = vpop.f32.mrf.mxu0 }
 0x23c   :  { %v1782_v54 = vpop.f32.mrf.mxu1 }
 0x23d   :  { %v5286_v11 = vpop.f32.mrf.mxu0  ;;  %2651 = vmatprep.mubr.f32.mxu0 %v2151_v8  ;;  %v2154_v21 = vmul.f32 %v1782_v54, %v5111_v51 }
 0x23e   :  { %v1784_v36 = vpop.f32.mrf.mxu1  ;;  %2652 = vmatmul.mubr.f32.gmra.mxu0 %v2150_v49 }
 0x23f   :  { %v2155_v62 = vmul.f32 %v1784_v36, %v5118_v19  ;;  %v5289_v63 = vpop.f32.mrf.mxu0 }
 0x240   :  { %v1788_v33 = vpop.f32.mrf.mxu1 }
 0x241   :  { %v5292_v17 = vpop.f32.mrf.mxu0  ;;  %2656 = vmatprep.mubr.f32.mxu0 %v2155_v62  ;;  %v2158_v20 = vmul.f32 %v1788_v33, %v5125_v48 }
 0x242   :  { %v1790_v32 = vpop.f32.mrf.mxu1  ;;  %2657 = vmatmul.mubr.f32.gmra.mxu0 %v2154_v21 }
 0x243   :  { %v2159_v58 = vmul.f32 %v1790_v32, %v5132_v18  ;;  %v5295_v10 = vpop.f32.mrf.mxu0 }
 0x244   :  { %v1794_v9 = vpop.f32.mrf.mxu1 }
 0x245   :  { %v5298_v3 = vpop.f32.mrf.mxu0  ;;  %2661 = vmatprep.mubr.f32.mxu0 %v2159_v58  ;;  %v2162_v0 = vmul.f32 %v1794_v9, %v5762_v46 }
 0x246   :  { %v1796_v19 = vpop.f32.mrf.mxu1  ;;  %2662 = vmatmul.mubr.f32.gmra.mxu0 %v2158_v20 }
 0x247   :  { %v2163_v51 = vmul.f32 %v1796_v19, %v5146_v13  ;;  %v5302_v43 = vpop.f32.mrf.mxu0 }
 0x248   :  { %v1800_v23 = vpop.f32.mrf.mxu1 }
 0x249   :  { %2666 = vmatprep.mubr.f32.mxu0 %v2163_v51  ;;  %v2166_v48 = vmul.f32 %v1800_v23, %v5763_v55  ;;  %v5306_v35 = vpop.f32.mrf.mxu0 }
 0x24a   :  { %v1802_v26 = vpop.f32.mrf.mxu1  ;;  %2667 = vmatmul.mubr.f32.gmra.mxu0 %v2162_v0 }
 0x24b   :  { %v2167_v18 = vmul.f32 %v1802_v26, %v5157_v28  ;;  %v5309_v34 = vpop.f32.mrf.mxu0 }
 0x24c   :  { %v1806_v50 = vpop.f32.mrf.mxu1 }
 0x24d   :  { %2671 = vmatprep.mubr.f32.mxu0 %v2167_v18  ;;  %v2170_v14 = vmul.f32 %v1806_v50, %v5160_v56  ;;  %v5313_v22 = vpop.f32.mrf.mxu0 }
 0x24e   :  { %v1808_v52 = vpop.f32.mrf.mxu1  ;;  %2672 = vmatmul.mubr.f32.gmra.mxu0 %v2166_v48 }
 0x24f   :  { %v2171_v13 = vmul.f32 %v1808_v52, %v5163_v29  ;;  %v5317_v42 = vpop.f32.mrf.mxu0 }
 0x250   :  { %v1812_v45 = vpop.f32.mrf.mxu1 }
 0x251   :  { %2676 = vmatprep.mubr.f32.mxu0 %v2171_v13  ;;  %v2174_v27 = vmul.f32 %v1812_v45, %v5166_v30  ;;  %v5321_v61 = vpop.f32.mrf.mxu0 }
 0x252   :  { %v1814_v37 = vpop.f32.mrf.mxu1  ;;  %2677 = vmatmul.mubr.f32.gmra.mxu0 %v2170_v14 }
 0x253   :  { %v2175_v28 = vmul.f32 %v1814_v37, %v5169_v15  ;;  %v5325_v2 = vpop.f32.mrf.mxu0 }
 0x254   :  { %v1818_v1 = vpop.f32.mrf.mxu1 }
 0x255   :  { %2681 = vmatprep.mubr.f32.mxu0 %v2175_v28  ;;  %v2178_v56 = vmul.f32 %v1818_v1, %v5172_v60  ;;  %v5328_v44 = vpop.f32.mrf.mxu0 }
 0x256   :  { %v1820_v39 = vpop.f32.mrf.mxu1  ;;  %2682 = vmatmul.mubr.f32.gmra.mxu0 %v2174_v27 }
 0x257   :  { %v2179_v29 = vmul.f32 %v1820_v39, %v5175_v16  ;;  %v5330_v53 = vpop.f32.mrf.mxu0 }
 0x258   :  { %v1824_v41 = vpop.f32.mrf.mxu1 }
 0x259   :  { %2686 = vmatprep.mubr.f32.mxu0 %v2179_v29  ;;  %v2182_v30 = vmul.f32 %v1824_v41, %v5178_v47 }
 0x25a   :  { %v1826_v7 = vpop.f32.mrf.mxu1  ;;  %2687 = vmatmul.mubr.f32.gmra.mxu0 %v2178_v56  ;;  %v5376_v56 = vld [vmem:[%s5641_s4] ss:$0 sm:$0xff] }
 0x25b   :  { %v2183_v15 = vmul.f32 %v1826_v7, %v5181_v59  ;;  %v5332_v59 = vpop.f32.mrf.mxu0 }
 0x25c   :  { %v1830_v57 = vpop.f32.mrf.mxu1 }
 0x25d   :  { %2691 = vmatprep.mubr.f32.mxu0 %v2183_v15  ;;  %v2186_v60 = vmul.f32 %v1830_v57, %v5184_v25  ;;  %v5334_v40 = vpop.f32.mrf.mxu0 }
 0x25e   :  { %v1832_v6 = vpop.f32.mrf.mxu1  ;;  %2692 = vmatmul.mubr.f32.gmra.mxu0 %v2182_v30 }
 0x25f   :  { %v2187_v16 = vmul.f32 %v1832_v6, %v5187_v38  ;;  %v5336_v47 = vpop.f32.mrf.mxu0 }
 0x261   :  { %2696 = vmatprep.mubr.f32.mxu0 %v2187_v16  ;;  %v5338_v24 = vpop.f32.mrf.mxu0 }
 0x262   :  { %2697 = vmatmul.mubr.f32.gmra.mxu0 %v2186_v60 }
 0x263   :  { %v5340_v8 = vpop.f32.mrf.mxu0 }
 0x265   :  { %v5342_v49 = vpop.f32.mrf.mxu0 }
 0x267   :  { %v5344_v36 = vpop.f32.mrf.mxu0 }
 0x269   :  { %v5346_v33 = vpop.f32.mrf.mxu0 }
 0x26b   :  { %v5348_v20 = vpop.f32.mrf.mxu0 }
 0x26d   :  { %v5350_v51 = vpop.f32.mrf.mxu0 }
 0x26f   :  { %v5352_v23 = vpop.f32.mrf.mxu0 }
 0x271   :  { %v5356_v55 = vpop.f32.mrf.mxu0 }
 0x273   :  { %v5360_v52 = vpop.f32.mrf.mxu0 }
 0x275   :  { %v5364_v45 = vpop.f32.mrf.mxu0 }
 0x277   :  { %v5368_v27 = vpop.f32.mrf.mxu0 }
 0x27d   :  { %v2318_v38 = vpop.f32.mrf.mxu1 }
 0x27e   :  { %v2319_v1 = vadd.f32 %v2318_v38, %v5280_v5 }
 0x27f   :  { %v2320_v31 = vpop.f32.mrf.mxu1 }
 0x281   :  { %v2323_v25 = vpop.f32.mrf.mxu1 }
 0x282   :  { %v2324_v30 = vadd.f32 %v5277_v4, %v2323_v25 }
 0x283   :  { %v2325_v54 = vpop.f32.mrf.mxu1 }
 0x285   :  { %v2328_v62 = vpop.f32.mrf.mxu1 }
 0x286   :  { %v2329_v54 = vadd.f32 %v2328_v62, %v5286_v11 }
 0x287   :  { %v2330_v21 = vpop.f32.mrf.mxu1 }
 0x289   :  { %v2333_v32 = vpop.f32.mrf.mxu1 }
 0x28b   :  { %v2335_v58 = vpop.f32.mrf.mxu1 }
 0x28d   :  { %v2338_v9 = vpop.f32.mrf.mxu1 }
 0x28f   :  { %v2340_v19 = vpop.f32.mrf.mxu1 }
 0x291   :  { %v2343_v46 = vpop.f32.mrf.mxu1 }
 0x293   :  { %v2345_v0 = vpop.f32.mrf.mxu1 }
 0x295   :  { %v5354_v26 = vpop.f32.mrf.mxu1 }
 0x297   :  { %v2350_v18 = vpop.f32.mrf.mxu1 }
 0x299   :  { %v5358_v48 = vpop.f32.mrf.mxu1 }
 0x29b   :  { %v2355_v50 = vpop.f32.mrf.mxu1 }
 0x29c   :  { %v2334_v50 = vadd.f32 %v5283_v12, %v2333_v32 }
 0x29d   :  { %v5362_v13 = vpop.f32.mrf.mxu1 }
 0x29f   :  { %v2360_v14 = vpop.f32.mrf.mxu1 }
 0x2a1   :  { %v5366_v37 = vpop.f32.mrf.mxu1 }
 0x2a3   :  { %v2365_v28 = vpop.f32.mrf.mxu1 }
 0x2a5   :  { %v5371_v39 = vpop.f32.mrf.mxu1 }
 0x2a6   :  { %v2543_v29 = vpop.f32.mrf.mxu0 }
 0x2a7   :  { %v2544_v41 = vadd.f32 %v2543_v29, %v2319_v1  ;;  %v2370_v7 = vpop.f32.mrf.mxu1 }
 0x2a8   :  { %v2545_v15 = vpop.f32.mrf.mxu0  ;;  %v2339_v7 = vadd.f32 %v2338_v9, %v5292_v17 }
 0x2a9   :  { %v2709_v57 = vadd.f32 %v5376_v56, %v2544_v41  ;;  %v5380_v6 = vpop.f32.mrf.mxu1 }
 0x2aa   :  { %v2548_v16 = vpop.f32.mrf.mxu0 }
 0x2ab   :  { %v2741_v5 = vmax.f32 %v2709_v57, 0.0  ;;  %v2549_v60 = vadd.f32 %v2548_v16, %v2324_v30  ;;  %v2375_v38 = vpop.f32.mrf.mxu1 }
 0x2ac   :  { %v2550_v31 = vpop.f32.mrf.mxu0 }
 0x2ad   :  { %2774 = vst.msk [vmem:[%s5642_s5] sm:$0xff] %vm2773_vm3, %v2741_v5  ;;  %v2710_v21 = vadd.f32 %v5376_v56, %v2549_v60  ;;  %v5388_v4 = vpop.f32.mrf.mxu1  ;;  %v2344_v60 = vadd.f32 %v5289_v63, %v2343_v46 }
 0x2ae   :  { %v2553_v25 = vpop.f32.mrf.mxu0 }
 0x2af   :  { %v2742_v58 = vmax.f32 %v2710_v21, 0.0  ;;  %v2554_v19 = vadd.f32 %v2553_v25, %v2329_v54  ;;  %v2380_v0 = vpop.f32.mrf.mxu1 }
 0x2b0   :  { %v2555_v18 = vpop.f32.mrf.mxu0 }
 0x2b1   :  { %2775 = vst.msk [vmem:[%s5642_s5 + $0x8] sm:$0xff] %vm2773_vm3, %v2742_v58  ;;  %v2711_v11 = vadd.f32 %v5376_v56, %v2554_v19  ;;  %v5396_v62 = vpop.f32.mrf.mxu1  ;;  %v2349_v58 = vadd.f32 %v5354_v26, %v5298_v3 }
 0x2b2   :  { %v2558_v14 = vpop.f32.mrf.mxu0 }
 0x2b3   :  { %v2743_v28 = vmax.f32 %v2711_v11, 0.0  ;;  %v2559_v1 = vadd.f32 %v2558_v14, %v2334_v50  ;;  %v2385_v29 = vpop.f32.mrf.mxu1  ;;  %v2354_v14 = vadd.f32 %v5295_v10, %v5358_v48 }
 0x2b4   :  { %v2560_v41 = vpop.f32.mrf.mxu0 }
 0x2b5   :  { %2776 = vst.msk [vmem:[%s5642_s5 + $0x10] sm:$0xff] %vm2773_vm3, %v2743_v28  ;;  %v2712_v12 = vadd.f32 %v5376_v56, %v2559_v1  ;;  %v5404_v32 = vpop.f32.mrf.mxu1 }
 0x2b6   :  { %v2563_v15 = vpop.f32.mrf.mxu0 }
 0x2b7   :  { %v2744_v30 = vmax.f32 %v2712_v12, 0.0  ;;  %v2564_v57 = vadd.f32 %v2563_v15, %v2339_v7  ;;  %v2390_v16 = vpop.f32.mrf.mxu1  ;;  %v2359_v12 = vadd.f32 %v5362_v13, %v5306_v35 }
 0x2b8   :  { %v2565_v5 = vpop.f32.mrf.mxu0 }
 0x2b9   :  { %2777 = vst.msk [vmem:[%s5642_s5 + $0x18] sm:$0xff] %vm2773_vm3, %v2744_v30  ;;  %v2713_v17 = vadd.f32 %v5376_v56, %v2564_v57  ;;  %v5412_v9 = vpop.f32.mrf.mxu1 }
 0x2ba   :  { %v2568_v38 = vpop.f32.mrf.mxu0 }
 0x2bb   :  { %v2745_v31 = vmax.f32 %v2713_v17, 0.0  ;;  %v2569_v54 = vadd.f32 %v2568_v38, %v2344_v60  ;;  %v2395_v21 = vpop.f32.mrf.mxu1  ;;  %v2364_v60 = vadd.f32 %v5302_v43, %v5366_v37 }
 0x2bc   :  { %v2570_v25 = vpop.f32.mrf.mxu0 }
 0x2bd   :  { %2778 = vst.msk [vmem:[%s5642_s5 + $0x20] sm:$0xff] %vm2773_vm3, %v2745_v31  ;;  %v2714_v63 = vadd.f32 %v5376_v56, %v2569_v54  ;;  %v5421_v46 = vpop.f32.mrf.mxu1  ;;  %v2369_v25 = vadd.f32 %v5371_v39, %v5313_v22 }
 0x2be   :  { %v2573_v19 = vpop.f32.mrf.mxu0 }
 0x2bf   :  { %v2746_v0 = vmax.f32 %v2714_v63, 0.0  ;;  %v2574_v18 = vadd.f32 %v2573_v19, %v2349_v58  ;;  %v2400_v50 = vpop.f32.mrf.mxu1 }
 0x2c0   :  { %v2575_v11 = vpop.f32.mrf.mxu0  ;;  %v2374_v50 = vadd.f32 %v5309_v34, %v5380_v6 }
 0x2c1   :  { %2779 = vst.msk [vmem:[%s5642_s5 + $0x28] sm:$0xff] %vm2773_vm3, %v2746_v0  ;;  %v2715_v3 = vadd.f32 %v5376_v56, %v2574_v18  ;;  %v5430_v26 = vpop.f32.mrf.mxu1 }
 0x2c2   :  { %v2578_v28 = vpop.f32.mrf.mxu0 }
 0x2c3   :  { %v2747_v1 = vmax.f32 %v2715_v3, 0.0  ;;  %v2579_v29 = vadd.f32 %v2578_v28, %v2354_v14  ;;  %v2405_v41 = vpop.f32.mrf.mxu1 }
 0x2c4   :  { %v2580_v7 = vpop.f32.mrf.mxu0 }
 0x2c5   :  { %2780 = vst.msk [vmem:[%s5642_s5 + $0x30] sm:$0xff] %vm2773_vm3, %v2747_v1  ;;  %v2716_v10 = vadd.f32 %v5376_v56, %v2579_v29  ;;  %v5439_v48 = vpop.f32.mrf.mxu1  ;;  %v2379_v29 = vadd.f32 %v5388_v4, %v5321_v61 }
 0x2c6   :  { %v2583_v15 = vpop.f32.mrf.mxu0 }
 0x2c7   :  { %v2748_v30 = vmax.f32 %v2716_v10, 0.0  ;;  %v2584_v57 = vadd.f32 %v2583_v15, %v2359_v12  ;;  %v2410_v16 = vpop.f32.mrf.mxu1 }
 0x2c8   :  { %v2585_v5 = vpop.f32.mrf.mxu0 }
 0x2c9   :  { %2781 = vst.msk [vmem:[%s5642_s5 + $0x38] sm:$0xff] %vm2773_vm3, %v2748_v30  ;;  %v2717_v35 = vadd.f32 %v5376_v56, %v2584_v57  ;;  %v5448_v13 = vpop.f32.mrf.mxu1  ;;  %v2384_v30 = vadd.f32 %v5317_v42, %v5396_v62 }
 0x2ca   :  { %v2588_v17 = vpop.f32.mrf.mxu0 }
 0x2cb   :  { %v2749_v38 = vmax.f32 %v2717_v35, 0.0  ;;  %v2589_v31 = vadd.f32 %v2588_v17, %v2364_v60  ;;  %v2415_v54 = vpop.f32.mrf.mxu1  ;;  %v2389_v17 = vadd.f32 %v5404_v32, %v5328_v44 }
 0x2cc   :  { %v2590_v21 = vpop.f32.mrf.mxu0 }
 0x2cd   :  { %2782 = vst.msk [vmem:[%s5642_s5 + $0x40] sm:$0xff] %vm2773_vm3, %v2749_v38  ;;  %v2718_v43 = vadd.f32 %v5376_v56, %v2589_v31  ;;  %v5457_v37 = vpop.f32.mrf.mxu1 }
 0x2ce   :  { %v2593_v58 = vpop.f32.mrf.mxu0 }
 0x2cf   :  { %v2750_v63 = vmax.f32 %v2718_v43, 0.0  ;;  %v2594_v19 = vadd.f32 %v2593_v58, %v2369_v25  ;;  %v2420_v0 = vpop.f32.mrf.mxu1  ;;  %v2394_v43 = vadd.f32 %v5325_v2, %v5412_v9 }
 0x2d0   :  { %v2595_v18 = vpop.f32.mrf.mxu0 }
 0x2d1   :  { %2783 = vst.msk [vmem:[%s5642_s5 + $0x48] sm:$0xff] %vm2773_vm3, %v2750_v63  ;;  %v2719_v22 = vadd.f32 %v5376_v56, %v2594_v19  ;;  %v5466_v39 = vpop.f32.mrf.mxu1 }
 0x2d2   :  { %v2598_v11 = vpop.f32.mrf.mxu0 }
 0x2d3   :  { %v2751_v14 = vmax.f32 %v2719_v22, 0.0  ;;  %v2599_v3 = vadd.f32 %v2598_v11, %v2374_v50  ;;  %v2425_v28 = vpop.f32.mrf.mxu1  ;;  %v2399_v50 = vadd.f32 %v5421_v46, %v5332_v59 }
 0x2d4   :  { %v2600_v1 = vpop.f32.mrf.mxu0 }
 0x2d5   :  { %2784 = vst.msk [vmem:[%s5642_s5 + $0x50] sm:$0xff] %vm2773_vm3, %v2751_v14  ;;  %v2720_v34 = vadd.f32 %v5376_v56, %v2599_v3  ;;  %v5475_v6 = vpop.f32.mrf.mxu1  ;;  %v2404_v1 = vadd.f32 %v5330_v53, %v5430_v26 }
 0x2d6   :  { %v2603_v41 = vpop.f32.mrf.mxu0 }
 0x2d7   :  { %v2752_v7 = vmax.f32 %v2720_v34, 0.0  ;;  %v2604_v12 = vadd.f32 %v2603_v41, %v2379_v29  ;;  %v2430_v10 = vpop.f32.mrf.mxu1 }
 0x2d8   :  { %v2605_v15 = vpop.f32.mrf.mxu0  ;;  %v2409_v10 = vadd.f32 %v5439_v48, %v5336_v47 }
 0x2d9   :  { %2785 = vst.msk [vmem:[%s5642_s5 + $0x58] sm:$0xff] %vm2773_vm3, %v2752_v7  ;;  %v2721_v61 = vadd.f32 %v5376_v56, %v2604_v12  ;;  %v5484_v4 = vpop.f32.mrf.mxu1 }
 0x2da   :  { %v2608_v57 = vpop.f32.mrf.mxu0 }
 0x2db   :  { %v2753_v16 = vmax.f32 %v2721_v61, 0.0  ;;  %v2609_v5 = vadd.f32 %v2608_v57, %v2384_v30  ;;  %v2435_v60 = vpop.f32.mrf.mxu1 }
 0x2dc   :  { %v2610_v35 = vpop.f32.mrf.mxu0 }
 0x2dd   :  { %2786 = vst.msk [vmem:[%s5642_s5 + $0x60] sm:$0xff] %vm2773_vm3, %v2753_v16  ;;  %v2722_v42 = vadd.f32 %v5376_v56, %v2609_v5  ;;  %v5493_v62 = vpop.f32.mrf.mxu1  ;;  %v2414_v5 = vadd.f32 %v5334_v40, %v5448_v13 }
 0x2de   :  { %v2613_v38 = vpop.f32.mrf.mxu0 }
 0x2df   :  { %v2754_v31 = vmax.f32 %v2722_v42, 0.0  ;;  %v2614_v54 = vadd.f32 %v2613_v38, %v2389_v17  ;;  %v2440_v21 = vpop.f32.mrf.mxu1 }
 0x2e0   :  { %v2615_v25 = vpop.f32.mrf.mxu0 }
 0x2e1   :  { %2787 = vst.msk [vmem:[%s5642_s5 + $0x68] sm:$0xff] %vm2773_vm3, %v2754_v31  ;;  %v2723_v44 = vadd.f32 %v5376_v56, %v2614_v54  ;;  %v5502_v32 = vpop.f32.mrf.mxu1  ;;  %v2419_v31 = vadd.f32 %v5457_v37, %v5340_v8 }
 0x2e2   :  { %v2618_v58 = vpop.f32.mrf.mxu0 }
 0x2e3   :  { %v2755_v63 = vmax.f32 %v2723_v44, 0.0  ;;  %v2619_v19 = vadd.f32 %v2618_v58, %v2394_v43  ;;  %v2445_v0 = vpop.f32.mrf.mxu1  ;;  %v2424_v58 = vadd.f32 %v5338_v24, %v5466_v39 }
 0x2e4   :  { %v2620_v18 = vpop.f32.mrf.mxu0 }
 0x2e5   :  { %2788 = vst.msk [vmem:[%s5642_s5 + $0x70] sm:$0xff] %vm2773_vm3, %v2755_v63  ;;  %v2724_v2 = vadd.f32 %v5376_v56, %v2619_v19  ;;  %v5511_v9 = vpop.f32.mrf.mxu1 }
 0x2e6   :  { %v2623_v22 = vpop.f32.mrf.mxu0 }
 0x2e7   :  { %v2756_v11 = vmax.f32 %v2724_v2, 0.0  ;;  %v2624_v14 = vadd.f32 %v2623_v22, %v2399_v50  ;;  %v2450_v3 = vpop.f32.mrf.mxu1  ;;  %v2429_v2 = vadd.f32 %v5475_v6, %v5344_v36 }
 0x2e8   :  { %v2625_v28 = vpop.f32.mrf.mxu0  ;;  %v2434_v3 = vadd.f32 %v5342_v49, %v5484_v4 }
 0x2e9   :  { %2789 = vst.msk [vmem:[%s5642_s5 + $0x78] sm:$0xff] %vm2773_vm3, %v2756_v11  ;;  %v2725_v59 = vadd.f32 %v5376_v56, %v2624_v14  ;;  %v5520_v46 = vpop.f32.mrf.mxu1 }
 0x2ea   :  { %v2628_v29 = vpop.f32.mrf.mxu0 }
 0x2eb   :  { %v2757_v34 = vmax.f32 %v2725_v59, 0.0  ;;  %v2629_v41 = vadd.f32 %v2628_v29, %v2404_v1  ;;  %v2455_v7 = vpop.f32.mrf.mxu1  ;;  %v2439_v29 = vadd.f32 %v5493_v62, %v5348_v20 }
 0x2ec   :  { %v2630_v12 = vpop.f32.mrf.mxu0 }
 0x2ed   :  { %2790 = vst.msk [vmem:[%s5642_s5 + $0x80] sm:$0xff] %vm2773_vm3, %v2757_v34  ;;  %v2726_v53 = vadd.f32 %v5376_v56, %v2629_v41  ;;  %v5529_v26 = vpop.f32.mrf.mxu1  ;;  %v2444_v12 = vadd.f32 %v5346_v33, %v5502_v32 }
 0x2ee   :  { %v2633_v15 = vpop.f32.mrf.mxu0 }
 0x2ef   :  { %v2758_v30 = vmax.f32 %v2726_v53, 0.0  ;;  %v2634_v61 = vadd.f32 %v2633_v15, %v2409_v10  ;;  %v2460_v57 = vpop.f32.mrf.mxu1 }
 0x2f0   :  { %v2635_v16 = vpop.f32.mrf.mxu0 }
 0x2f1   :  { %2791 = vst.msk [vmem:[%s5642_s5 + $0x88] sm:$0xff] %vm2773_vm3, %v2758_v30  ;;  %v2727_v47 = vadd.f32 %v5376_v56, %v2634_v61  ;;  %v5538_v48 = vpop.f32.mrf.mxu1  ;;  %v2449_v30 = vadd.f32 %v5511_v9, %v5352_v23 }
 0x2f2   :  { %v2638_v60 = vpop.f32.mrf.mxu0 }
 0x2f3   :  { %v2759_v35 = vmax.f32 %v2727_v47, 0.0  ;;  %v2639_v17 = vadd.f32 %v2638_v60, %v2414_v5  ;;  %v2465_v42 = vpop.f32.mrf.mxu1  ;;  %v2454_v5 = vadd.f32 %v5350_v51, %v5520_v46 }
 0x2f4   :  { %v2640_v38 = vpop.f32.mrf.mxu0 }
 0x2f5   :  { %2792 = vst.msk [vmem:[%s5642_s5 + $0x90] sm:$0xff] %vm2773_vm3, %v2759_v35  ;;  %v2728_v40 = vadd.f32 %v5376_v56, %v2639_v17  ;;  %v5547_v13 = vpop.f32.mrf.mxu1  ;;  %v2459_v17 = vadd.f32 %v5529_v26, %v5360_v52 }
 0x2f6   :  { %v2643_v54 = vpop.f32.mrf.mxu0 }
 0x2f7   :  { %v2760_v21 = vmax.f32 %v2728_v40, 0.0  ;;  %v2644_v25 = vadd.f32 %v2643_v54, %v2419_v31  ;;  %v2470_v43 = vpop.f32.mrf.mxu1  ;;  %v2464_v40 = vadd.f32 %v5356_v55, %v5538_v48 }
 0x2f8   :  { %v2645_v44 = vpop.f32.mrf.mxu0  ;;  %v2469_v43 = vadd.f32 %v5547_v13, %v5368_v27 }
 0x2f9   :  { %2793 = vst.msk [vmem:[%s5642_s5 + $0x98] sm:$0xff] %vm2773_vm3, %v2760_v21  ;;  %v2729_v8 = vadd.f32 %v5376_v56, %v2644_v25  ;;  %v5556_v37 = vpop.f32.mrf.mxu1 }
 0x2fa   :  { %v2648_v63 = vpop.f32.mrf.mxu0 }
 0x2fb   :  { %v2761_v19 = vmax.f32 %v2729_v8, 0.0  ;;  %v2649_v0 = vadd.f32 %v2648_v63, %v2424_v58  ;;  %v2475_v18 = vpop.f32.mrf.mxu1  ;;  %v2474_v63 = vadd.f32 %v5364_v45, %v5556_v37 }
 0x2fc   :  { %v2650_v50 = vpop.f32.mrf.mxu0 }
 0x2fd   :  { %2794 = vst.msk [vmem:[%s5642_s5 + $0xa0] sm:$0xff] %vm2773_vm3, %v2761_v19  ;;  %v2730_v24 = vadd.f32 %v5376_v56, %v2649_v0 }
 0x2fe   :  { %v2653_v39 = vpop.f32.mrf.mxu0 }
 0x2ff   :  { %v2762_v22 = vmax.f32 %v2730_v24, 0.0  ;;  %v2654_v11 = vadd.f32 %v2653_v39, %v2429_v2 }
 0x300   :  { %v2655_v14 = vpop.f32.mrf.mxu0 }
 0x301   :  { %2795 = vst.msk [vmem:[%s5642_s5 + $0xa8] sm:$0xff] %vm2773_vm3, %v2762_v22  ;;  %v2731_v36 = vadd.f32 %v5376_v56, %v2654_v11 }
 0x302   :  { %v2658_v6 = vpop.f32.mrf.mxu0 }
 0x303   :  { %v2763_v28 = vmax.f32 %v2731_v36, 0.0  ;;  %v2659_v1 = vadd.f32 %v2658_v6, %v2434_v3 }
 0x304   :  { %v2660_v59 = vpop.f32.mrf.mxu0 }
 0x305   :  { %2796 = vst.msk [vmem:[%s5642_s5 + $0xb0] sm:$0xff] %vm2773_vm3, %v2763_v28  ;;  %v2732_v49 = vadd.f32 %v5376_v56, %v2659_v1 }
 0x306   :  { %v2663_v4 = vpop.f32.mrf.mxu0 }
 0x307   :  { %v2764_v34 = vmax.f32 %v2732_v49, 0.0  ;;  %v2664_v41 = vadd.f32 %v2663_v4, %v2439_v29 }
 0x308   :  { %v2665_v7 = vpop.f32.mrf.mxu0 }
 0x309   :  { %2797 = vst.msk [vmem:[%s5642_s5 + $0xb8] sm:$0xff] %vm2773_vm3, %v2764_v34  ;;  %v2733_v20 = vadd.f32 %v5376_v56, %v2664_v41 }
 0x30a   :  { %v2668_v62 = vpop.f32.mrf.mxu0 }
 0x30b   :  { %v2765_v10 = vmax.f32 %v2733_v20, 0.0  ;;  %v2669_v53 = vadd.f32 %v2668_v62, %v2444_v12 }
 0x30c   :  { %v2670_v15 = vpop.f32.mrf.mxu0 }
 0x30d   :  { %2798 = vst.msk [vmem:[%s5642_s5 + $0xc0] sm:$0xff] %vm2773_vm3, %v2765_v10  ;;  %v2734_v33 = vadd.f32 %v5376_v56, %v2669_v53 }
 0x30e   :  { %v2673_v32 = vpop.f32.mrf.mxu0 }
 0x30f   :  { %v2766_v61 = vmax.f32 %v2734_v33, 0.0  ;;  %v2674_v57 = vadd.f32 %v2673_v32, %v2449_v30 }
 0x310   :  { %v2675_v16 = vpop.f32.mrf.mxu0 }
 0x311   :  { %2799 = vst.msk [vmem:[%s5642_s5 + $0xc8] sm:$0xff] %vm2773_vm3, %v2766_v61  ;;  %v2735_v23 = vadd.f32 %v5376_v56, %v2674_v57 }
 0x312   :  { %v2678_v9 = vpop.f32.mrf.mxu0 }
 0x313   :  { %v2767_v47 = vmax.f32 %v2735_v23, 0.0  ;;  %v2679_v60 = vadd.f32 %v2678_v9, %v2454_v5 }
 0x314   :  { %v2680_v35 = vpop.f32.mrf.mxu0 }
 0x315   :  { %2800 = vst.msk [vmem:[%s5642_s5 + $0xd0] sm:$0xff] %vm2773_vm3, %v2767_v47  ;;  %v2736_v51 = vadd.f32 %v5376_v56, %v2679_v60 }
 0x316   :  { %v2683_v46 = vpop.f32.mrf.mxu0 }
 0x317   :  { %v2768_v42 = vmax.f32 %v2736_v51, 0.0  ;;  %v2684_v38 = vadd.f32 %v2683_v46, %v2459_v17 }
 0x318   :  { %v2685_v31 = vpop.f32.mrf.mxu0 }
 0x319   :  { %2801 = vst.msk [vmem:[%s5642_s5 + $0xd8] sm:$0xff] %vm2773_vm3, %v2768_v42  ;;  %v2737_v52 = vadd.f32 %v5376_v56, %v2684_v38 }
 0x31a   :  { %v2688_v26 = vpop.f32.mrf.mxu0 }
 0x31b   :  { %v2769_v54 = vmax.f32 %v2737_v52, 0.0  ;;  %v2689_v21 = vadd.f32 %v2688_v26, %v2464_v40 }
 0x31c   :  { %v2690_v25 = vpop.f32.mrf.mxu0 }
 0x31d   :  { %2802 = vst.msk [vmem:[%s5642_s5 + $0xe0] sm:$0xff] %vm2773_vm3, %v2769_v54  ;;  %v2738_v55 = vadd.f32 %v5376_v56, %v2689_v21 }
 0x31e   :  { %v2693_v48 = vpop.f32.mrf.mxu0 }
 0x31f   :  { %v2770_v44 = vmax.f32 %v2738_v55, 0.0  ;;  %v2694_v58 = vadd.f32 %v2693_v48, %v2469_v43 }
 0x320   :  { %v2695_v8 = vpop.f32.mrf.mxu0 }
 0x321   :  { %2803 = vst.msk [vmem:[%s5642_s5 + $0xe8] sm:$0xff] %vm2773_vm3, %v2770_v44  ;;  %v2739_v27 = vadd.f32 %v5376_v56, %v2694_v58 }
 0x322   :  { %v2698_v13 = vpop.f32.mrf.mxu0 }
 0x323   :  { %v2771_v19 = vmax.f32 %v2739_v27, 0.0  ;;  %v2699_v0 = vadd.f32 %v2698_v13, %v2474_v63 }
 0x324   :  { %v2700_v18 = vpop.f32.mrf.mxu0 }
 0x325   :  { %2804 = vst.msk [vmem:[%s5642_s5 + $0xf0] sm:$0xff] %vm2773_vm3, %v2771_v19  ;;  %v2740_v50 = vadd.f32 %v5376_v56, %v2699_v0 }
 0x327   :  { %v2772_v2 = vmax.f32 %v2740_v50, 0.0 }
 0x329   :  { %2805 = vst.msk [vmem:[%s5642_s5 + $0xf8] sm:$0xff] %vm2773_vm3, %v2772_v2 }

</bundles_post_ra>
